<compile_context>
chip_gen: v6e
topology: v6e:2x2x1
jax: 0.10.0
libtpu: 0.0.40
codegen_flags: <defaults>
</compile_context>

<pallas_src>
import functools

import jax
import jax.numpy as jnp
from jax import lax
from jax.experimental import pallas as pl
from jax.experimental.pallas import tpu as pltpu


def _round_up(a, m):
    return (a + m - 1) // m * m


def _layernorm(x, gamma2d, beta2d, eps=1e-5):
    mean = jnp.mean(x, axis=-1, keepdims=True)
    var = jnp.mean((x - mean) ** 2, axis=-1, keepdims=True)
    return (x - mean) * lax.rsqrt(var + eps) * gamma2d + beta2d


def _gelu_exact(x):
    # PyTorch nn.GELU() default: exact erf-based GELU.
    return 0.5 * x * (1.0 + lax.erf(x * 0.7071067811865476))


def encoder_kernel(xf_ref,
                   wq_ref, wk_ref, wv_ref, bq_ref, bk_ref, bv_ref,
                   wo_ref, bo_ref, gamma_ref, beta_ref,
                   w1_ref, b1_ref, w2_ref, b2_ref,
                   out_ref,
                   yf_s, k_s, v_s,
                   *, num_heads, tile_n, n_valid):
    i = pl.program_id(1)
    n_pad, dim = xf_ref.shape
    dim_head = dim // num_heads
    scaling = dim_head ** -0.5

    gamma = gamma_ref[...]        # (1, D) f32
    beta = beta_ref[...]          # (1, D) f32

    # ---- once per batch element: full-sequence LayerNorm + K/V projections -> VMEM cache ----
    @pl.when(i == 0)
    def _():
        y_f16 = _layernorm(xf_ref[...], gamma, beta).astype(jnp.bfloat16)     # (N_pad, D)
        yf_s[...] = y_f16
        k = jnp.dot(y_f16, wk_ref[...], preferred_element_type=jnp.float32) + bk_ref[...]
        v = jnp.dot(y_f16, wv_ref[...], preferred_element_type=jnp.float32) + bv_ref[...]
        k_s[...] = k.astype(jnp.bfloat16)
        v_s[...] = v.astype(jnp.bfloat16)

    # ---- per query-row tile ----
    row0 = pl.multiple_of(i * tile_n, tile_n)
    x_t = xf_ref[pl.ds(row0, tile_n), :]          # (T, D) f32 residual rows
    y_t16 = yf_s[pl.ds(row0, tile_n), :]          # (T, D) bf16, already LayerNormed

    q = jnp.dot(y_t16, wq_ref[...], preferred_element_type=jnp.float32) + bq_ref[...]
    q16 = (q * scaling).astype(jnp.bfloat16)      # fold the softmax scale into q
    k16 = k_s[...]
    v16 = v_s[...]

    key_mask = None
    if n_valid < n_pad:                           # static branch: only when sequence was padded
        key_mask = lax.broadcasted_iota(jnp.int32, (tile_n, n_pad), 1) < n_valid

    # ---- multi-head attention; head concat fused into the output projection ----
    msa = jnp.zeros((tile_n, dim), jnp.float32)
    for h in range(num_heads):                    # static unroll
        sl = slice(h * dim_head, (h + 1) * dim_head)
        att = jnp.einsum('td,nd->tn', q16[:, sl], k16[:, sl],
                         preferred_element_type=jnp.float32)        # (T, N_pad) f32
        if key_mask is not None:
            att = jnp.where(key_mask, att, -1e30)
        att = jnp.exp(att - jnp.max(att, axis=-1, keepdims=True))
        att = att * pl.reciprocal(jnp.sum(att, axis=-1, keepdims=True), approx=True)
        o_h = jnp.dot(att.astype(jnp.bfloat16), v16[:, sl],
                      preferred_element_type=jnp.float32)            # (T, dh)
        msa = msa + jnp.dot(o_h.astype(jnp.bfloat16), wo_ref[h],
                            preferred_element_type=jnp.float32)      # (T, D)
    msa = msa + bo_ref[...]

    # ---- residual 1, shared LayerNorm, MLP, residual 2 ----
    y1 = msa + x_t
    y2_16 = _layernorm(y1, gamma, beta).astype(jnp.bfloat16)
    h1 = jnp.dot(y2_16, w1_ref[...], preferred_element_type=jnp.float32) + b1_ref[...]
    h1 = _gelu_exact(h1)
    mlp = jnp.dot(h1.astype(jnp.bfloat16), w2_ref[...],
                  preferred_element_type=jnp.float32) + b2_ref[...]
    out_ref[...] = (mlp + y1).astype(out_ref.dtype)


def _default_vmem_limit_bytes():
    # Leave headroom for compiler-internal scratch; never exceed ~100 MiB, and stay
    # comfortably inside v7x's 64 MiB physical VMEM.
    try:
        cap = pltpu.get_tpu_info().vmem_capacity_bytes
        return int(min(cap - 16 * 1024 * 1024, 100 * 1024 * 1024))
    except Exception:
        return 56 * 1024 * 1024


def encoder_forward(x, params, *, num_heads, tile_n=None, single_buffer_weights=True):
    B, N, D = x.shape
    H = params["w1"].shape[1]
    assert D % num_heads == 0
    dh = D // num_heads

    if tile_n is None:
        tile_n = 128 if N >= 128 else _round_up(N, 8)
    tile_n = _round_up(tile_n, 8)
    n_pad = _round_up(N, tile_n)
    n_tiles = n_pad // tile_n

    xp = x if n_pad == N else jnp.pad(x, ((0, 0), (0, n_pad - N), (0, 0)))

    bf16 = jnp.bfloat16
    # Split fused QKV weight/bias in the wrapper (free in XLA); cast weights to bf16
    # (accumulation stays f32 inside the kernel).  wo is pre-split per head -> (H, dh, D)
    # so the kernel never slices weights along lanes/sublanes.
    wq = params["wqkv"][:, :D].astype(bf16)
    wk = params["wqkv"][:, D:2 * D].astype(bf16)
    wv = params["wqkv"][:, 2 * D:].astype(bf16)
    bq = params["bqkv"][:D].reshape(1, D)
    bk = params["bqkv"][D:2 * D].reshape(1, D)
    bv = params["bqkv"][2 * D:].reshape(1, D)
    wo = params["wo"].astype(bf16).reshape(num_heads, dh, D)
    bo = params["bo"].reshape(1, D)
    gamma = params["gamma"].reshape(1, D)
    beta = params["beta"].reshape(1, D)
    w1 = params["w1"].astype(bf16)
    b1 = params["b1"].reshape(1, H)
    w2 = params["w2"].astype(bf16)
    b2 = params["b2"].reshape(1, D)

    kernel = functools.partial(encoder_kernel, num_heads=num_heads, tile_n=tile_n, n_valid=N)

    def wspec(shape):
        nd = len(shape)
        if single_buffer_weights:
            # Constant index_map -> never re-DMA'd; single-buffer to halve weight VMEM.
            return pl.BlockSpec(shape, lambda b, i: (0,) * nd, pipeline_mode=pl.Buffered(1))
        return pl.BlockSpec(shape, lambda b, i: (0,) * nd)

    x_spec = pl.BlockSpec((pl.Squeezed(), n_pad, D), lambda b, i: (b, 0, 0))
    out_spec = pl.BlockSpec((pl.Squeezed(), tile_n, D), lambda b, i: (b, i, 0))

    # Advisory cost estimate (QKV + attention + wo + MLP matmuls; softmax exp + GELU erf).
    flops = B * (2 * n_pad * D * 3 * D
                 + 4 * num_heads * n_pad * n_pad * dh
                 + 2 * n_pad * D * D
                 + 4 * n_pad * D * H)
    transcendentals = B * (num_heads * n_pad * n_pad + n_pad * H)
    weight_bytes = 2 * (3 * D * D + D * D + D * H + H * D) + 4 * (6 * D + H + 2 * D)
    bytes_accessed = B * n_pad * D * 4 * 2 + weight_bytes

    out = pl.pallas_call(
        kernel,
        out_shape=jax.ShapeDtypeStruct((B, n_pad, D), x.dtype),
        grid_spec=pltpu.PrefetchScalarGridSpec(
            num_scalar_prefetch=0,
            grid=(B, n_tiles),
            in_specs=[
                x_spec,                                             # x: full sequence per batch
                wspec((D, D)), wspec((D, D)), wspec((D, D)),        # wq, wk, wv
                wspec((1, D)), wspec((1, D)), wspec((1, D)),        # bq, bk, bv
                wspec((num_heads, dh, D)), wspec((1, D)),           # wo (per-head split), bo
                wspec((1, D)), wspec((1, D)),                       # gamma, beta (shared LN)
                wspec((D, H)), wspec((1, H)),                       # w1, b1
                wspec((H, D)), wspec((1, D)),                       # w2, b2
            ],
            out_specs=out_spec,
            scratch_shapes=[
                pltpu.VMEM((n_pad, D), jnp.bfloat16),   # cached LayerNorm(x), full sequence
                pltpu.VMEM((n_pad, D), jnp.bfloat16),   # cached K
                pltpu.VMEM((n_pad, D), jnp.bfloat16),   # cached V
            ],
        ),
        compiler_params=pltpu.CompilerParams(
            # Tile axis is "arbitrary": the K/V scratch is carried across query-row tiles.
            dimension_semantics=("parallel", "arbitrary"),
            vmem_limit_bytes=_default_vmem_limit_bytes(),
        ),
        cost_estimate=pl.CostEstimate(flops=flops, transcendentals=transcendentals,
                                      bytes_accessed=bytes_accessed),
    )(xp,
      wq, wk, wv, bq, bk, bv,
      wo, bo, gamma, beta,
      w1, b1, w2, b2)

    return out if n_pad == N else out[:, :N, :]


def init_params(key, dim, num_heads, mlp_ratio):
    ks = jax.random.split(key, 8)
    hidden = mlp_ratio * dim
    scale = 0.02
    return {
        # weights stored as [in, out] (already transposed vs. torch's [out, in])
        "wqkv": scale * jax.random.normal(ks[0], (dim, 3 * dim), jnp.float32),
        "bqkv": scale * jax.random.normal(ks[1], (3 * dim,), jnp.float32),
        "wo":   scale * jax.random.normal(ks[2], (dim, dim), jnp.float32),
        "bo":   scale * jax.random.normal(ks[3], (dim,), jnp.float32),
        "gamma": jnp.ones((dim,), jnp.float32),
        "beta":  jnp.zeros((dim,), jnp.float32),
        "w1":   scale * jax.random.normal(ks[4], (dim, hidden), jnp.float32),
        "b1":   scale * jax.random.normal(ks[5], (hidden,), jnp.float32),
        "w2":   scale * jax.random.normal(ks[6], (hidden, dim), jnp.float32),
        "b2":   scale * jax.random.normal(ks[7], (dim,), jnp.float32),
    }


def encoder_reference(x, params, *, num_heads):
    # Pure-JAX f32 reference mirroring the PyTorch forward, for sanity checking.
    def ln(t):
        m = jnp.mean(t, axis=-1, keepdims=True)
        v = jnp.mean((t - m) ** 2, axis=-1, keepdims=True)
        return (t - m) / jnp.sqrt(v + 1e-5) * params["gamma"] + params["beta"]

    B, N, D = x.shape
    dh = D // num_heads
    y = ln(x)
    qkv = y @ params["wqkv"] + params["bqkv"]
    q, k, v = jnp.split(qkv, 3, axis=-1)
    q = q.reshape(B, N, num_heads, dh).transpose(0, 2, 1, 3)
    k = k.reshape(B, N, num_heads, dh).transpose(0, 2, 1, 3)
    v = v.reshape(B, N, num_heads, dh).transpose(0, 2, 1, 3)
    att = jax.nn.softmax(jnp.einsum("bhqd,bhkd->bhqk", q, k) * dh ** -0.5, axis=-1)
    o = jnp.einsum("bhqk,bhkd->bhqd", att, v).transpose(0, 2, 1, 3).reshape(B, N, D)
    y1 = o @ params["wo"] + params["bo"] + x
    y2 = ln(y1)
    h1 = jax.nn.gelu(y2 @ params["w1"] + params["b1"], approximate=False)
    return h1 @ params["w2"] + params["b2"] + y1


if __name__ == "__main__":
    B, N, DIM, HEADS, MLP_RATIO = 2, 16, 32, 4, 2

    key = jax.random.PRNGKey(0)
    kx, kx2, kp = jax.random.split(key, 3)
    params = init_params(kp, DIM, HEADS, MLP_RATIO)

    def run(x_, **kw):
        try:
            out = encoder_forward(x_, params, num_heads=HEADS, **kw)
            return jax.block_until_ready(out)
        except Exception:
            # Fallback if this JAX build rejects pl.Buffered(1) single-buffered weights.
            out = encoder_forward(x_, params, num_heads=HEADS,
                                  single_buffer_weights=False, **kw)
            return jax.block_until_ready(out)

    # 2 query tiles per batch element: exercises the cached K/V scratch carried across tiles.
    x = jax.random.normal(kx, (B, N, DIM), jnp.float32)
    out = run(x, tile_n=8)
    ref = encoder_reference(x, params, num_heads=HEADS)
    assert out.shape == (B, N, DIM)
    # bf16 matmul operands + approx reciprocal => loose-ish tolerance vs the f32 reference.
    assert jnp.allclose(out, ref, atol=2e-2, rtol=2e-2), float(jnp.max(jnp.abs(out - ref)))

    # Non-multiple sequence length: exercises padding + key masking (ViT's N=197 case).
    x2 = jax.random.normal(kx2, (B, 12, DIM), jnp.float32)
    out2 = run(x2, tile_n=8)
    ref2 = encoder_reference(x2, params, num_heads=HEADS)
    assert out2.shape == (B, 12, DIM)
    assert jnp.allclose(out2, ref2, atol=2e-2, rtol=2e-2), float(jnp.max(jnp.abs(out2 - ref2)))

    print("KERNEL_OK")
</pallas_src>

<mosaic_0001>
module attributes {stable_mosaic.version = 11 : i64} {
  func.func @encoder_kernel(%arg0: i32, %arg1: i32, %arg2: memref<1x16x32xf32, #tpu.memory_space<vmem>>, %arg3: memref<32x32xbf16, #tpu.memory_space<vmem>>, %arg4: memref<32x32xbf16, #tpu.memory_space<vmem>>, %arg5: memref<32x32xbf16, #tpu.memory_space<vmem>>, %arg6: memref<1x32xf32, #tpu.memory_space<vmem>>, %arg7: memref<1x32xf32, #tpu.memory_space<vmem>>, %arg8: memref<1x32xf32, #tpu.memory_space<vmem>>, %arg9: memref<4x8x32xbf16, #tpu.memory_space<vmem>>, %arg10: memref<1x32xf32, #tpu.memory_space<vmem>>, %arg11: memref<1x32xf32, #tpu.memory_space<vmem>>, %arg12: memref<1x32xf32, #tpu.memory_space<vmem>>, %arg13: memref<32x64xbf16, #tpu.memory_space<vmem>>, %arg14: memref<1x64xf32, #tpu.memory_space<vmem>>, %arg15: memref<64x32xbf16, #tpu.memory_space<vmem>>, %arg16: memref<1x32xf32, #tpu.memory_space<vmem>>, %arg17: memref<1x8x32xf32, #tpu.memory_space<vmem>>, %arg18: memref<16x32xbf16, #tpu.memory_space<vmem>>, %arg19: memref<16x32xbf16, #tpu.memory_space<vmem>>, %arg20: memref<16x32xbf16, #tpu.memory_space<vmem>>) attributes {dimension_semantics = [#tpu.dimension_semantics<parallel>, #tpu.dimension_semantics<arbitrary>], iteration_bounds = array<i64: 2, 2>, scalar_prefetch = 0 : i64, scratch_operands = 3 : i64, tpu.core_type = #tpu.core_type<tc>, window_params = [{transform_indices = @transform_0, window_bounds = array<i64: 1, 16, 32>}, {pipeline_mode = #tpu.pipeline_mode<synchronous>, transform_indices = @transform_1, window_bounds = array<i64: 32, 32>}, {pipeline_mode = #tpu.pipeline_mode<synchronous>, transform_indices = @transform_2, window_bounds = array<i64: 32, 32>}, {pipeline_mode = #tpu.pipeline_mode<synchronous>, transform_indices = @transform_3, window_bounds = array<i64: 32, 32>}, {pipeline_mode = #tpu.pipeline_mode<synchronous>, transform_indices = @transform_4, window_bounds = array<i64: 1, 32>}, {pipeline_mode = #tpu.pipeline_mode<synchronous>, transform_indices = @transform_5, window_bounds = array<i64: 1, 32>}, {pipeline_mode = #tpu.pipeline_mode<synchronous>, transform_indices = @transform_6, window_bounds = array<i64: 1, 32>}, {pipeline_mode = #tpu.pipeline_mode<synchronous>, transform_indices = @transform_7, window_bounds = array<i64: 4, 8, 32>}, {pipeline_mode = #tpu.pipeline_mode<synchronous>, transform_indices = @transform_8, window_bounds = array<i64: 1, 32>}, {pipeline_mode = #tpu.pipeline_mode<synchronous>, transform_indices = @transform_9, window_bounds = array<i64: 1, 32>}, {pipeline_mode = #tpu.pipeline_mode<synchronous>, transform_indices = @transform_10, window_bounds = array<i64: 1, 32>}, {pipeline_mode = #tpu.pipeline_mode<synchronous>, transform_indices = @transform_11, window_bounds = array<i64: 32, 64>}, {pipeline_mode = #tpu.pipeline_mode<synchronous>, transform_indices = @transform_12, window_bounds = array<i64: 1, 64>}, {pipeline_mode = #tpu.pipeline_mode<synchronous>, transform_indices = @transform_13, window_bounds = array<i64: 64, 32>}, {pipeline_mode = #tpu.pipeline_mode<synchronous>, transform_indices = @transform_14, window_bounds = array<i64: 1, 32>}, {transform_indices = @transform_15, window_bounds = array<i64: 1, 8, 32>}]} {
    %c0 = arith.constant 0 : index
    %c0_0 = arith.constant 0 : index
    %0 = vector.load %arg11[%c0, %c0_0] : memref<1x32xf32, #tpu.memory_space<vmem>>, vector<1x32xf32>
    %c0_1 = arith.constant 0 : index
    %c0_2 = arith.constant 0 : index
    %1 = vector.load %arg12[%c0_1, %c0_2] : memref<1x32xf32, #tpu.memory_space<vmem>>, vector<1x32xf32>
    %c0_i32 = arith.constant 0 : i32
    %2 = arith.cmpi eq, %arg1, %c0_i32 : i32
    %3 = arith.extui %2 : i1 to i32
    %c0_i32_3 = arith.constant 0 : i32
    %4 = arith.cmpi ne, %3, %c0_i32_3 : i32
    scf.if %4 {
      %c0_69 = arith.constant 0 : index
      %c0_70 = arith.constant 0 : index
      %c0_71 = arith.constant 0 : index
      %157 = vector.load %arg2[%c0_69, %c0_70, %c0_71] : memref<1x16x32xf32, #tpu.memory_space<vmem>>, vector<1x16x32xf32>
      %158 = vector.shape_cast %157 : vector<1x16x32xf32> to vector<16x32xf32>
      %cst_72 = arith.constant dense<0.000000e+00> : vector<16xf32>
      %159 = vector.multi_reduction <add>, %158, %cst_72 [1] : vector<16x32xf32> to vector<16xf32>
      %160 = vector.shape_cast %159 : vector<16xf32> to vector<16x1xf32>
      %cst_73 = arith.constant 3.200000e+01 : f32
      %161 = vector.broadcast %cst_73 : f32 to vector<16x1xf32>
      %162 = arith.divf %160, %161 : vector<16x1xf32>
      %163 = vector.broadcast %162 : vector<16x1xf32> to vector<16x32xf32>
      %164 = arith.subf %158, %163 : vector<16x32xf32>
      %165 = arith.mulf %164, %164 : vector<16x32xf32>
      %cst_74 = arith.constant dense<0.000000e+00> : vector<16xf32>
      %166 = vector.multi_reduction <add>, %165, %cst_74 [1] : vector<16x32xf32> to vector<16xf32>
      %167 = vector.shape_cast %166 : vector<16xf32> to vector<16x1xf32>
      %cst_75 = arith.constant 3.200000e+01 : f32
      %168 = vector.broadcast %cst_75 : f32 to vector<16x1xf32>
      %169 = arith.divf %167, %168 : vector<16x1xf32>
      %170 = vector.broadcast %162 : vector<16x1xf32> to vector<16x32xf32>
      %171 = arith.subf %158, %170 : vector<16x32xf32>
      %cst_76 = arith.constant 9.99999974E-6 : f32
      %172 = vector.broadcast %cst_76 : f32 to vector<16x1xf32>
      %173 = arith.addf %169, %172 : vector<16x1xf32>
      %174 = math.rsqrt %173 : vector<16x1xf32>
      %175 = vector.broadcast %174 : vector<16x1xf32> to vector<16x32xf32>
      %176 = arith.mulf %171, %175 : vector<16x32xf32>
      %177 = vector.broadcast %0 : vector<1x32xf32> to vector<16x32xf32>
      %178 = arith.mulf %176, %177 : vector<16x32xf32>
      %179 = vector.broadcast %1 : vector<1x32xf32> to vector<16x32xf32>
      %180 = arith.addf %178, %179 : vector<16x32xf32>
      %181 = arith.truncf %180 : vector<16x32xf32> to vector<16x32xbf16>
      %c0_77 = arith.constant 0 : index
      %c0_78 = arith.constant 0 : index
      %182 = vector.load %arg18[%c0_77, %c0_78] : memref<16x32xbf16, #tpu.memory_space<vmem>>, vector<16x32xbf16>
      tpu.vector_store %arg18[%c0_77, %c0_78], %181 {strides = array<i32>} : memref<16x32xbf16, #tpu.memory_space<vmem>>, vector<16x32xbf16>,
      %c0_79 = arith.constant 0 : index
      %c0_80 = arith.constant 0 : index
      %183 = vector.load %arg4[%c0_79, %c0_80] : memref<32x32xbf16, #tpu.memory_space<vmem>>, vector<32x32xbf16>
      %cst_81 = arith.constant dense<0.000000e+00> : vector<16x32xf32>
      %184 = tpu.matmul %181, %183, %cst_81 {dimension_numbers = #tpu.dot_dimension_numbers<[1], [0], [0], [1], [0, 0, 1, 1], [], []>} : vector<16x32xbf16>, vector<32x32xbf16>, vector<16x32xf32> -> vector<16x32xf32>
      %c0_82 = arith.constant 0 : index
      %c0_83 = arith.constant 0 : index
      %185 = vector.load %arg7[%c0_82, %c0_83] : memref<1x32xf32, #tpu.memory_space<vmem>>, vector<1x32xf32>
      %186 = vector.broadcast %185 : vector<1x32xf32> to vector<16x32xf32>
      %187 = arith.addf %184, %186 : vector<16x32xf32>
      %c0_84 = arith.constant 0 : index
      %c0_85 = arith.constant 0 : index
      %188 = vector.load %arg5[%c0_84, %c0_85] : memref<32x32xbf16, #tpu.memory_space<vmem>>, vector<32x32xbf16>
      %cst_86 = arith.constant dense<0.000000e+00> : vector<16x32xf32>
      %189 = tpu.matmul %181, %188, %cst_86 {dimension_numbers = #tpu.dot_dimension_numbers<[1], [0], [0], [1], [0, 0, 1, 1], [], []>} : vector<16x32xbf16>, vector<32x32xbf16>, vector<16x32xf32> -> vector<16x32xf32>
      %c0_87 = arith.constant 0 : index
      %c0_88 = arith.constant 0 : index
      %190 = vector.load %arg8[%c0_87, %c0_88] : memref<1x32xf32, #tpu.memory_space<vmem>>, vector<1x32xf32>
      %191 = vector.broadcast %190 : vector<1x32xf32> to vector<16x32xf32>
      %192 = arith.addf %189, %191 : vector<16x32xf32>
      %193 = arith.truncf %187 : vector<16x32xf32> to vector<16x32xbf16>
      %c0_89 = arith.constant 0 : index
      %c0_90 = arith.constant 0 : index
      %194 = vector.load %arg19[%c0_89, %c0_90] : memref<16x32xbf16, #tpu.memory_space<vmem>>, vector<16x32xbf16>
      tpu.vector_store %arg19[%c0_89, %c0_90], %193 {strides = array<i32>} : memref<16x32xbf16, #tpu.memory_space<vmem>>, vector<16x32xbf16>,
      %195 = arith.truncf %192 : vector<16x32xf32> to vector<16x32xbf16>
      %c0_91 = arith.constant 0 : index
      %c0_92 = arith.constant 0 : index
      %196 = vector.load %arg20[%c0_91, %c0_92] : memref<16x32xbf16, #tpu.memory_space<vmem>>, vector<16x32xbf16>
      tpu.vector_store %arg20[%c0_91, %c0_92], %195 {strides = array<i32>} : memref<16x32xbf16, #tpu.memory_space<vmem>>, vector<16x32xbf16>,
    } else {
    }
    %c8_i32 = arith.constant 8 : i32
    %5 = arith.muli %arg1, %c8_i32 : i32
    %6 = tpu.assume_multiple %5, 8 : i32
    %c0_4 = arith.constant 0 : index
    %7 = arith.index_cast %6 : i32 to index
    %c0_5 = arith.constant 0 : index
    %8 = vector.load %arg2[%c0_4, %7, %c0_5] : memref<1x16x32xf32, #tpu.memory_space<vmem>>, vector<1x8x32xf32>
    %9 = vector.shape_cast %8 : vector<1x8x32xf32> to vector<8x32xf32>
    %10 = arith.index_cast %6 : i32 to index
    %c0_6 = arith.constant 0 : index
    %11 = vector.load %arg18[%10, %c0_6] : memref<16x32xbf16, #tpu.memory_space<vmem>>, vector<8x32xbf16>
    %c0_7 = arith.constant 0 : index
    %c0_8 = arith.constant 0 : index
    %12 = vector.load %arg3[%c0_7, %c0_8] : memref<32x32xbf16, #tpu.memory_space<vmem>>, vector<32x32xbf16>
    %cst = arith.constant dense<0.000000e+00> : vector<8x32xf32>
    %13 = tpu.matmul %11, %12, %cst {dimension_numbers = #tpu.dot_dimension_numbers<[1], [0], [0], [1], [0, 0, 1, 1], [], []>} : vector<8x32xbf16>, vector<32x32xbf16>, vector<8x32xf32> -> vector<8x32xf32>
    %c0_9 = arith.constant 0 : index
    %c0_10 = arith.constant 0 : index
    %14 = vector.load %arg6[%c0_9, %c0_10] : memref<1x32xf32, #tpu.memory_space<vmem>>, vector<1x32xf32>
    %15 = vector.broadcast %14 : vector<1x32xf32> to vector<8x32xf32>
    %16 = arith.addf %13, %15 : vector<8x32xf32>
    %cst_11 = arith.constant 0.353553385 : f32
    %17 = vector.broadcast %cst_11 : f32 to vector<8x32xf32>
    %18 = arith.mulf %16, %17 : vector<8x32xf32>
    %19 = arith.truncf %18 : vector<8x32xf32> to vector<8x32xbf16>
    %c0_12 = arith.constant 0 : index
    %c0_13 = arith.constant 0 : index
    %20 = vector.load %arg19[%c0_12, %c0_13] : memref<16x32xbf16, #tpu.memory_space<vmem>>, vector<16x32xbf16>
    %c0_14 = arith.constant 0 : index
    %c0_15 = arith.constant 0 : index
    %21 = vector.load %arg20[%c0_14, %c0_15] : memref<16x32xbf16, #tpu.memory_space<vmem>>, vector<16x32xbf16>
    %cst_16 = arith.constant 0.000000e+00 : f32
    %22 = vector.broadcast %cst_16 : f32 to vector<8x32xf32>
    %23 = vector.extract_strided_slice %19 {offsets = [0, 0], sizes = [8, 8], strides = [1, 1]} : vector<8x32xbf16> to vector<8x8xbf16>
    %24 = vector.extract_strided_slice %20 {offsets = [0, 0], sizes = [16, 8], strides = [1, 1]} : vector<16x32xbf16> to vector<16x8xbf16>
    "tpu.trace_start"() <{level = 10 : i32, message = "td,nd->tn"}> : () -> ()
    %cst_17 = arith.constant dense<0.000000e+00> : vector<8x16xf32>
    %25 = tpu.matmul %23, %24, %cst_17 {dimension_numbers = #tpu.dot_dimension_numbers<[1], [1], [0], [0], [0, 0, 1, 0], [], []>} : vector<8x8xbf16>, vector<16x8xbf16>, vector<8x16xf32> -> vector<8x16xf32>
    "tpu.trace_stop"() : () -> ()
    %cst_18 = arith.constant dense<0xFF800000> : vector<8xf32>
    %26 = vector.multi_reduction <maximumf>, %25, %cst_18 [1] : vector<8x16xf32> to vector<8xf32>
    %27 = vector.shape_cast %26 : vector<8xf32> to vector<8x1xf32>
    %28 = vector.broadcast %27 : vector<8x1xf32> to vector<8x16xf32>
    %29 = arith.subf %25, %28 : vector<8x16xf32>
    %30 = math.exp %29 : vector<8x16xf32>
    %cst_19 = arith.constant dense<0.000000e+00> : vector<8xf32>
    %31 = vector.multi_reduction <add>, %30, %cst_19 [1] : vector<8x16xf32> to vector<8xf32>
    %32 = vector.shape_cast %31 : vector<8xf32> to vector<8x1xf32>
    %33 = tpu.reciprocal %32 {approx = true} : vector<8x1xf32> -> vector<8x1xf32>
    %34 = vector.broadcast %33 : vector<8x1xf32> to vector<8x16xf32>
    %35 = arith.mulf %30, %34 : vector<8x16xf32>
    %36 = arith.truncf %35 : vector<8x16xf32> to vector<8x16xbf16>
    %37 = vector.extract_strided_slice %21 {offsets = [0, 0], sizes = [16, 8], strides = [1, 1]} : vector<16x32xbf16> to vector<16x8xbf16>
    %cst_20 = arith.constant dense<0.000000e+00> : vector<8x8xf32>
    %38 = tpu.matmul %36, %37, %cst_20 {dimension_numbers = #tpu.dot_dimension_numbers<[1], [0], [0], [1], [0, 0, 1, 1], [], []>} : vector<8x16xbf16>, vector<16x8xbf16>, vector<8x8xf32> -> vector<8x8xf32>
    %39 = arith.truncf %38 : vector<8x8xf32> to vector<8x8xbf16>
    %c0_21 = arith.constant 0 : index
    %c0_22 = arith.constant 0 : index
    %c0_23 = arith.constant 0 : index
    %40 = vector.load %arg9[%c0_21, %c0_22, %c0_23] : memref<4x8x32xbf16, #tpu.memory_space<vmem>>, vector<1x8x32xbf16>
    %41 = vector.shape_cast %40 : vector<1x8x32xbf16> to vector<8x32xbf16>
    %cst_24 = arith.constant dense<0.000000e+00> : vector<8x32xf32>
    %42 = tpu.matmul %39, %41, %cst_24 {dimension_numbers = #tpu.dot_dimension_numbers<[1], [0], [0], [1], [0, 0, 1, 1], [], []>} : vector<8x8xbf16>, vector<8x32xbf16>, vector<8x32xf32> -> vector<8x32xf32>
    %43 = arith.addf %22, %42 : vector<8x32xf32>
    %44 = vector.extract_strided_slice %19 {offsets = [0, 8], sizes = [8, 8], strides = [1, 1]} : vector<8x32xbf16> to vector<8x8xbf16>
    %45 = vector.extract_strided_slice %20 {offsets = [0, 8], sizes = [16, 8], strides = [1, 1]} : vector<16x32xbf16> to vector<16x8xbf16>
    "tpu.trace_start"() <{level = 10 : i32, message = "td,nd->tn"}> : () -> ()
    %cst_25 = arith.constant dense<0.000000e+00> : vector<8x16xf32>
    %46 = tpu.matmul %44, %45, %cst_25 {dimension_numbers = #tpu.dot_dimension_numbers<[1], [1], [0], [0], [0, 0, 1, 0], [], []>} : vector<8x8xbf16>, vector<16x8xbf16>, vector<8x16xf32> -> vector<8x16xf32>
    "tpu.trace_stop"() : () -> ()
    %cst_26 = arith.constant dense<0xFF800000> : vector<8xf32>
    %47 = vector.multi_reduction <maximumf>, %46, %cst_26 [1] : vector<8x16xf32> to vector<8xf32>
    %48 = vector.shape_cast %47 : vector<8xf32> to vector<8x1xf32>
    %49 = vector.broadcast %48 : vector<8x1xf32> to vector<8x16xf32>
    %50 = arith.subf %46, %49 : vector<8x16xf32>
    %51 = math.exp %50 : vector<8x16xf32>
    %cst_27 = arith.constant dense<0.000000e+00> : vector<8xf32>
    %52 = vector.multi_reduction <add>, %51, %cst_27 [1] : vector<8x16xf32> to vector<8xf32>
    %53 = vector.shape_cast %52 : vector<8xf32> to vector<8x1xf32>
    %54 = tpu.reciprocal %53 {approx = true} : vector<8x1xf32> -> vector<8x1xf32>
    %55 = vector.broadcast %54 : vector<8x1xf32> to vector<8x16xf32>
    %56 = arith.mulf %51, %55 : vector<8x16xf32>
    %57 = arith.truncf %56 : vector<8x16xf32> to vector<8x16xbf16>
    %58 = vector.extract_strided_slice %21 {offsets = [0, 8], sizes = [16, 8], strides = [1, 1]} : vector<16x32xbf16> to vector<16x8xbf16>
    %cst_28 = arith.constant dense<0.000000e+00> : vector<8x8xf32>
    %59 = tpu.matmul %57, %58, %cst_28 {dimension_numbers = #tpu.dot_dimension_numbers<[1], [0], [0], [1], [0, 0, 1, 1], [], []>} : vector<8x16xbf16>, vector<16x8xbf16>, vector<8x8xf32> -> vector<8x8xf32>
    %60 = arith.truncf %59 : vector<8x8xf32> to vector<8x8xbf16>
    %c1 = arith.constant 1 : index
    %c0_29 = arith.constant 0 : index
    %c0_30 = arith.constant 0 : index
    %61 = vector.load %arg9[%c1, %c0_29, %c0_30] : memref<4x8x32xbf16, #tpu.memory_space<vmem>>, vector<1x8x32xbf16>
    %62 = vector.shape_cast %61 : vector<1x8x32xbf16> to vector<8x32xbf16>
    %cst_31 = arith.constant dense<0.000000e+00> : vector<8x32xf32>
    %63 = tpu.matmul %60, %62, %cst_31 {dimension_numbers = #tpu.dot_dimension_numbers<[1], [0], [0], [1], [0, 0, 1, 1], [], []>} : vector<8x8xbf16>, vector<8x32xbf16>, vector<8x32xf32> -> vector<8x32xf32>
    %64 = arith.addf %43, %63 : vector<8x32xf32>
    %65 = vector.extract_strided_slice %19 {offsets = [0, 16], sizes = [8, 8], strides = [1, 1]} : vector<8x32xbf16> to vector<8x8xbf16>
    %66 = vector.extract_strided_slice %20 {offsets = [0, 16], sizes = [16, 8], strides = [1, 1]} : vector<16x32xbf16> to vector<16x8xbf16>
    "tpu.trace_start"() <{level = 10 : i32, message = "td,nd->tn"}> : () -> ()
    %cst_32 = arith.constant dense<0.000000e+00> : vector<8x16xf32>
    %67 = tpu.matmul %65, %66, %cst_32 {dimension_numbers = #tpu.dot_dimension_numbers<[1], [1], [0], [0], [0, 0, 1, 0], [], []>} : vector<8x8xbf16>, vector<16x8xbf16>, vector<8x16xf32> -> vector<8x16xf32>
    "tpu.trace_stop"() : () -> ()
    %cst_33 = arith.constant dense<0xFF800000> : vector<8xf32>
    %68 = vector.multi_reduction <maximumf>, %67, %cst_33 [1] : vector<8x16xf32> to vector<8xf32>
    %69 = vector.shape_cast %68 : vector<8xf32> to vector<8x1xf32>
    %70 = vector.broadcast %69 : vector<8x1xf32> to vector<8x16xf32>
    %71 = arith.subf %67, %70 : vector<8x16xf32>
    %72 = math.exp %71 : vector<8x16xf32>
    %cst_34 = arith.constant dense<0.000000e+00> : vector<8xf32>
    %73 = vector.multi_reduction <add>, %72, %cst_34 [1] : vector<8x16xf32> to vector<8xf32>
    %74 = vector.shape_cast %73 : vector<8xf32> to vector<8x1xf32>
    %75 = tpu.reciprocal %74 {approx = true} : vector<8x1xf32> -> vector<8x1xf32>
    %76 = vector.broadcast %75 : vector<8x1xf32> to vector<8x16xf32>
    %77 = arith.mulf %72, %76 : vector<8x16xf32>
    %78 = arith.truncf %77 : vector<8x16xf32> to vector<8x16xbf16>
    %79 = vector.extract_strided_slice %21 {offsets = [0, 16], sizes = [16, 8], strides = [1, 1]} : vector<16x32xbf16> to vector<16x8xbf16>
    %cst_35 = arith.constant dense<0.000000e+00> : vector<8x8xf32>
    %80 = tpu.matmul %78, %79, %cst_35 {dimension_numbers = #tpu.dot_dimension_numbers<[1], [0], [0], [1], [0, 0, 1, 1], [], []>} : vector<8x16xbf16>, vector<16x8xbf16>, vector<8x8xf32> -> vector<8x8xf32>
    %81 = arith.truncf %80 : vector<8x8xf32> to vector<8x8xbf16>
    %c2 = arith.constant 2 : index
    %c0_36 = arith.constant 0 : index
    %c0_37 = arith.constant 0 : index
    %82 = vector.load %arg9[%c2, %c0_36, %c0_37] : memref<4x8x32xbf16, #tpu.memory_space<vmem>>, vector<1x8x32xbf16>
    %83 = vector.shape_cast %82 : vector<1x8x32xbf16> to vector<8x32xbf16>
    %cst_38 = arith.constant dense<0.000000e+00> : vector<8x32xf32>
    %84 = tpu.matmul %81, %83, %cst_38 {dimension_numbers = #tpu.dot_dimension_numbers<[1], [0], [0], [1], [0, 0, 1, 1], [], []>} : vector<8x8xbf16>, vector<8x32xbf16>, vector<8x32xf32> -> vector<8x32xf32>
    %85 = arith.addf %64, %84 : vector<8x32xf32>
    %86 = vector.extract_strided_slice %19 {offsets = [0, 24], sizes = [8, 8], strides = [1, 1]} : vector<8x32xbf16> to vector<8x8xbf16>
    %87 = vector.extract_strided_slice %20 {offsets = [0, 24], sizes = [16, 8], strides = [1, 1]} : vector<16x32xbf16> to vector<16x8xbf16>
    "tpu.trace_start"() <{level = 10 : i32, message = "td,nd->tn"}> : () -> ()
    %cst_39 = arith.constant dense<0.000000e+00> : vector<8x16xf32>
    %88 = tpu.matmul %86, %87, %cst_39 {dimension_numbers = #tpu.dot_dimension_numbers<[1], [1], [0], [0], [0, 0, 1, 0], [], []>} : vector<8x8xbf16>, vector<16x8xbf16>, vector<8x16xf32> -> vector<8x16xf32>
    "tpu.trace_stop"() : () -> ()
    %cst_40 = arith.constant dense<0xFF800000> : vector<8xf32>
    %89 = vector.multi_reduction <maximumf>, %88, %cst_40 [1] : vector<8x16xf32> to vector<8xf32>
    %90 = vector.shape_cast %89 : vector<8xf32> to vector<8x1xf32>
    %91 = vector.broadcast %90 : vector<8x1xf32> to vector<8x16xf32>
    %92 = arith.subf %88, %91 : vector<8x16xf32>
    %93 = math.exp %92 : vector<8x16xf32>
    %cst_41 = arith.constant dense<0.000000e+00> : vector<8xf32>
    %94 = vector.multi_reduction <add>, %93, %cst_41 [1] : vector<8x16xf32> to vector<8xf32>
    %95 = vector.shape_cast %94 : vector<8xf32> to vector<8x1xf32>
    %96 = tpu.reciprocal %95 {approx = true} : vector<8x1xf32> -> vector<8x1xf32>
    %97 = vector.broadcast %96 : vector<8x1xf32> to vector<8x16xf32>
    %98 = arith.mulf %93, %97 : vector<8x16xf32>
    %99 = arith.truncf %98 : vector<8x16xf32> to vector<8x16xbf16>
    %100 = vector.extract_strided_slice %21 {offsets = [0, 24], sizes = [16, 8], strides = [1, 1]} : vector<16x32xbf16> to vector<16x8xbf16>
    %cst_42 = arith.constant dense<0.000000e+00> : vector<8x8xf32>
    %101 = tpu.matmul %99, %100, %cst_42 {dimension_numbers = #tpu.dot_dimension_numbers<[1], [0], [0], [1], [0, 0, 1, 1], [], []>} : vector<8x16xbf16>, vector<16x8xbf16>, vector<8x8xf32> -> vector<8x8xf32>
    %102 = arith.truncf %101 : vector<8x8xf32> to vector<8x8xbf16>
    %c3 = arith.constant 3 : index
    %c0_43 = arith.constant 0 : index
    %c0_44 = arith.constant 0 : index
    %103 = vector.load %arg9[%c3, %c0_43, %c0_44] : memref<4x8x32xbf16, #tpu.memory_space<vmem>>, vector<1x8x32xbf16>
    %104 = vector.shape_cast %103 : vector<1x8x32xbf16> to vector<8x32xbf16>
    %cst_45 = arith.constant dense<0.000000e+00> : vector<8x32xf32>
    %105 = tpu.matmul %102, %104, %cst_45 {dimension_numbers = #tpu.dot_dimension_numbers<[1], [0], [0], [1], [0, 0, 1, 1], [], []>} : vector<8x8xbf16>, vector<8x32xbf16>, vector<8x32xf32> -> vector<8x32xf32>
    %106 = arith.addf %85, %105 : vector<8x32xf32>
    %c0_46 = arith.constant 0 : index
    %c0_47 = arith.constant 0 : index
    %107 = vector.load %arg10[%c0_46, %c0_47] : memref<1x32xf32, #tpu.memory_space<vmem>>, vector<1x32xf32>
    %108 = vector.broadcast %107 : vector<1x32xf32> to vector<8x32xf32>
    %109 = arith.addf %106, %108 : vector<8x32xf32>
    %110 = arith.addf %109, %9 : vector<8x32xf32>
    %cst_48 = arith.constant dense<0.000000e+00> : vector<8xf32>
    %111 = vector.multi_reduction <add>, %110, %cst_48 [1] : vector<8x32xf32> to vector<8xf32>
    %112 = vector.shape_cast %111 : vector<8xf32> to vector<8x1xf32>
    %cst_49 = arith.constant 3.200000e+01 : f32
    %113 = vector.broadcast %cst_49 : f32 to vector<8x1xf32>
    %114 = arith.divf %112, %113 : vector<8x1xf32>
    %115 = vector.broadcast %114 : vector<8x1xf32> to vector<8x32xf32>
    %116 = arith.subf %110, %115 : vector<8x32xf32>
    %117 = arith.mulf %116, %116 : vector<8x32xf32>
    %cst_50 = arith.constant dense<0.000000e+00> : vector<8xf32>
    %118 = vector.multi_reduction <add>, %117, %cst_50 [1] : vector<8x32xf32> to vector<8xf32>
    %119 = vector.shape_cast %118 : vector<8xf32> to vector<8x1xf32>
    %cst_51 = arith.constant 3.200000e+01 : f32
    %120 = vector.broadcast %cst_51 : f32 to vector<8x1xf32>
    %121 = arith.divf %119, %120 : vector<8x1xf32>
    %122 = vector.broadcast %114 : vector<8x1xf32> to vector<8x32xf32>
    %123 = arith.subf %110, %122 : vector<8x32xf32>
    %cst_52 = arith.constant 9.99999974E-6 : f32
    %124 = vector.broadcast %cst_52 : f32 to vector<8x1xf32>
    %125 = arith.addf %121, %124 : vector<8x1xf32>
    %126 = math.rsqrt %125 : vector<8x1xf32>
    %127 = vector.broadcast %126 : vector<8x1xf32> to vector<8x32xf32>
    %128 = arith.mulf %123, %127 : vector<8x32xf32>
    %129 = vector.broadcast %0 : vector<1x32xf32> to vector<8x32xf32>
    %130 = arith.mulf %128, %129 : vector<8x32xf32>
    %131 = vector.broadcast %1 : vector<1x32xf32> to vector<8x32xf32>
    %132 = arith.addf %130, %131 : vector<8x32xf32>
    %133 = arith.truncf %132 : vector<8x32xf32> to vector<8x32xbf16>
    %c0_53 = arith.constant 0 : index
    %c0_54 = arith.constant 0 : index
    %134 = vector.load %arg13[%c0_53, %c0_54] : memref<32x64xbf16, #tpu.memory_space<vmem>>, vector<32x64xbf16>
    %cst_55 = arith.constant dense<0.000000e+00> : vector<8x64xf32>
    %135 = tpu.matmul %133, %134, %cst_55 {dimension_numbers = #tpu.dot_dimension_numbers<[1], [0], [0], [1], [0, 0, 1, 1], [], []>} : vector<8x32xbf16>, vector<32x64xbf16>, vector<8x64xf32> -> vector<8x64xf32>
    %c0_56 = arith.constant 0 : index
    %c0_57 = arith.constant 0 : index
    %136 = vector.load %arg14[%c0_56, %c0_57] : memref<1x64xf32, #tpu.memory_space<vmem>>, vector<1x64xf32>
    %137 = vector.broadcast %136 : vector<1x64xf32> to vector<8x64xf32>
    %138 = arith.addf %135, %137 : vector<8x64xf32>
    %cst_58 = arith.constant 5.000000e-01 : f32
    %139 = vector.broadcast %cst_58 : f32 to vector<8x64xf32>
    %140 = arith.mulf %139, %138 : vector<8x64xf32>
    %cst_59 = arith.constant 0.707106769 : f32
    %141 = vector.broadcast %cst_59 : f32 to vector<8x64xf32>
    %142 = arith.mulf %138, %141 : vector<8x64xf32>
    %143 = math.erf %142 : vector<8x64xf32>
    %cst_60 = arith.constant 1.000000e+00 : f32
    %144 = vector.broadcast %cst_60 : f32 to vector<8x64xf32>
    %145 = arith.addf %144, %143 : vector<8x64xf32>
    %146 = arith.mulf %140, %145 : vector<8x64xf32>
    %147 = arith.truncf %146 : vector<8x64xf32> to vector<8x64xbf16>
    %c0_61 = arith.constant 0 : index
    %c0_62 = arith.constant 0 : index
    %148 = vector.load %arg15[%c0_61, %c0_62] : memref<64x32xbf16, #tpu.memory_space<vmem>>, vector<64x32xbf16>
    %cst_63 = arith.constant dense<0.000000e+00> : vector<8x32xf32>
    %149 = tpu.matmul %147, %148, %cst_63 {dimension_numbers = #tpu.dot_dimension_numbers<[1], [0], [0], [1], [0, 0, 1, 1], [], []>} : vector<8x64xbf16>, vector<64x32xbf16>, vector<8x32xf32> -> vector<8x32xf32>
    %c0_64 = arith.constant 0 : index
    %c0_65 = arith.constant 0 : index
    %150 = vector.load %arg16[%c0_64, %c0_65] : memref<1x32xf32, #tpu.memory_space<vmem>>, vector<1x32xf32>
    %151 = vector.broadcast %150 : vector<1x32xf32> to vector<8x32xf32>
    %152 = arith.addf %149, %151 : vector<8x32xf32>
    %153 = arith.addf %152, %110 : vector<8x32xf32>
    %c0_66 = arith.constant 0 : index
    %c0_67 = arith.constant 0 : index
    %c0_68 = arith.constant 0 : index
    %154 = vector.load %arg17[%c0_66, %c0_67, %c0_68] : memref<1x8x32xf32, #tpu.memory_space<vmem>>, vector<1x8x32xf32>
    %155 = vector.shape_cast %154 : vector<1x8x32xf32> to vector<8x32xf32>
    %156 = vector.shape_cast %153 : vector<8x32xf32> to vector<1x8x32xf32>
    tpu.vector_store %arg17[%c0_66, %c0_67, %c0_68], %156 {strides = array<i32>} : memref<1x8x32xf32, #tpu.memory_space<vmem>>, vector<1x8x32xf32>,
    return
  }
  func.func @transform_0(%arg0: i32, %arg1: i32) -> (i32, i32, i32) {
    %c0_i32 = arith.constant 0 : i32
    %c0_i32_0 = arith.constant 0 : i32
    %c0_i32_1 = arith.constant 0 : i32
    return %arg0, %c0_i32, %c0_i32_0 : i32, i32, i32
  }
  func.func @transform_1(%arg0: i32, %arg1: i32) -> (i32, i32) {
    %c0_i32 = arith.constant 0 : i32
    %c0_i32_0 = arith.constant 0 : i32
    %c0_i32_1 = arith.constant 0 : i32
    return %c0_i32, %c0_i32_0 : i32, i32
  }
  func.func @transform_2(%arg0: i32, %arg1: i32) -> (i32, i32) {
    %c0_i32 = arith.constant 0 : i32
    %c0_i32_0 = arith.constant 0 : i32
    %c0_i32_1 = arith.constant 0 : i32
    return %c0_i32, %c0_i32_0 : i32, i32
  }
  func.func @transform_3(%arg0: i32, %arg1: i32) -> (i32, i32) {
    %c0_i32 = arith.constant 0 : i32
    %c0_i32_0 = arith.constant 0 : i32
    %c0_i32_1 = arith.constant 0 : i32
    return %c0_i32, %c0_i32_0 : i32, i32
  }
  func.func @transform_4(%arg0: i32, %arg1: i32) -> (i32, i32) {
    %c0_i32 = arith.constant 0 : i32
    %c0_i32_0 = arith.constant 0 : i32
    %c0_i32_1 = arith.constant 0 : i32
    return %c0_i32, %c0_i32_0 : i32, i32
  }
  func.func @transform_5(%arg0: i32, %arg1: i32) -> (i32, i32) {
    %c0_i32 = arith.constant 0 : i32
    %c0_i32_0 = arith.constant 0 : i32
    %c0_i32_1 = arith.constant 0 : i32
    return %c0_i32, %c0_i32_0 : i32, i32
  }
  func.func @transform_6(%arg0: i32, %arg1: i32) -> (i32, i32) {
    %c0_i32 = arith.constant 0 : i32
    %c0_i32_0 = arith.constant 0 : i32
    %c0_i32_1 = arith.constant 0 : i32
    return %c0_i32, %c0_i32_0 : i32, i32
  }
  func.func @transform_7(%arg0: i32, %arg1: i32) -> (i32, i32, i32) {
    %c0_i32 = arith.constant 0 : i32
    %c0_i32_0 = arith.constant 0 : i32
    %c0_i32_1 = arith.constant 0 : i32
    %c0_i32_2 = arith.constant 0 : i32
    return %c0_i32, %c0_i32_0, %c0_i32_1 : i32, i32, i32
  }
  func.func @transform_8(%arg0: i32, %arg1: i32) -> (i32, i32) {
    %c0_i32 = arith.constant 0 : i32
    %c0_i32_0 = arith.constant 0 : i32
    %c0_i32_1 = arith.constant 0 : i32
    return %c0_i32, %c0_i32_0 : i32, i32
  }
  func.func @transform_9(%arg0: i32, %arg1: i32) -> (i32, i32) {
    %c0_i32 = arith.constant 0 : i32
    %c0_i32_0 = arith.constant 0 : i32
    %c0_i32_1 = arith.constant 0 : i32
    return %c0_i32, %c0_i32_0 : i32, i32
  }
  func.func @transform_10(%arg0: i32, %arg1: i32) -> (i32, i32) {
    %c0_i32 = arith.constant 0 : i32
    %c0_i32_0 = arith.constant 0 : i32
    %c0_i32_1 = arith.constant 0 : i32
    return %c0_i32, %c0_i32_0 : i32, i32
  }
  func.func @transform_11(%arg0: i32, %arg1: i32) -> (i32, i32) {
    %c0_i32 = arith.constant 0 : i32
    %c0_i32_0 = arith.constant 0 : i32
    %c0_i32_1 = arith.constant 0 : i32
    return %c0_i32, %c0_i32_0 : i32, i32
  }
  func.func @transform_12(%arg0: i32, %arg1: i32) -> (i32, i32) {
    %c0_i32 = arith.constant 0 : i32
    %c0_i32_0 = arith.constant 0 : i32
    %c0_i32_1 = arith.constant 0 : i32
    return %c0_i32, %c0_i32_0 : i32, i32
  }
  func.func @transform_13(%arg0: i32, %arg1: i32) -> (i32, i32) {
    %c0_i32 = arith.constant 0 : i32
    %c0_i32_0 = arith.constant 0 : i32
    %c0_i32_1 = arith.constant 0 : i32
    return %c0_i32, %c0_i32_0 : i32, i32
  }
  func.func @transform_14(%arg0: i32, %arg1: i32) -> (i32, i32) {
    %c0_i32 = arith.constant 0 : i32
    %c0_i32_0 = arith.constant 0 : i32
    %c0_i32_1 = arith.constant 0 : i32
    return %c0_i32, %c0_i32_0 : i32, i32
  }
  func.func @transform_15(%arg0: i32, %arg1: i32) -> (i32, i32, i32) {
    %c0_i32 = arith.constant 0 : i32
    %c0_i32_0 = arith.constant 0 : i32
    return %arg0, %arg1, %c0_i32 : i32, i32, i32
  }
}

module attributes {stable_mosaic.version = 11 : i64} {
  func.func @encoder_kernel(%arg0: i32, %arg1: i32, %arg2: memref<1x16x32xf32, #tpu.memory_space<vmem>>, %arg3: memref<32x32xbf16, #tpu.memory_space<vmem>>, %arg4: memref<32x32xbf16, #tpu.memory_space<vmem>>, %arg5: memref<32x32xbf16, #tpu.memory_space<vmem>>, %arg6: memref<1x32xf32, #tpu.memory_space<vmem>>, %arg7: memref<1x32xf32, #tpu.memory_space<vmem>>, %arg8: memref<1x32xf32, #tpu.memory_space<vmem>>, %arg9: memref<4x8x32xbf16, #tpu.memory_space<vmem>>, %arg10: memref<1x32xf32, #tpu.memory_space<vmem>>, %arg11: memref<1x32xf32, #tpu.memory_space<vmem>>, %arg12: memref<1x32xf32, #tpu.memory_space<vmem>>, %arg13: memref<32x64xbf16, #tpu.memory_space<vmem>>, %arg14: memref<1x64xf32, #tpu.memory_space<vmem>>, %arg15: memref<64x32xbf16, #tpu.memory_space<vmem>>, %arg16: memref<1x32xf32, #tpu.memory_space<vmem>>, %arg17: memref<1x8x32xf32, #tpu.memory_space<vmem>>, %arg18: memref<16x32xbf16, #tpu.memory_space<vmem>>, %arg19: memref<16x32xbf16, #tpu.memory_space<vmem>>, %arg20: memref<16x32xbf16, #tpu.memory_space<vmem>>) attributes {dimension_semantics = [#tpu.dimension_semantics<parallel>, #tpu.dimension_semantics<arbitrary>], iteration_bounds = array<i64: 2, 2>, scalar_prefetch = 0 : i64, scratch_operands = 3 : i64, tpu.core_type = #tpu.core_type<tc>, window_params = [{transform_indices = @transform_0, window_bounds = array<i64: 1, 16, 32>}, {pipeline_mode = #tpu.pipeline_mode<synchronous>, transform_indices = @transform_1, window_bounds = array<i64: 32, 32>}, {pipeline_mode = #tpu.pipeline_mode<synchronous>, transform_indices = @transform_2, window_bounds = array<i64: 32, 32>}, {pipeline_mode = #tpu.pipeline_mode<synchronous>, transform_indices = @transform_3, window_bounds = array<i64: 32, 32>}, {pipeline_mode = #tpu.pipeline_mode<synchronous>, transform_indices = @transform_4, window_bounds = array<i64: 1, 32>}, {pipeline_mode = #tpu.pipeline_mode<synchronous>, transform_indices = @transform_5, window_bounds = array<i64: 1, 32>}, {pipeline_mode = #tpu.pipeline_mode<synchronous>, transform_indices = @transform_6, window_bounds = array<i64: 1, 32>}, {pipeline_mode = #tpu.pipeline_mode<synchronous>, transform_indices = @transform_7, window_bounds = array<i64: 4, 8, 32>}, {pipeline_mode = #tpu.pipeline_mode<synchronous>, transform_indices = @transform_8, window_bounds = array<i64: 1, 32>}, {pipeline_mode = #tpu.pipeline_mode<synchronous>, transform_indices = @transform_9, window_bounds = array<i64: 1, 32>}, {pipeline_mode = #tpu.pipeline_mode<synchronous>, transform_indices = @transform_10, window_bounds = array<i64: 1, 32>}, {pipeline_mode = #tpu.pipeline_mode<synchronous>, transform_indices = @transform_11, window_bounds = array<i64: 32, 64>}, {pipeline_mode = #tpu.pipeline_mode<synchronous>, transform_indices = @transform_12, window_bounds = array<i64: 1, 64>}, {pipeline_mode = #tpu.pipeline_mode<synchronous>, transform_indices = @transform_13, window_bounds = array<i64: 64, 32>}, {pipeline_mode = #tpu.pipeline_mode<synchronous>, transform_indices = @transform_14, window_bounds = array<i64: 1, 32>}, {transform_indices = @transform_15, window_bounds = array<i64: 1, 8, 32>}]} {
    %c0 = arith.constant 0 : index
    %c0_0 = arith.constant 0 : index
    %0 = vector.load %arg11[%c0, %c0_0] : memref<1x32xf32, #tpu.memory_space<vmem>>, vector<1x32xf32>
    %c0_1 = arith.constant 0 : index
    %c0_2 = arith.constant 0 : index
    %1 = vector.load %arg12[%c0_1, %c0_2] : memref<1x32xf32, #tpu.memory_space<vmem>>, vector<1x32xf32>
    %c0_i32 = arith.constant 0 : i32
    %2 = arith.cmpi eq, %arg1, %c0_i32 : i32
    %3 = arith.extui %2 : i1 to i32
    %c0_i32_3 = arith.constant 0 : i32
    %4 = arith.cmpi ne, %3, %c0_i32_3 : i32
    scf.if %4 {
      %c0_69 = arith.constant 0 : index
      %c0_70 = arith.constant 0 : index
      %c0_71 = arith.constant 0 : index
      %157 = vector.load %arg2[%c0_69, %c0_70, %c0_71] : memref<1x16x32xf32, #tpu.memory_space<vmem>>, vector<1x16x32xf32>
      %158 = vector.shape_cast %157 : vector<1x16x32xf32> to vector<16x32xf32>
      %cst_72 = arith.constant dense<0.000000e+00> : vector<16xf32>
      %159 = vector.multi_reduction <add>, %158, %cst_72 [1] : vector<16x32xf32> to vector<16xf32>
      %160 = vector.shape_cast %159 : vector<16xf32> to vector<16x1xf32>
      %cst_73 = arith.constant 3.200000e+01 : f32
      %161 = vector.broadcast %cst_73 : f32 to vector<16x1xf32>
      %162 = arith.divf %160, %161 : vector<16x1xf32>
      %163 = vector.broadcast %162 : vector<16x1xf32> to vector<16x32xf32>
      %164 = arith.subf %158, %163 : vector<16x32xf32>
      %165 = arith.mulf %164, %164 : vector<16x32xf32>
      %cst_74 = arith.constant dense<0.000000e+00> : vector<16xf32>
      %166 = vector.multi_reduction <add>, %165, %cst_74 [1] : vector<16x32xf32> to vector<16xf32>
      %167 = vector.shape_cast %166 : vector<16xf32> to vector<16x1xf32>
      %cst_75 = arith.constant 3.200000e+01 : f32
      %168 = vector.broadcast %cst_75 : f32 to vector<16x1xf32>
      %169 = arith.divf %167, %168 : vector<16x1xf32>
      %170 = vector.broadcast %162 : vector<16x1xf32> to vector<16x32xf32>
      %171 = arith.subf %158, %170 : vector<16x32xf32>
      %cst_76 = arith.constant 9.99999974E-6 : f32
      %172 = vector.broadcast %cst_76 : f32 to vector<16x1xf32>
      %173 = arith.addf %169, %172 : vector<16x1xf32>
      %174 = math.rsqrt %173 : vector<16x1xf32>
      %175 = vector.broadcast %174 : vector<16x1xf32> to vector<16x32xf32>
      %176 = arith.mulf %171, %175 : vector<16x32xf32>
      %177 = vector.broadcast %0 : vector<1x32xf32> to vector<16x32xf32>
      %178 = arith.mulf %176, %177 : vector<16x32xf32>
      %179 = vector.broadcast %1 : vector<1x32xf32> to vector<16x32xf32>
      %180 = arith.addf %178, %179 : vector<16x32xf32>
      %181 = arith.truncf %180 : vector<16x32xf32> to vector<16x32xbf16>
      %c0_77 = arith.constant 0 : index
      %c0_78 = arith.constant 0 : index
      %182 = vector.load %arg18[%c0_77, %c0_78] : memref<16x32xbf16, #tpu.memory_space<vmem>>, vector<16x32xbf16>
      tpu.vector_store %arg18[%c0_77, %c0_78], %181 {strides = array<i32>} : memref<16x32xbf16, #tpu.memory_space<vmem>>, vector<16x32xbf16>,
      %c0_79 = arith.constant 0 : index
      %c0_80 = arith.constant 0 : index
      %183 = vector.load %arg4[%c0_79, %c0_80] : memref<32x32xbf16, #tpu.memory_space<vmem>>, vector<32x32xbf16>
      %cst_81 = arith.constant dense<0.000000e+00> : vector<16x32xf32>
      %184 = tpu.matmul %181, %183, %cst_81 {dimension_numbers = #tpu.dot_dimension_numbers<[1], [0], [0], [1], [0, 0, 1, 1], [], []>} : vector<16x32xbf16>, vector<32x32xbf16>, vector<16x32xf32> -> vector<16x32xf32>
      %c0_82 = arith.constant 0 : index
      %c0_83 = arith.constant 0 : index
      %185 = vector.load %arg7[%c0_82, %c0_83] : memref<1x32xf32, #tpu.memory_space<vmem>>, vector<1x32xf32>
      %186 = vector.broadcast %185 : vector<1x32xf32> to vector<16x32xf32>
      %187 = arith.addf %184, %186 : vector<16x32xf32>
      %c0_84 = arith.constant 0 : index
      %c0_85 = arith.constant 0 : index
      %188 = vector.load %arg5[%c0_84, %c0_85] : memref<32x32xbf16, #tpu.memory_space<vmem>>, vector<32x32xbf16>
      %cst_86 = arith.constant dense<0.000000e+00> : vector<16x32xf32>
      %189 = tpu.matmul %181, %188, %cst_86 {dimension_numbers = #tpu.dot_dimension_numbers<[1], [0], [0], [1], [0, 0, 1, 1], [], []>} : vector<16x32xbf16>, vector<32x32xbf16>, vector<16x32xf32> -> vector<16x32xf32>
      %c0_87 = arith.constant 0 : index
      %c0_88 = arith.constant 0 : index
      %190 = vector.load %arg8[%c0_87, %c0_88] : memref<1x32xf32, #tpu.memory_space<vmem>>, vector<1x32xf32>
      %191 = vector.broadcast %190 : vector<1x32xf32> to vector<16x32xf32>
      %192 = arith.addf %189, %191 : vector<16x32xf32>
      %193 = arith.truncf %187 : vector<16x32xf32> to vector<16x32xbf16>
      %c0_89 = arith.constant 0 : index
      %c0_90 = arith.constant 0 : index
      %194 = vector.load %arg19[%c0_89, %c0_90] : memref<16x32xbf16, #tpu.memory_space<vmem>>, vector<16x32xbf16>
      tpu.vector_store %arg19[%c0_89, %c0_90], %193 {strides = array<i32>} : memref<16x32xbf16, #tpu.memory_space<vmem>>, vector<16x32xbf16>,
      %195 = arith.truncf %192 : vector<16x32xf32> to vector<16x32xbf16>
      %c0_91 = arith.constant 0 : index
      %c0_92 = arith.constant 0 : index
      %196 = vector.load %arg20[%c0_91, %c0_92] : memref<16x32xbf16, #tpu.memory_space<vmem>>, vector<16x32xbf16>
      tpu.vector_store %arg20[%c0_91, %c0_92], %195 {strides = array<i32>} : memref<16x32xbf16, #tpu.memory_space<vmem>>, vector<16x32xbf16>,
    } else {
    }
    %c8_i32 = arith.constant 8 : i32
    %5 = arith.muli %arg1, %c8_i32 : i32
    %6 = tpu.assume_multiple %5, 8 : i32
    %c0_4 = arith.constant 0 : index
    %7 = arith.index_cast %6 : i32 to index
    %c0_5 = arith.constant 0 : index
    %8 = vector.load %arg2[%c0_4, %7, %c0_5] : memref<1x16x32xf32, #tpu.memory_space<vmem>>, vector<1x8x32xf32>
    %9 = vector.shape_cast %8 : vector<1x8x32xf32> to vector<8x32xf32>
    %10 = arith.index_cast %6 : i32 to index
    %c0_6 = arith.constant 0 : index
    %11 = vector.load %arg18[%10, %c0_6] : memref<16x32xbf16, #tpu.memory_space<vmem>>, vector<8x32xbf16>
    %c0_7 = arith.constant 0 : index
    %c0_8 = arith.constant 0 : index
    %12 = vector.load %arg3[%c0_7, %c0_8] : memref<32x32xbf16, #tpu.memory_space<vmem>>, vector<32x32xbf16>
    %cst = arith.constant dense<0.000000e+00> : vector<8x32xf32>
    %13 = tpu.matmul %11, %12, %cst {dimension_numbers = #tpu.dot_dimension_numbers<[1], [0], [0], [1], [0, 0, 1, 1], [], []>} : vector<8x32xbf16>, vector<32x32xbf16>, vector<8x32xf32> -> vector<8x32xf32>
    %c0_9 = arith.constant 0 : index
    %c0_10 = arith.constant 0 : index
    %14 = vector.load %arg6[%c0_9, %c0_10] : memref<1x32xf32, #tpu.memory_space<vmem>>, vector<1x32xf32>
    %15 = vector.broadcast %14 : vector<1x32xf32> to vector<8x32xf32>
    %16 = arith.addf %13, %15 : vector<8x32xf32>
    %cst_11 = arith.constant 0.353553385 : f32
    %17 = vector.broadcast %cst_11 : f32 to vector<8x32xf32>
    %18 = arith.mulf %16, %17 : vector<8x32xf32>
    %19 = arith.truncf %18 : vector<8x32xf32> to vector<8x32xbf16>
    %c0_12 = arith.constant 0 : index
    %c0_13 = arith.constant 0 : index
    %20 = vector.load %arg19[%c0_12, %c0_13] : memref<16x32xbf16, #tpu.memory_space<vmem>>, vector<16x32xbf16>
    %c0_14 = arith.constant 0 : index
    %c0_15 = arith.constant 0 : index
    %21 = vector.load %arg20[%c0_14, %c0_15] : memref<16x32xbf16, #tpu.memory_space<vmem>>, vector<16x32xbf16>
    %cst_16 = arith.constant 0.000000e+00 : f32
    %22 = vector.broadcast %cst_16 : f32 to vector<8x32xf32>
    %23 = vector.extract_strided_slice %19 {offsets = [0, 0], sizes = [8, 8], strides = [1, 1]} : vector<8x32xbf16> to vector<8x8xbf16>
    %24 = vector.extract_strided_slice %20 {offsets = [0, 0], sizes = [16, 8], strides = [1, 1]} : vector<16x32xbf16> to vector<16x8xbf16>
    "tpu.trace_start"() <{level = 10 : i32, message = "td,nd->tn"}> : () -> ()
    %cst_17 = arith.constant dense<0.000000e+00> : vector<8x16xf32>
    %25 = tpu.matmul %23, %24, %cst_17 {dimension_numbers = #tpu.dot_dimension_numbers<[1], [1], [0], [0], [0, 0, 1, 0], [], []>} : vector<8x8xbf16>, vector<16x8xbf16>, vector<8x16xf32> -> vector<8x16xf32>
    "tpu.trace_stop"() : () -> ()
    %cst_18 = arith.constant dense<0xFF800000> : vector<8xf32>
    %26 = vector.multi_reduction <maximumf>, %25, %cst_18 [1] : vector<8x16xf32> to vector<8xf32>
    %27 = vector.shape_cast %26 : vector<8xf32> to vector<8x1xf32>
    %28 = vector.broadcast %27 : vector<8x1xf32> to vector<8x16xf32>
    %29 = arith.subf %25, %28 : vector<8x16xf32>
    %30 = math.exp %29 : vector<8x16xf32>
    %cst_19 = arith.constant dense<0.000000e+00> : vector<8xf32>
    %31 = vector.multi_reduction <add>, %30, %cst_19 [1] : vector<8x16xf32> to vector<8xf32>
    %32 = vector.shape_cast %31 : vector<8xf32> to vector<8x1xf32>
    %33 = tpu.reciprocal %32 {approx = true} : vector<8x1xf32> -> vector<8x1xf32>
    %34 = vector.broadcast %33 : vector<8x1xf32> to vector<8x16xf32>
    %35 = arith.mulf %30, %34 : vector<8x16xf32>
    %36 = arith.truncf %35 : vector<8x16xf32> to vector<8x16xbf16>
    %37 = vector.extract_strided_slice %21 {offsets = [0, 0], sizes = [16, 8], strides = [1, 1]} : vector<16x32xbf16> to vector<16x8xbf16>
    %cst_20 = arith.constant dense<0.000000e+00> : vector<8x8xf32>
    %38 = tpu.matmul %36, %37, %cst_20 {dimension_numbers = #tpu.dot_dimension_numbers<[1], [0], [0], [1], [0, 0, 1, 1], [], []>} : vector<8x16xbf16>, vector<16x8xbf16>, vector<8x8xf32> -> vector<8x8xf32>
    %39 = arith.truncf %38 : vector<8x8xf32> to vector<8x8xbf16>
    %c0_21 = arith.constant 0 : index
    %c0_22 = arith.constant 0 : index
    %c0_23 = arith.constant 0 : index
    %40 = vector.load %arg9[%c0_21, %c0_22, %c0_23] : memref<4x8x32xbf16, #tpu.memory_space<vmem>>, vector<1x8x32xbf16>
    %41 = vector.shape_cast %40 : vector<1x8x32xbf16> to vector<8x32xbf16>
    %cst_24 = arith.constant dense<0.000000e+00> : vector<8x32xf32>
    %42 = tpu.matmul %39, %41, %cst_24 {dimension_numbers = #tpu.dot_dimension_numbers<[1], [0], [0], [1], [0, 0, 1, 1], [], []>} : vector<8x8xbf16>, vector<8x32xbf16>, vector<8x32xf32> -> vector<8x32xf32>
    %43 = arith.addf %22, %42 : vector<8x32xf32>
    %44 = vector.extract_strided_slice %19 {offsets = [0, 8], sizes = [8, 8], strides = [1, 1]} : vector<8x32xbf16> to vector<8x8xbf16>
    %45 = vector.extract_strided_slice %20 {offsets = [0, 8], sizes = [16, 8], strides = [1, 1]} : vector<16x32xbf16> to vector<16x8xbf16>
    "tpu.trace_start"() <{level = 10 : i32, message = "td,nd->tn"}> : () -> ()
    %cst_25 = arith.constant dense<0.000000e+00> : vector<8x16xf32>
    %46 = tpu.matmul %44, %45, %cst_25 {dimension_numbers = #tpu.dot_dimension_numbers<[1], [1], [0], [0], [0, 0, 1, 0], [], []>} : vector<8x8xbf16>, vector<16x8xbf16>, vector<8x16xf32> -> vector<8x16xf32>
    "tpu.trace_stop"() : () -> ()
    %cst_26 = arith.constant dense<0xFF800000> : vector<8xf32>
    %47 = vector.multi_reduction <maximumf>, %46, %cst_26 [1] : vector<8x16xf32> to vector<8xf32>
    %48 = vector.shape_cast %47 : vector<8xf32> to vector<8x1xf32>
    %49 = vector.broadcast %48 : vector<8x1xf32> to vector<8x16xf32>
    %50 = arith.subf %46, %49 : vector<8x16xf32>
    %51 = math.exp %50 : vector<8x16xf32>
    %cst_27 = arith.constant dense<0.000000e+00> : vector<8xf32>
    %52 = vector.multi_reduction <add>, %51, %cst_27 [1] : vector<8x16xf32> to vector<8xf32>
    %53 = vector.shape_cast %52 : vector<8xf32> to vector<8x1xf32>
    %54 = tpu.reciprocal %53 {approx = true} : vector<8x1xf32> -> vector<8x1xf32>
    %55 = vector.broadcast %54 : vector<8x1xf32> to vector<8x16xf32>
    %56 = arith.mulf %51, %55 : vector<8x16xf32>
    %57 = arith.truncf %56 : vector<8x16xf32> to vector<8x16xbf16>
    %58 = vector.extract_strided_slice %21 {offsets = [0, 8], sizes = [16, 8], strides = [1, 1]} : vector<16x32xbf16> to vector<16x8xbf16>
    %cst_28 = arith.constant dense<0.000000e+00> : vector<8x8xf32>
    %59 = tpu.matmul %57, %58, %cst_28 {dimension_numbers = #tpu.dot_dimension_numbers<[1], [0], [0], [1], [0, 0, 1, 1], [], []>} : vector<8x16xbf16>, vector<16x8xbf16>, vector<8x8xf32> -> vector<8x8xf32>
    %60 = arith.truncf %59 : vector<8x8xf32> to vector<8x8xbf16>
    %c1 = arith.constant 1 : index
    %c0_29 = arith.constant 0 : index
    %c0_30 = arith.constant 0 : index
    %61 = vector.load %arg9[%c1, %c0_29, %c0_30] : memref<4x8x32xbf16, #tpu.memory_space<vmem>>, vector<1x8x32xbf16>
    %62 = vector.shape_cast %61 : vector<1x8x32xbf16> to vector<8x32xbf16>
    %cst_31 = arith.constant dense<0.000000e+00> : vector<8x32xf32>
    %63 = tpu.matmul %60, %62, %cst_31 {dimension_numbers = #tpu.dot_dimension_numbers<[1], [0], [0], [1], [0, 0, 1, 1], [], []>} : vector<8x8xbf16>, vector<8x32xbf16>, vector<8x32xf32> -> vector<8x32xf32>
    %64 = arith.addf %43, %63 : vector<8x32xf32>
    %65 = vector.extract_strided_slice %19 {offsets = [0, 16], sizes = [8, 8], strides = [1, 1]} : vector<8x32xbf16> to vector<8x8xbf16>
    %66 = vector.extract_strided_slice %20 {offsets = [0, 16], sizes = [16, 8], strides = [1, 1]} : vector<16x32xbf16> to vector<16x8xbf16>
    "tpu.trace_start"() <{level = 10 : i32, message = "td,nd->tn"}> : () -> ()
    %cst_32 = arith.constant dense<0.000000e+00> : vector<8x16xf32>
    %67 = tpu.matmul %65, %66, %cst_32 {dimension_numbers = #tpu.dot_dimension_numbers<[1], [1], [0], [0], [0, 0, 1, 0], [], []>} : vector<8x8xbf16>, vector<16x8xbf16>, vector<8x16xf32> -> vector<8x16xf32>
    "tpu.trace_stop"() : () -> ()
    %cst_33 = arith.constant dense<0xFF800000> : vector<8xf32>
    %68 = vector.multi_reduction <maximumf>, %67, %cst_33 [1] : vector<8x16xf32> to vector<8xf32>
    %69 = vector.shape_cast %68 : vector<8xf32> to vector<8x1xf32>
    %70 = vector.broadcast %69 : vector<8x1xf32> to vector<8x16xf32>
    %71 = arith.subf %67, %70 : vector<8x16xf32>
    %72 = math.exp %71 : vector<8x16xf32>
    %cst_34 = arith.constant dense<0.000000e+00> : vector<8xf32>
    %73 = vector.multi_reduction <add>, %72, %cst_34 [1] : vector<8x16xf32> to vector<8xf32>
    %74 = vector.shape_cast %73 : vector<8xf32> to vector<8x1xf32>
    %75 = tpu.reciprocal %74 {approx = true} : vector<8x1xf32> -> vector<8x1xf32>
    %76 = vector.broadcast %75 : vector<8x1xf32> to vector<8x16xf32>
    %77 = arith.mulf %72, %76 : vector<8x16xf32>
    %78 = arith.truncf %77 : vector<8x16xf32> to vector<8x16xbf16>
    %79 = vector.extract_strided_slice %21 {offsets = [0, 16], sizes = [16, 8], strides = [1, 1]} : vector<16x32xbf16> to vector<16x8xbf16>
    %cst_35 = arith.constant dense<0.000000e+00> : vector<8x8xf32>
    %80 = tpu.matmul %78, %79, %cst_35 {dimension_numbers = #tpu.dot_dimension_numbers<[1], [0], [0], [1], [0, 0, 1, 1], [], []>} : vector<8x16xbf16>, vector<16x8xbf16>, vector<8x8xf32> -> vector<8x8xf32>
    %81 = arith.truncf %80 : vector<8x8xf32> to vector<8x8xbf16>
    %c2 = arith.constant 2 : index
    %c0_36 = arith.constant 0 : index
    %c0_37 = arith.constant 0 : index
    %82 = vector.load %arg9[%c2, %c0_36, %c0_37] : memref<4x8x32xbf16, #tpu.memory_space<vmem>>, vector<1x8x32xbf16>
    %83 = vector.shape_cast %82 : vector<1x8x32xbf16> to vector<8x32xbf16>
    %cst_38 = arith.constant dense<0.000000e+00> : vector<8x32xf32>
    %84 = tpu.matmul %81, %83, %cst_38 {dimension_numbers = #tpu.dot_dimension_numbers<[1], [0], [0], [1], [0, 0, 1, 1], [], []>} : vector<8x8xbf16>, vector<8x32xbf16>, vector<8x32xf32> -> vector<8x32xf32>
    %85 = arith.addf %64, %84 : vector<8x32xf32>
    %86 = vector.extract_strided_slice %19 {offsets = [0, 24], sizes = [8, 8], strides = [1, 1]} : vector<8x32xbf16> to vector<8x8xbf16>
    %87 = vector.extract_strided_slice %20 {offsets = [0, 24], sizes = [16, 8], strides = [1, 1]} : vector<16x32xbf16> to vector<16x8xbf16>
    "tpu.trace_start"() <{level = 10 : i32, message = "td,nd->tn"}> : () -> ()
    %cst_39 = arith.constant dense<0.000000e+00> : vector<8x16xf32>
    %88 = tpu.matmul %86, %87, %cst_39 {dimension_numbers = #tpu.dot_dimension_numbers<[1], [1], [0], [0], [0, 0, 1, 0], [], []>} : vector<8x8xbf16>, vector<16x8xbf16>, vector<8x16xf32> -> vector<8x16xf32>
    "tpu.trace_stop"() : () -> ()
    %cst_40 = arith.constant dense<0xFF800000> : vector<8xf32>
    %89 = vector.multi_reduction <maximumf>, %88, %cst_40 [1] : vector<8x16xf32> to vector<8xf32>
    %90 = vector.shape_cast %89 : vector<8xf32> to vector<8x1xf32>
    %91 = vector.broadcast %90 : vector<8x1xf32> to vector<8x16xf32>
    %92 = arith.subf %88, %91 : vector<8x16xf32>
    %93 = math.exp %92 : vector<8x16xf32>
    %cst_41 = arith.constant dense<0.000000e+00> : vector<8xf32>
    %94 = vector.multi_reduction <add>, %93, %cst_41 [1] : vector<8x16xf32> to vector<8xf32>
    %95 = vector.shape_cast %94 : vector<8xf32> to vector<8x1xf32>
    %96 = tpu.reciprocal %95 {approx = true} : vector<8x1xf32> -> vector<8x1xf32>
    %97 = vector.broadcast %96 : vector<8x1xf32> to vector<8x16xf32>
    %98 = arith.mulf %93, %97 : vector<8x16xf32>
    %99 = arith.truncf %98 : vector<8x16xf32> to vector<8x16xbf16>
    %100 = vector.extract_strided_slice %21 {offsets = [0, 24], sizes = [16, 8], strides = [1, 1]} : vector<16x32xbf16> to vector<16x8xbf16>
    %cst_42 = arith.constant dense<0.000000e+00> : vector<8x8xf32>
    %101 = tpu.matmul %99, %100, %cst_42 {dimension_numbers = #tpu.dot_dimension_numbers<[1], [0], [0], [1], [0, 0, 1, 1], [], []>} : vector<8x16xbf16>, vector<16x8xbf16>, vector<8x8xf32> -> vector<8x8xf32>
    %102 = arith.truncf %101 : vector<8x8xf32> to vector<8x8xbf16>
    %c3 = arith.constant 3 : index
    %c0_43 = arith.constant 0 : index
    %c0_44 = arith.constant 0 : index
    %103 = vector.load %arg9[%c3, %c0_43, %c0_44] : memref<4x8x32xbf16, #tpu.memory_space<vmem>>, vector<1x8x32xbf16>
    %104 = vector.shape_cast %103 : vector<1x8x32xbf16> to vector<8x32xbf16>
    %cst_45 = arith.constant dense<0.000000e+00> : vector<8x32xf32>
    %105 = tpu.matmul %102, %104, %cst_45 {dimension_numbers = #tpu.dot_dimension_numbers<[1], [0], [0], [1], [0, 0, 1, 1], [], []>} : vector<8x8xbf16>, vector<8x32xbf16>, vector<8x32xf32> -> vector<8x32xf32>
    %106 = arith.addf %85, %105 : vector<8x32xf32>
    %c0_46 = arith.constant 0 : index
    %c0_47 = arith.constant 0 : index
    %107 = vector.load %arg10[%c0_46, %c0_47] : memref<1x32xf32, #tpu.memory_space<vmem>>, vector<1x32xf32>
    %108 = vector.broadcast %107 : vector<1x32xf32> to vector<8x32xf32>
    %109 = arith.addf %106, %108 : vector<8x32xf32>
    %110 = arith.addf %109, %9 : vector<8x32xf32>
    %cst_48 = arith.constant dense<0.000000e+00> : vector<8xf32>
    %111 = vector.multi_reduction <add>, %110, %cst_48 [1] : vector<8x32xf32> to vector<8xf32>
    %112 = vector.shape_cast %111 : vector<8xf32> to vector<8x1xf32>
    %cst_49 = arith.constant 3.200000e+01 : f32
    %113 = vector.broadcast %cst_49 : f32 to vector<8x1xf32>
    %114 = arith.divf %112, %113 : vector<8x1xf32>
    %115 = vector.broadcast %114 : vector<8x1xf32> to vector<8x32xf32>
    %116 = arith.subf %110, %115 : vector<8x32xf32>
    %117 = arith.mulf %116, %116 : vector<8x32xf32>
    %cst_50 = arith.constant dense<0.000000e+00> : vector<8xf32>
    %118 = vector.multi_reduction <add>, %117, %cst_50 [1] : vector<8x32xf32> to vector<8xf32>
    %119 = vector.shape_cast %118 : vector<8xf32> to vector<8x1xf32>
    %cst_51 = arith.constant 3.200000e+01 : f32
    %120 = vector.broadcast %cst_51 : f32 to vector<8x1xf32>
    %121 = arith.divf %119, %120 : vector<8x1xf32>
    %122 = vector.broadcast %114 : vector<8x1xf32> to vector<8x32xf32>
    %123 = arith.subf %110, %122 : vector<8x32xf32>
    %cst_52 = arith.constant 9.99999974E-6 : f32
    %124 = vector.broadcast %cst_52 : f32 to vector<8x1xf32>
    %125 = arith.addf %121, %124 : vector<8x1xf32>
    %126 = math.rsqrt %125 : vector<8x1xf32>
    %127 = vector.broadcast %126 : vector<8x1xf32> to vector<8x32xf32>
    %128 = arith.mulf %123, %127 : vector<8x32xf32>
    %129 = vector.broadcast %0 : vector<1x32xf32> to vector<8x32xf32>
    %130 = arith.mulf %128, %129 : vector<8x32xf32>
    %131 = vector.broadcast %1 : vector<1x32xf32> to vector<8x32xf32>
    %132 = arith.addf %130, %131 : vector<8x32xf32>
    %133 = arith.truncf %132 : vector<8x32xf32> to vector<8x32xbf16>
    %c0_53 = arith.constant 0 : index
    %c0_54 = arith.constant 0 : index
    %134 = vector.load %arg13[%c0_53, %c0_54] : memref<32x64xbf16, #tpu.memory_space<vmem>>, vector<32x64xbf16>
    %cst_55 = arith.constant dense<0.000000e+00> : vector<8x64xf32>
    %135 = tpu.matmul %133, %134, %cst_55 {dimension_numbers = #tpu.dot_dimension_numbers<[1], [0], [0], [1], [0, 0, 1, 1], [], []>} : vector<8x32xbf16>, vector<32x64xbf16>, vector<8x64xf32> -> vector<8x64xf32>
    %c0_56 = arith.constant 0 : index
    %c0_57 = arith.constant 0 : index
    %136 = vector.load %arg14[%c0_56, %c0_57] : memref<1x64xf32, #tpu.memory_space<vmem>>, vector<1x64xf32>
    %137 = vector.broadcast %136 : vector<1x64xf32> to vector<8x64xf32>
    %138 = arith.addf %135, %137 : vector<8x64xf32>
    %cst_58 = arith.constant 5.000000e-01 : f32
    %139 = vector.broadcast %cst_58 : f32 to vector<8x64xf32>
    %140 = arith.mulf %139, %138 : vector<8x64xf32>
    %cst_59 = arith.constant 0.707106769 : f32
    %141 = vector.broadcast %cst_59 : f32 to vector<8x64xf32>
    %142 = arith.mulf %138, %141 : vector<8x64xf32>
    %143 = math.erf %142 : vector<8x64xf32>
    %cst_60 = arith.constant 1.000000e+00 : f32
    %144 = vector.broadcast %cst_60 : f32 to vector<8x64xf32>
    %145 = arith.addf %144, %143 : vector<8x64xf32>
    %146 = arith.mulf %140, %145 : vector<8x64xf32>
    %147 = arith.truncf %146 : vector<8x64xf32> to vector<8x64xbf16>
    %c0_61 = arith.constant 0 : index
    %c0_62 = arith.constant 0 : index
    %148 = vector.load %arg15[%c0_61, %c0_62] : memref<64x32xbf16, #tpu.memory_space<vmem>>, vector<64x32xbf16>
    %cst_63 = arith.constant dense<0.000000e+00> : vector<8x32xf32>
    %149 = tpu.matmul %147, %148, %cst_63 {dimension_numbers = #tpu.dot_dimension_numbers<[1], [0], [0], [1], [0, 0, 1, 1], [], []>} : vector<8x64xbf16>, vector<64x32xbf16>, vector<8x32xf32> -> vector<8x32xf32>
    %c0_64 = arith.constant 0 : index
    %c0_65 = arith.constant 0 : index
    %150 = vector.load %arg16[%c0_64, %c0_65] : memref<1x32xf32, #tpu.memory_space<vmem>>, vector<1x32xf32>
    %151 = vector.broadcast %150 : vector<1x32xf32> to vector<8x32xf32>
    %152 = arith.addf %149, %151 : vector<8x32xf32>
    %153 = arith.addf %152, %110 : vector<8x32xf32>
    %c0_66 = arith.constant 0 : index
    %c0_67 = arith.constant 0 : index
    %c0_68 = arith.constant 0 : index
    %154 = vector.load %arg17[%c0_66, %c0_67, %c0_68] : memref<1x8x32xf32, #tpu.memory_space<vmem>>, vector<1x8x32xf32>
    %155 = vector.shape_cast %154 : vector<1x8x32xf32> to vector<8x32xf32>
    %156 = vector.shape_cast %153 : vector<8x32xf32> to vector<1x8x32xf32>
    tpu.vector_store %arg17[%c0_66, %c0_67, %c0_68], %156 {strides = array<i32>} : memref<1x8x32xf32, #tpu.memory_space<vmem>>, vector<1x8x32xf32>,
    return
  }
  func.func @transform_0(%arg0: i32, %arg1: i32) -> (i32, i32, i32) {
    %c0_i32 = arith.constant 0 : i32
    %c0_i32_0 = arith.constant 0 : i32
    %c0_i32_1 = arith.constant 0 : i32
    return %arg0, %c0_i32, %c0_i32_0 : i32, i32, i32
  }
  func.func @transform_1(%arg0: i32, %arg1: i32) -> (i32, i32) {
    %c0_i32 = arith.constant 0 : i32
    %c0_i32_0 = arith.constant 0 : i32
    %c0_i32_1 = arith.constant 0 : i32
    return %c0_i32, %c0_i32_0 : i32, i32
  }
  func.func @transform_2(%arg0: i32, %arg1: i32) -> (i32, i32) {
    %c0_i32 = arith.constant 0 : i32
    %c0_i32_0 = arith.constant 0 : i32
    %c0_i32_1 = arith.constant 0 : i32
    return %c0_i32, %c0_i32_0 : i32, i32
  }
  func.func @transform_3(%arg0: i32, %arg1: i32) -> (i32, i32) {
    %c0_i32 = arith.constant 0 : i32
    %c0_i32_0 = arith.constant 0 : i32
    %c0_i32_1 = arith.constant 0 : i32
    return %c0_i32, %c0_i32_0 : i32, i32
  }
  func.func @transform_4(%arg0: i32, %arg1: i32) -> (i32, i32) {
    %c0_i32 = arith.constant 0 : i32
    %c0_i32_0 = arith.constant 0 : i32
    %c0_i32_1 = arith.constant 0 : i32
    return %c0_i32, %c0_i32_0 : i32, i32
  }
  func.func @transform_5(%arg0: i32, %arg1: i32) -> (i32, i32) {
    %c0_i32 = arith.constant 0 : i32
    %c0_i32_0 = arith.constant 0 : i32
    %c0_i32_1 = arith.constant 0 : i32
    return %c0_i32, %c0_i32_0 : i32, i32
  }
  func.func @transform_6(%arg0: i32, %arg1: i32) -> (i32, i32) {
    %c0_i32 = arith.constant 0 : i32
    %c0_i32_0 = arith.constant 0 : i32
    %c0_i32_1 = arith.constant 0 : i32
    return %c0_i32, %c0_i32_0 : i32, i32
  }
  func.func @transform_7(%arg0: i32, %arg1: i32) -> (i32, i32, i32) {
    %c0_i32 = arith.constant 0 : i32
    %c0_i32_0 = arith.constant 0 : i32
    %c0_i32_1 = arith.constant 0 : i32
    %c0_i32_2 = arith.constant 0 : i32
    return %c0_i32, %c0_i32_0, %c0_i32_1 : i32, i32, i32
  }
  func.func @transform_8(%arg0: i32, %arg1: i32) -> (i32, i32) {
    %c0_i32 = arith.constant 0 : i32
    %c0_i32_0 = arith.constant 0 : i32
    %c0_i32_1 = arith.constant 0 : i32
    return %c0_i32, %c0_i32_0 : i32, i32
  }
  func.func @transform_9(%arg0: i32, %arg1: i32) -> (i32, i32) {
    %c0_i32 = arith.constant 0 : i32
    %c0_i32_0 = arith.constant 0 : i32
    %c0_i32_1 = arith.constant 0 : i32
    return %c0_i32, %c0_i32_0 : i32, i32
  }
  func.func @transform_10(%arg0: i32, %arg1: i32) -> (i32, i32) {
    %c0_i32 = arith.constant 0 : i32
    %c0_i32_0 = arith.constant 0 : i32
    %c0_i32_1 = arith.constant 0 : i32
    return %c0_i32, %c0_i32_0 : i32, i32
  }
  func.func @transform_11(%arg0: i32, %arg1: i32) -> (i32, i32) {
    %c0_i32 = arith.constant 0 : i32
    %c0_i32_0 = arith.constant 0 : i32
    %c0_i32_1 = arith.constant 0 : i32
    return %c0_i32, %c0_i32_0 : i32, i32
  }
  func.func @transform_12(%arg0: i32, %arg1: i32) -> (i32, i32) {
    %c0_i32 = arith.constant 0 : i32
    %c0_i32_0 = arith.constant 0 : i32
    %c0_i32_1 = arith.constant 0 : i32
    return %c0_i32, %c0_i32_0 : i32, i32
  }
  func.func @transform_13(%arg0: i32, %arg1: i32) -> (i32, i32) {
    %c0_i32 = arith.constant 0 : i32
    %c0_i32_0 = arith.constant 0 : i32
    %c0_i32_1 = arith.constant 0 : i32
    return %c0_i32, %c0_i32_0 : i32, i32
  }
  func.func @transform_14(%arg0: i32, %arg1: i32) -> (i32, i32) {
    %c0_i32 = arith.constant 0 : i32
    %c0_i32_0 = arith.constant 0 : i32
    %c0_i32_1 = arith.constant 0 : i32
    return %c0_i32, %c0_i32_0 : i32, i32
  }
  func.func @transform_15(%arg0: i32, %arg1: i32) -> (i32, i32, i32) {
    %c0_i32 = arith.constant 0 : i32
    %c0_i32_0 = arith.constant 0 : i32
    return %arg0, %arg1, %c0_i32 : i32, i32, i32
  }
}

</mosaic_0001>

<bundles_post_ra>
// kernel: tpu_custom_call.1
= control target key start
LH: loop header
LB: loop body
LE: loop exit
PB: predicated region body
PF: predicated region fallthrough
CT: control target
= control target key end

     0   :  { %s2930_s0 = inlined_call_operand.vmem [shape: f32[2,16,32], index: 0, kind: input, shape index: {}]   ;;  %s2931_s1 = inlined_call_operand.vmem [shape: bf16[32,32], index: 1, kind: input, shape index: {}]   ;;  %s2932_s2 = inlined_call_operand.hbm [shape: bf16[32,32], index: 2, kind: input, shape index: {}]   ;;  %s2933_s3 = inlined_call_operand.hbm [shape: bf16[32,32], index: 3, kind: input, shape index: {}]   ;;  %s2934_s4 = inlined_call_operand.vmem [shape: f32[1,32], index: 4, kind: input, shape index: {}]   ;;  %s2935_s5 = inlined_call_operand.vmem [shape: f32[1,32], index: 5, kind: input, shape index: {}]   ;;  %s2936_s6 = inlined_call_operand.vmem [shape: f32[1,32], index: 6, kind: input, shape index: {}]   ;;  %s2937_s7 = inlined_call_operand.hbm [shape: bf16[4,8,32], index: 7, kind: input, shape index: {}]   ;;  %s2938_s8 = inlined_call_operand.vmem [shape: f32[1,32], index: 8, kind: input, shape index: {}]   ;;  %s2939_s9 = inlined_call_operand.vmem [shape: f32[1,32], index: 9, kind: input, shape index: {}]   ;;  %s2940_s10 = inlined_call_operand.vmem [shape: f32[1,32], index: 10, kind: input, shape index: {}]   ;;  %s2941_s11 = inlined_call_operand.hbm [shape: bf16[32,64], index: 11, kind: input, shape index: {}]   ;;  %s2942_s12 = inlined_call_operand.vmem [shape: f32[1,64], index: 12, kind: input, shape index: {}]   ;;  %s2943_s13 = inlined_call_operand.vmem [shape: bf16[64,32], index: 13, kind: input, shape index: {}]   ;;  %s2944_s14 = inlined_call_operand.vmem [shape: f32[1,32], index: 14, kind: input, shape index: {}]   ;;  %s2945_s15 = inlined_call_operand.hbm [shape: f32[2,16,32], index: 15, kind: output, shape index: {}]  }
   0x1   :  { %2955 = sst [smem:[#allocation26_spill]] %s2942_s12 }
   0x2   :  { %2956 = sst [smem:[#allocation27_spill]] %s2944_s14 }
   0x3   :  { %2957 = sst [smem:[#allocation28_spill]] %s2945_s15 }
   0x4   :  { %20 = vsyncpa [#allocation6], 0 }
   0x5   :  { %21 = vsyncpa [#allocation9], 0 }
   0x6   :  { %22 = vsyncpa [#allocation12], 0 }
   0x7   :  { %23 = vsyncpa [#allocation7], 0 }
   0x8   :  { %25 = vsyncpa [#allocation7 + $0x1], 0  ;;  %s2521_s18 = smov 0   ;;  %s2523_s19 = smov 0  }
   0x9   :  { %s2525_s20 = smov 0   ;;  %s2527_s21 = smov 0  }
   0xa   :  { %s2529_s22 = smov 0   ;;  %s2531_s23 = smov 0  }
   0xb   :  { %s2533_s24 = smov 0   ;;  %s2535_s25 = smov 0  }
   0xc LB: > { %2958 = sst [smem:[#allocation18_spill]] %s2397_s18  ;;  %s1827_s26 = sadd.s32 4294967295, %s2425_s25   ;;  %s2425_s25 = sphi %s2535_s25, %s31_s25   ;;  %s2421_s24 = sphi %s2533_s24, %s2983_s24   ;;  %s2417_s23 = sphi %s2531_s23, %s2982_s23   ;;  %s2413_s22 = sphi %s2529_s22, %s2981_s22   ;;  %s2409_s21 = sphi %s2527_s21, %s2980_s21   ;;  %s2405_s20 = sphi %s2525_s20, %s2979_s20   ;;  %s2401_s19 = sphi %s2523_s19, %s2985_s19   ;;  %s2397_s18 = sphi %s2521_s18, %s2984_s18  }
   0xd   : > { %2959 = sst [smem:[#allocation19_spill]] %s2405_s20  ;;  %s1828_s27 = sadd.s32 4294967294, %s2425_s25  }
   0xe   : > { %2960 = sst [smem:[#allocation20_spill]] %s2417_s23  ;;  %s40_s28 = sadd.s32 1, %s2417_s23 }
   0xf   : > { %2961 = sst [smem:[#allocation21_spill]] %s2421_s24  ;;  %s43_s29 = sadd.s32 1, %s2421_s24 }
  0x10   : > { %p41_p0 = scmp.ge.s32.totalorder %s40_s28, 2  ;;  %s372_s30 = sadd.s32 1, %s2405_s20 }
  0x11   : > { %p382_p1 = scmp.ne.s32.totalorder %s2405_s20, %s2401_s19  ;;  %p383_p2 = scmp.eq.s32.totalorder %s1827_s26, 3 }
  0x12   : > { %s2987_s28 = smov (%p41_p0, %s40_s28), 0  ;;  %s2989_s29 = smov (!%p41_p0, %s43_s29), %s2421_s24 }
  0x13   : > { %2962 = sst [smem:[#allocation22_spill]] %s2987_s28  ;;  %s368_s16 = ssub.s32 %s2417_s23, %s2987_s28 }
  0x14   : > { %p2573_p3 = por %p383_p2, %p382_p1  ;;  %p45_p4 = scmp.ge.s32.totalorder %s2989_s29, 2 }
  0x15   : > { %p388_p5 = scmp.ne.s32.totalorder %s2401_s19, %s2397_s18  ;;  %p389_p6 = scmp.eq.s32.totalorder %s1828_s27, 3 }
  0x16   : > { %p1829_p7 = scmp.ge.s32.totalorder %s2425_s25, 1  ;;  %s2991_s29 = smov (%p45_p4, %s2989_s29), 0 }
  0x17   : > { %2964 = sst [smem:[#allocation23_spill]] %s2991_s29  ;;  %p2582_p8 = por %p389_p6, %p388_p5 }
  0x18   : > { %p396_p9 = scmp.lt.s32.totalorder %s2425_s25, 5  ;;  %s367_s14 = ssub.s32 %s2421_s24, %s2991_s29 }
  0x19   : > { %s2965_s15 = scalar_select %p2582_p8, 1, 0 }
  0x1a   : > { %s369_s12 = sor.u32 %s368_s16, %s367_s14  ;;  %p2589_p10 = pnand %p1829_p7, %p396_p9 }
  0x1b   : > { %2966 = sst [smem:[#allocation24_spill]] %s2965_s15  ;;  %p370_p11 = scmp.eq.s32.totalorder %s369_s12, 0 }
  0x1c   : > { %p2593_p12 = scmp.eq.s32.totalorder %s1827_s26, 0  ;;  %p2076_p13 = pneg %p2589_p10 }
  0x1d   : > { %s2600_s27 = scalar_select %p370_p11, %s2405_s20, %s372_s30  }
  0x1e   : > { %p2604_p0 = pnand %p2593_p12, %p2076_p13  ;;  %s2427_s14 = smov [#allocation8]  }
  0x1f   : > { %2969 = sst [smem:[#allocation25_spill]] %s2600_s27  ;;  %s424_s16 = sshll.u32 %s2427_s14, 4  ;;  %s425_s16 = int_to_ptr.vmem [resolvable:$true] %s424_s16 }
  0x20   : > { %p2219_p1 = pneg %p2604_p0  ;;  %s2228_s12 = scalar_lea.vmem %s425_s16, 256 }
  0x21   : > { %p2229_p2 = scmp.ne.s32.totalorder %s425_s16, %s2228_s12  ;;  %p2236_p6 = scmp.lt.s32.totalorder %s425_s16, %s425_s16 }
  0x22   : > { %p2237_p7 = scmp.lt.s32.totalorder %s2228_s12, %s2228_s12 }
  0x23   : > { %p2231_p4 = pnand %p2229_p2, %p2219_p1 }
  0x24   : > { %p2238_p9 = por %p2237_p7, %p2236_p6 }
  0x25   : > { %p2232_p5 = pneg %p2231_p4 }
  0x27   : > { %p2239_p11 = pnand %p2238_p9, %p2232_p5 }
  0x29   : > { %2242 = shalt.err (!%p2239_p11)
}
  0x2a   : > { %s2428_s26 = smov 64   ;;  %s2429_s30 = smov 4  }
  0x2b   : > { %2082 = dma.hbm_to_vmem [thread:$0]  (!%p2604_p0), %s2933_s3, 256, %s425_s16, [#allocation9], %s2428_s26, %s2428_s26, %s2429_s30  }
  0x2c   : > { %s2430_s24 = smov [#allocation5]   ;;  %s2431_s20 = smov [#allocation10]  }
  0x2d   : > { %s411_s27 = sshll.u32 %s2430_s24, 4  ;;  %s446_s18 = sshll.u32 %s2431_s20, 4  ;;  %s412_s27 = int_to_ptr.vmem [resolvable:$true] %s411_s27  ;;  %s447_s18 = int_to_ptr.vmem [resolvable:$true] %s446_s18 }
  0x2e   : > { %s2254_s12 = scalar_lea.vmem %s412_s27, 256  ;;  %p2262_p5 = scmp.lt.s32.totalorder %s412_s27, %s412_s27 }
  0x2f   : > { %p2255_p13 = scmp.ne.s32.totalorder %s412_s27, %s2254_s12  ;;  %p2263_p6 = scmp.lt.s32.totalorder %s2254_s12, %s2254_s12 }
  0x31   : > { %p2257_p2 = pnand %p2255_p13, %p2219_p1  ;;  %p2264_p7 = por %p2263_p6, %p2262_p5 }
  0x33   : > { %p2258_p4 = pneg %p2257_p2 }
  0x35   : > { %p2265_p9 = pnand %p2264_p7, %p2258_p4 }
  0x37   : > { %2268 = shalt.err (!%p2265_p9)
}
  0x38   : > { %2079 = dma.hbm_to_vmem [thread:$0]  (!%p2604_p0), %s2932_s2, 256, %s412_s27, [#allocation6], %s2428_s26, %s2428_s26, %s2429_s30  }
  0x39   : > { %s2280_s29 = scalar_lea.vmem %s447_s18, 256  ;;  %p2288_p8 = scmp.lt.s32.totalorder %s447_s18, %s447_s18 }
  0x3a   : > { %p2281_p11 = scmp.ne.s32.totalorder %s447_s18, %s2280_s29  ;;  %p2289_p5 = scmp.lt.s32.totalorder %s2280_s29, %s2280_s29 }
  0x3c   : > { %p2283_p13 = pnand %p2281_p11, %p2219_p1  ;;  %p2290_p4 = por %p2289_p5, %p2288_p8 }
  0x3e   : > { %p2284_p2 = pneg %p2283_p13 }
  0x40   : > { %p2291_p6 = pnand %p2290_p4, %p2284_p2 }
  0x42   : > { %2294 = shalt.err (!%p2291_p6)
}
  0x43   : > { %2085 = dma.hbm_to_vmem [thread:$0]  (!%p2604_p0), %s2937_s7, 256, %s447_s18, [#allocation9], %s2428_s26, %s2428_s26, %s2429_s30  }
  0x44   : > { %s2432_s27 = smov [#allocation11]  }
  0x45   : > { %s468_s12 = sshll.u32 %s2432_s27, 4  ;;  %s469_s12 = int_to_ptr.vmem [resolvable:$true] %s468_s12 }
  0x46   : > { %s2306_s24 = scalar_lea.vmem %s469_s12, 256  ;;  %p2314_p11 = scmp.lt.s32.totalorder %s469_s12, %s469_s12 }
  0x47   : > { %p2307_p7 = scmp.ne.s32.totalorder %s469_s12, %s2306_s24  ;;  %p2315_p13 = scmp.lt.s32.totalorder %s2306_s24, %s2306_s24 }
  0x49   : > { %p2309_p8 = pnand %p2307_p7, %p2219_p1  ;;  %p2316_p2 = por %p2315_p13, %p2314_p11 }
  0x4b   : > { %p2310_p9 = pneg %p2309_p8 }
  0x4d   : > { %p2317_p5 = pnand %p2316_p2, %p2310_p9 }
  0x4f   : > { %2320 = shalt.err (!%p2317_p5)
}
  0x50   : > { %2088 = dma.hbm_to_vmem [thread:$0]  (!%p2604_p0), %s2941_s11, 256, %s469_s12, [#allocation12], %s2428_s26, %s2428_s26, %s2429_s30  }
  0x51   : > { %501 = sbr.rel (%p2589_p10) target bundleno = 3803 (0xedb), region = 80 }
  0x56   : > { %2380 = dma.done.wait (%p2593_p12), [#allocation6], 256  }
  0x57   : > { %2382 = vsyncadd (%p2593_p12), [#allocation6], 4294967040 }
  0x58   : > { %2384 = dma.done.wait (%p2593_p12), [#allocation9], 512  }
  0x59   : > { %2386 = vsyncadd (%p2593_p12), [#allocation9], 4294966784 }
  0x5a   : > { %2388 = dma.done.wait (%p2593_p12), [#allocation12], 256  }
  0x5b   : > { %2390 = vsyncadd (%p2593_p12), [#allocation12], 4294967040  ;;  %s2954_s15 = sand.u32 1, %s2401_s19   ;;  %p561_p10 = scmp.lt.s32.totalorder %s2413_s22, 1  ;;  %v2683_v0 = vld [vmem:[%s2939_s9] sm:$0x1] }
  0x5c   : > { %s2672_s28 = sshll.u32 %s2954_s15, 3  ;;  %v2688_v1 = vld [vmem:[%s2940_s10] sm:$0x1]  ;;  %p1843_p12 = scmp.ne.s32.totalorder %s2409_s21, 0 }
  0x5d   : > { %s562_s26 = scalar_select %p561_p10, %s2413_s22, 1 }
  0x5e   : > { %s560_s18 = scalar_lea.vmem [#allocation13], %s2672_s28  ;;  %572 = sbr.rel (%p1843_p12) target bundleno = 616 (0x268), region = 100 }
  0x5f   : > { %s1894_s30 = sshll.u32 %s562_s26, 4 }
  0x60   : > { %s2678_s14 = scalar_lea.vmem %s2930_s0, %s1894_s30 }
  0x63   : > { %v573_v2 = vld [vmem:[%s2678_s14] sm:$0xff]  ;;  %vm575_vm0 = vcmask 261120   ;;  %v574_v3 = vld [vmem:[%s2678_s14 + $0x8] sm:$0xff]  ;;  %v2180_v17 = vld [vmem:[#allocation8 + $0x8] sm:$0xff]   ;;  %v2433_v18 = vmov 0.0   ;;  %vm2434_vm1 = vmmov 0   ;;  %v604_v26 = vlaneseq }
  0x64   : > { %v576_v4 = vsel %vm575_vm0, %v573_v2, 0.0  ;;  %v579_v5 = vsel %vm575_vm0, %v574_v3, 0.0  ;;  %v2179_v16 = vld [vmem:[#allocation5 + $0x8] sm:$0xff]   ;;  %1942 = vmatprep.subr.bf16.mxu0 %v2433_v18  ;;  %1950 = vmatprep.subr.bf16.mxu1 %v2433_v18  ;;  %v2181_v19 = vld [vmem:[#allocation5] sm:$0xff]   ;;  %v2182_v20 = vld [vmem:[#allocation8] sm:$0xff]   ;;  %vm627_vm2 = vcmask 257024  }
  0x65   : > { %577 = vadd.xlane.f32.xlu0 %v576_v4  ;;  %1943 = vmatpush3.bf16.msra.mxu0 %v2179_v16  ;;  %v605_v28 = vshrl.u32 %v604_v26, 7  ;;  %v1846_v43 = vld [vmem:[%s2935_s5] ss:$0 sm:$0xff] }
  0x66   : > { %1951 = vmatpush3.bf16.msra.mxu1 %v2180_v17  ;;  %1944 = vmatprep.subr.bf16.mxu0 %v2433_v18  ;;  %v1850_v44 = vld [vmem:[%s2936_s6] ss:$0 sm:$0xff] }
  0x67   : > { %1952 = vmatprep.subr.bf16.mxu1 %v2433_v18  ;;  %1946 = vmatprep.mubr.msk.bf16.mxu0 %vm2434_vm1, %v2433_v18  ;;  %v606_v29 = vsub.s32 0, %v605_v28 }
  0x68   : > { %1954 = vmatprep.mubr.msk.bf16.mxu1 %vm2434_vm1, %v2433_v18 }
  0x69   : > { %580 = vadd.xlane.f32.xlu0 %v579_v5  ;;  %1945 = vmatpush3.bf16.msra.mxu0 %v2181_v19  ;;  %v607_v30 = vrot.slane %v2683_v0, %v606_v29  ;;  %v615_v33 = vrot.slane %v2688_v1, %v606_v29 }
  0x6a   : > { %1953 = vmatpush3.bf16.msra.mxu1 %v2182_v20 }
  0xee   : > { %v578_v6 = vpop.xlane.xlu0 %577 }
  0xef   : > { %v583_v7 = vmul.f32 0.03125, %v578_v6 }
  0xf1   : > { %v585_v8 = vsub.f32 %v573_v2, %v583_v7 }
  0xf2   : > { %v581_v9 = vpop.xlane.xlu0 %580 }
  0xf3   : > { %v584_v10 = vmul.f32 0.03125, %v581_v9  ;;  %v587_v11 = vmul.f32 %v585_v8, %v585_v8 }
  0xf5   : > { %v586_v12 = vsub.f32 %v574_v3, %v584_v10  ;;  %v589_v13 = vsel %vm575_vm0, %v587_v11, 0.0 }
  0xf6   : > { %590 = vadd.xlane.f32.xlu1 %v589_v13 }
  0xf7   : > { %v588_v14 = vmul.f32 %v586_v12, %v586_v12 }
  0xf9   : > { %v592_v15 = vsel %vm575_vm0, %v588_v14, 0.0 }
  0xfa   : > { %593 = vadd.xlane.f32.xlu1 %v592_v15 }
 0x17f   : > { %v591_v21 = vpop.xlane.xlu1 %590 }
 0x180   : > { %v595_v22 = vmul.f32 0.03125, %v591_v21 }
 0x182   : > { %v597_v23 = vadd.f32 1e-05, %v595_v22 }
 0x183   : > { %v594_v24 = vpop.xlane.xlu1 %593 }
 0x184   : > { %2183 = vrsqrt.f32 %v597_v23  ;;  %v596_v25 = vmul.f32 0.03125, %v594_v24 }
 0x186   : > { %v598_v27 = vadd.f32 1e-05, %v596_v25 }
 0x188   : > { %2185 = vrsqrt.f32 %v598_v27 }
 0x191   : > { %v2184_v31 = vpop.eup %2183 }
 0x192   : > { %v601_v32 = vmul.f32 %v2184_v31, %v585_v8 }
 0x194   : > { %v609_v34 = vmul.f32 %v607_v30, %v601_v32 }
 0x195   : > { %v2186_v35 = vpop.eup %2185 }
 0x196   : > { %v602_v36 = vmul.f32 %v2186_v35, %v586_v12  ;;  %v617_v37 = vadd.f32 %v615_v33, %v609_v34 }
 0x198   : > { %v610_v38 = vmul.f32 %v607_v30, %v602_v36  ;;  %v1895_v39 = vpack.c.bf16 %v617_v37, %v617_v37 }
 0x19a   : > { %v618_v40 = vadd.f32 %v615_v33, %v610_v38  ;;  %628 = vst.msk [vmem:[#allocation2] sm:$0xf] %vm627_vm2, %v1895_v39 }
 0x19c   : > { %v619_v41 = vpack.c.bf16 %v618_v40, %v617_v37  ;;  %v1896_v42 = vpack.c.bf16 %v618_v40, %v618_v40 }
 0x19e   : > { %1947 = vmatmul.mubr.msk.bf16.vlgmr.msra.gmra.mxu0 %vm575_vm0, %v619_v41  ;;  %1955 = vmatmul.mubr.msk.bf16.vlgmr.msra.gmra.mxu1 %vm575_vm0, %v619_v41  ;;  %629 = vst.msk [vmem:[#allocation2 + $0x4] sm:$0xf] %vm627_vm2, %v1896_v42 }
 0x25e   : > { %v690_v45 = vpop.f32.mrf.mxu0  ;;  %v754_v46 = vpop.f32.mrf.mxu1 }
 0x25f   : > { %v691_v47 = vadd.f32 %v1846_v43, %v690_v45  ;;  %v755_v48 = vadd.f32 %v1850_v44, %v754_v46 }
 0x260   : > { %v1948_v49 = vpop.f32.mrf.mxu0  ;;  %v1956_v50 = vpop.f32.mrf.mxu1 }
 0x261   : > { %v1897_v51 = vpack.c.bf16 %v691_v47, %v691_v47  ;;  %v1899_v52 = vpack.c.bf16 %v755_v48, %v755_v48 }
 0x262   : > { %v693_v53 = vpop.f32.mrf.mxu0  ;;  %v757_v54 = vpop.f32.mrf.mxu1 }
 0x263   : > { %769 = vst.msk [vmem:[#allocation3] sm:$0xf] %vm627_vm2, %v1897_v51  ;;  %779 = vst.msk [vmem:[#allocation4] sm:$0xf] %vm627_vm2, %v1899_v52  ;;  %v694_v55 = vadd.f32 %v1846_v43, %v693_v53  ;;  %v758_v56 = vadd.f32 %v1850_v44, %v757_v54 }
 0x264   : > { %v1949_v57 = vpop.f32.mrf.mxu0  ;;  %v1957_v58 = vpop.f32.mrf.mxu1 }
 0x265   : > { %v1898_v59 = vpack.c.bf16 %v694_v55, %v694_v55  ;;  %v1900_v60 = vpack.c.bf16 %v758_v56, %v758_v56 }
 0x267   : > { %770 = vst.msk [vmem:[#allocation3 + $0x4] sm:$0xf] %vm627_vm2, %v1898_v59  ;;  %780 = vst.msk [vmem:[#allocation4 + $0x4] sm:$0xf] %vm627_vm2, %v1900_v60 }
 0x268 PF: > { %v2187_v61 = vld [vmem:[%s2931_s1 + $0x8] sm:$0xff]   ;;  %v2435_v62 = vmov 0.0   ;;  %v2188_v63 = vld [vmem:[%s2931_s1] sm:$0xff]   ;;  %vm2436_vm3 = vmmov 0   ;;  %s1858_s24 = sshll.u32 %s2409_s21, 3  ;;  %vm812_vm4 = vcmask 261120  }
 0x269   : > { %1958 = vmatprep.subr.bf16.mxu1 %v2435_v62  ;;  %1972 = vmatprep.subr.bf16.mxu0 %v2435_v62  ;;  %s784_s20 = sshra.s32 %s1858_s24, 3  ;;  %s2437_s30 = smov 120   ;;  %vm867_vm5 = vcmask 64512   ;;  %v1860_v5 = vld [vmem:[%s2934_s4] ss:$0 sm:$0xff]  ;;  %vm914_vm6 = vcmask 130048  }
 0x26a   : > { %1959 = vmatpush3.bf16.msra.mxu1 %v2187_v61  ;;  %1962 = vmatprep.mubr.msk.bf16.mxu1 %vm2436_vm3, %v2435_v62  ;;  %s1859_s26 = sshll.u32 %s784_s20, 2  ;;  %s2438_s23 = smov 112   ;;  %vm1093_vm7 = vcmask 1043456   ;;  %v1089_v41 = vld [vmem:[#allocation10 + $0x4] sm:$0xf]  ;;  %vm1648_vm8 = vcmask 523264  }
 0x26b   : > { %1960 = vmatprep.subr.bf16.mxu1 %v2435_v62  ;;  %1974 = vmatprep.mubr.msk.bf16.mxu0 %vm2436_vm3, %v2435_v62  ;;  %s787_s29 = scalar_lea.vmem [#allocation2], %s1859_s26  ;;  %v1095_v42 = vsel %vm1093_vm7, %v1089_v41, 0  ;;  %v977_v46 = vld [vmem:[#allocation10] sm:$0xf]  ;;  %s2439_s12 = smov 104  }
 0x26c   : > { %v788_v3 = vld [vmem:[%s787_s29] sm:$0xf]  ;;  %v1141_v49 = vsel %vm1093_vm7, %v977_v46, 0  ;;  %s782_s20 = scalar_lea.vmem %s2678_s14, %s1858_s24  ;;  %s2971_s14 = sld [smem:[#allocation26_spill]] }
 0x26d   : > { %s1890_s24 = sshll.u32 %s2413_s22, 1 }
 0x26e   : > { %v2728_v2 = vld [vmem:[#allocation3] sm:$0xff]   ;;  %1961 = vmatpush3.bf16.msra.mxu1 %v2188_v63  ;;  %v2759_v29 = vld [vmem:[#allocation4] sm:$0xff]   ;;  %s1706_s29 = sadd.s32 %s2409_s21, %s1890_s24  ;;  %s2974_s21 = sand.u32 1, %s2401_s19  }
 0x26f   : > { %981 = vrot.lane.b32.xlu0 %v2728_v2, %s2437_s30  ;;  %1966 = vmatprep.subr.bf16.mxu1 %v2435_v62  ;;  %v872_v4 = vsel %vm867_vm5, %v2728_v2, 0  ;;  %s1695_s22 = scalar_lea.sflag [#allocation7], %s2974_s21 }
 0x270   : > { %1973 = vmatpush3.bf16.msra.mxu0 %v2759_v29 }
 0x271   : > { %1963 = vmatmul.mubr.msk.bf16.vlgmr.msra.gmra.mxu1 %vm812_vm4, %v788_v3  ;;  %1984 = vmatprep.subr.bf16.mxu0 %v2435_v62 }
 0x272   : > { %1968 = vmatprep.mubr.msk.bf16.mxu1 %vm2436_vm3, %v2435_v62  ;;  %1967 = vmatpush3.bf16.xpose.msra.mxu1 %v872_v4 }
 0x273   : > { %1978 = vmatprep.subr.bf16.mxu1 %v2435_v62 }
 0x2e1   : > { %v982_v9 = vpop.permute.xlu0 %981 }
 0x2e2   : > { %v987_v13 = vsel %vm867_vm5, %v982_v9, 0 }
 0x331   : > { %v850_v6 = vpop.f32.mrf.mxu1 }
 0x332   : > { %v851_v7 = vadd.f32 %v1860_v5, %v850_v6 }
 0x333   : > { %v1964_v8 = vpop.f32.mrf.mxu1 }
 0x334   : > { %v856_v10 = vmul.f32 0.35355338, %v851_v7 }
 0x335   : > { %v853_v11 = vpop.f32.mrf.mxu1 }
 0x336   : > { %v2744_v12 = vpack.c.bf16 %v856_v10, %v856_v10 }
 0x337   : > { %v1965_v14 = vpop.f32.mrf.mxu1 }
 0x338   : > { %979 = vrot.lane.b32.xlu0 %v2744_v12, %s2437_s30  ;;  %1969 = vmatmul.mubr.msk.bf16.vlgmr.msra.gmra.mxu1 %vm867_vm5, %v2744_v12 }
 0x339   : > { %1979 = vmatpush3.bf16.xpose.msra.mxu1 %v987_v13  ;;  %1980 = vmatprep.mubr.msk.bf16.mxu1 %vm2436_vm3, %v2435_v62 }
 0x33a   : > { %1990 = vmatprep.subr.bf16.mxu1 %v2435_v62 }
 0x3aa   : > { %v980_v15 = vpop.permute.xlu0 %979 }
 0x3ab   : > { %1981 = vmatmul.mubr.msk.bf16.vlgmr.msra.gmra.mxu1 %vm867_vm5, %v980_v15 }
 0x3ac   : > { %1992 = vmatprep.mubr.msk.bf16.mxu1 %vm2436_vm3, %v2435_v62  ;;  %1991 = vmatpush3.bf16.msra.mxu1 %v1095_v42 }
 0x3ad   : > { %2002 = vmatprep.subr.bf16.mxu1 %v2435_v62 }
 0x3f8   : > { %v908_v16 = vpop.f32.mrf.mxu1 }
 0x3f9   : > { %v915_v17 = vsel %vm914_vm6, %v908_v16, -inf }
 0x3fa   : > { %916 = vmax.xlane.f32.xlu1 %v915_v17  ;;  %v1970_v18 = vpop.f32.mrf.mxu1 }
 0x3fc   : > { %v911_v19 = vpop.f32.mrf.mxu1 }
 0x3fe   : > { %v1971_v20 = vpop.f32.mrf.mxu1 }
 0x46b   : > { %v1023_v21 = vpop.f32.mrf.mxu1 }
 0x46c   : > { %v1029_v22 = vsel %vm914_vm6, %v1023_v21, -inf }
 0x46d   : > { %1030 = vmax.xlane.f32.xlu1 %v1029_v22  ;;  %v1982_v23 = vpop.f32.mrf.mxu1 }
 0x46f   : > { %v1026_v24 = vpop.f32.mrf.mxu1 }
 0x471   : > { %v1983_v25 = vpop.f32.mrf.mxu1 }
 0x483   : > { %v917_v26 = vpop.xlane.xlu1 %916 }
 0x484   : > { %v918_v27 = vsub.f32 %v908_v16, %v917_v26 }
 0x486   : > { %v919_v28 = vmul.f32 1.442695, %v918_v27 }
 0x488   : > { %2197 = vpow2.f32 %v919_v28 }
 0x495   : > { %v2198_v30 = vpop.eup %2197 }
 0x496   : > { %v921_v31 = vsel %vm914_vm6, %v2198_v30, 0.0 }
 0x497   : > { %922 = vadd.xlane.f32.xlu0 %v921_v31 }
 0x4ad   : > { %1245 = vrot.lane.b32.xlu0 %v2759_v29, %s2438_s23 }
 0x4f6   : > { %v1031_v32 = vpop.xlane.xlu1 %1030 }
 0x4f7   : > { %v1032_v33 = vsub.f32 %v1023_v21, %v1031_v32 }
 0x4f9   : > { %v1033_v34 = vmul.f32 1.442695, %v1032_v33 }
 0x4fb   : > { %2199 = vpow2.f32 %v1033_v34 }
 0x508   : > { %v2200_v35 = vpop.eup %2199 }
 0x509   : > { %v1035_v36 = vsel %vm914_vm6, %v2200_v35, 0.0 }
 0x50a   : > { %1036 = vadd.xlane.f32.xlu1 %v1035_v36 }
 0x51b   : > { %1041 = vrot.lane.b32.xlu1 %v2759_v29, %s2437_s30 }
 0x51f   : > { %1185 = vrot.lane.b32.xlu1 %v2728_v2, %s2438_s23 }
 0x520   : > { %v923_v37 = vpop.xlane.xlu0 %922 }
 0x521   : > { %2201 = vrcp.f32 %v923_v37 }
 0x523   : > { %1183 = vrot.lane.b32.xlu1 %v2744_v12, %s2438_s23  ;;  %s2972_s23 = sld [smem:[#allocation27_spill]] }
 0x524   : > { %v1246_v17 = vpop.permute.xlu0 %1245 }
 0x52e   : > { %v2202_v38 = vpop.eup %2201 }
 0x52f   : > { %v925_v39 = vmul.f32 %v2202_v38, %v2198_v30 }
 0x531   : > { %v926_v40 = vpack.c.bf16 %v925_v39, %v925_v39 }
 0x533   : > { %1975 = vmatmul.mubr.msk.bf16.vlgmr.msra.gmra.mxu0 %vm914_vm6, %v926_v40 }
 0x534   : > { %1986 = vmatprep.mubr.msk.bf16.mxu0 %vm2436_vm3, %v2435_v62 }
 0x593   : > { %v1037_v43 = vpop.xlane.xlu1 %1036 }
 0x594   : > { %2203 = vrcp.f32 %v1037_v43 }
 0x597   : > { %v1042_v44 = vpop.permute.xlu1 %1041 }
 0x598   : > { %1985 = vmatpush3.bf16.msra.mxu0 %v1042_v44 }
 0x599   : > { %1996 = vmatprep.subr.bf16.mxu0 %v2435_v62 }
 0x59b   : > { %v1186_v55 = vpop.permute.xlu1 %1185 }
 0x59c   : > { %v1191_v57 = vsel %vm867_vm5, %v1186_v55, 0 }
 0x59f   : > { %v1184_v63 = vpop.permute.xlu1 %1183 }
 0x5a1   : > { %v2204_v45 = vpop.eup %2203 }
 0x5a2   : > { %v1039_v47 = vmul.f32 %v2204_v45, %v2200_v35 }
 0x5a4   : > { %v1040_v48 = vpack.c.bf16 %v1039_v47, %v1039_v47 }
 0x5a6   : > { %1987 = vmatmul.mubr.msk.bf16.vlgmr.msra.gmra.mxu0 %vm914_vm6, %v1040_v48  ;;  %v1451_v48 = vld [vmem:[#allocation10 + $0xc] sm:$0xf] }
 0x5a7   : > { %1997 = vmatpush3.bf16.msra.mxu0 %v1141_v49  ;;  %1998 = vmatprep.mubr.msk.bf16.mxu0 %vm2436_vm3, %v2435_v62 }
 0x5a8   : > { %2008 = vmatprep.subr.bf16.mxu0 %v2435_v62 }
 0x5f3   : > { %v970_v50 = vpop.f32.mrf.mxu0 }
 0x5f4   : > { %v976_v51 = vpack.c.bf16 %v970_v50, %v970_v50  ;;  %v1456_v50 = vsel %vm1093_vm7, %v1451_v48, 0 }
 0x5f5   : > { %v1976_v52 = vpop.f32.mrf.mxu0 }
 0x5f6   : > { %1999 = vmatmul.mubr.msk.bf16.vlgmr.msra.gmra.mxu0 %vm867_vm5, %v976_v51 }
 0x5f7   : > { %v973_v53 = vpop.f32.mrf.mxu0  ;;  %2010 = vmatprep.mubr.msk.bf16.mxu0 %vm2436_vm3, %v2435_v62  ;;  %2009 = vmatpush3.bf16.msra.mxu0 %v1246_v17 }
 0x5f8   : > { %2020 = vmatprep.subr.bf16.mxu0 %v2435_v62 }
 0x5f9   : > { %v1977_v54 = vpop.f32.mrf.mxu0 }
 0x666   : > { %v1081_v56 = vpop.f32.mrf.mxu0 }
 0x667   : > { %v1087_v58 = vpack.c.bf16 %v1081_v56, %v1081_v56 }
 0x668   : > { %v1988_v59 = vpop.f32.mrf.mxu0 }
 0x669   : > { %1993 = vmatmul.mubr.msk.bf16.vlgmr.msra.gmra.mxu1 %vm867_vm5, %v1087_v58 }
 0x66a   : > { %2003 = vmatpush3.bf16.xpose.msra.mxu1 %v1191_v57  ;;  %v1084_v60 = vpop.f32.mrf.mxu0  ;;  %2004 = vmatprep.mubr.msk.bf16.mxu1 %vm2436_vm3, %v2435_v62 }
 0x66b   : > { %2014 = vmatprep.subr.bf16.mxu1 %v2435_v62 }
 0x66c   : > { %v1989_v61 = vpop.f32.mrf.mxu0 }
 0x671   : > { %2005 = vmatmul.mubr.msk.bf16.vlgmr.msra.gmra.mxu1 %vm867_vm5, %v1184_v63 }
 0x672   : > { %2016 = vmatprep.mubr.msk.bf16.mxu1 %vm2436_vm3, %v2435_v62 }
 0x6b6   : > { %v2792_v3 = vpop.f32.mrf.mxu0 }
 0x6b8   : > { %v2000_v4 = vpop.f32.mrf.mxu0 }
 0x6b9   : > { %v1878_v4 = vld [vmem:[%s2938_s8] ss:$0 sm:$0xff] }
 0x6ba   : > { %v1180_v5 = vpop.f32.mrf.mxu0 }
 0x6bc   : > { %v2001_v6 = vpop.f32.mrf.mxu0 }
 0x6bd   : > { %v783_v6 = vld [vmem:[%s782_s20] sm:$0xff]  ;;  %s1710_s20 = sshll.u32 %s560_s18, 4  ;;  %s2875_s20 = int_to_ptr.vmem [resolvable:$true] %s1710_s20 }
 0x6be   : > { %s2321_s24 = scalar_lea.vmem %s2875_s20, 128 }
 0x6bf   : > { %p2322_p0 = scmp.ne.s32.totalorder %s2875_s20, %s2321_s24 }
 0x6c1   : > { %p2323_p1 = pnand %p2322_p0, %p2573_p3 }
 0x6c3   : > { %p2324_p4 = pneg %p2323_p1 }
 0x729   : > { %v1131_v7 = vpop.f32.mrf.mxu1 }
 0x72a   : > { %v1178_v46 = vadd.f32 %v2792_v3, %v1131_v7 }
 0x72b   : > { %v1994_v8 = vpop.f32.mrf.mxu1 }
 0x72d   : > { %v1134_v9 = vpop.f32.mrf.mxu1 }
 0x72f   : > { %v1995_v10 = vpop.f32.mrf.mxu1 }
 0x731   : > { %v1227_v11 = vpop.f32.mrf.mxu1 }
 0x732   : > { %v1233_v13 = vsel %vm914_vm6, %v1227_v11, -inf }
 0x733   : > { %1234 = vmax.xlane.f32.xlu1 %v1233_v13  ;;  %v2006_v14 = vpop.f32.mrf.mxu1 }
 0x735   : > { %v1230_v15 = vpop.f32.mrf.mxu1 }
 0x737   : > { %v2007_v16 = vpop.f32.mrf.mxu1 }
 0x7bc   : > { %v1235_v18 = vpop.xlane.xlu1 %1234 }
 0x7bd   : > { %v1236_v19 = vsub.f32 %v1227_v11, %v1235_v18 }
 0x7bf   : > { %v1237_v20 = vmul.f32 1.442695, %v1236_v19  ;;  %v2191_v19 = vld [vmem:[#allocation11 + $0x8] sm:$0xff]  }
 0x7c1   : > { %2205 = vpow2.f32 %v1237_v20  ;;  %v2192_v20 = vld [vmem:[#allocation11] sm:$0xff]  }
 0x7ce   : > { %v2206_v21 = vpop.eup %2205 }
 0x7cf   : > { %v1239_v22 = vsel %vm914_vm6, %v2206_v21, 0.0 }
 0x7d0   : > { %1240 = vadd.xlane.f32.xlu0 %v1239_v22 }
 0x7e6   : > { %1343 = vrot.lane.b32.xlu0 %v2728_v2, %s2439_s12 }
 0x7ea   : > { %1341 = vrot.lane.b32.xlu0 %v2744_v12, %s2439_s12  ;;  %v1293_v12 = vld [vmem:[#allocation10 + $0x8] sm:$0xf] }
 0x7eb   : > { %v1298_v30 = vsel %vm1093_vm7, %v1293_v12, 0 }
 0x7ec   : > { %2015 = vmatpush3.bf16.msra.mxu1 %v1298_v30 }
 0x7ed   : > { %2026 = vmatprep.subr.bf16.mxu1 %v2435_v62 }
 0x859   : > { %v1241_v23 = vpop.xlane.xlu0 %1240 }
 0x85a   : > { %2207 = vrcp.f32 %v1241_v23 }
 0x85d   : > { %v1344_v26 = vpop.permute.xlu0 %1343 }
 0x85e   : > { %v1349_v27 = vsel %vm867_vm5, %v1344_v26, 0 }
 0x861   : > { %v1342_v2 = vpop.permute.xlu0 %1341 }
 0x867   : > { %v2208_v24 = vpop.eup %2207 }
 0x868   : > { %v1243_v25 = vmul.f32 %v2208_v24, %v2206_v21  ;;  %v1523_v24 = vlaneseq }
 0x86a   : > { %v1244_v28 = vpack.c.bf16 %v1243_v25, %v1243_v25  ;;  %v1524_v25 = vshrl.u32 %v1523_v24, 7 }
 0x86c   : > { %2011 = vmatmul.mubr.msk.bf16.vlgmr.msra.gmra.mxu0 %vm914_vm6, %v1244_v28  ;;  %v1525_v26 = vsub.s32 0, %v1524_v25 }
 0x86d   : > { %2021 = vmatpush3.bf16.xpose.msra.mxu0 %v1349_v27  ;;  %2022 = vmatprep.mubr.msk.bf16.mxu0 %vm2436_vm3, %v2435_v62 }
 0x86e   : > { %2032 = vmatprep.subr.bf16.mxu0 %v2435_v62  ;;  %v1526_v27 = vrot.slane %v2683_v0, %v1525_v26  ;;  %v1533_v12 = vrot.slane %v2688_v1, %v1525_v26  ;;  %v2194_v0 = vld [vmem:[%s2943_s13 + $0x10] sm:$0xff]   ;;  %v2195_v1 = vld [vmem:[%s2943_s13 + $0x8] sm:$0xff]  }
 0x874   : > { %2023 = vmatmul.mubr.msk.bf16.vlgmr.msra.gmra.mxu0 %vm867_vm5, %v1342_v2 }
 0x875   : > { %2034 = vmatprep.mubr.msk.bf16.mxu0 %vm2436_vm3, %v2435_v62  ;;  %2033 = vmatpush3.bf16.msra.mxu0 %v1456_v50 }
 0x876   : > { %2046 = vmatprep.subr.bf16.mxu0 %v2435_v62 }
 0x92c   : > { %v1285_v31 = vpop.f32.mrf.mxu0 }
 0x92d   : > { %v1291_v32 = vpack.c.bf16 %v1285_v31, %v1285_v31 }
 0x92e   : > { %v2012_v33 = vpop.f32.mrf.mxu0 }
 0x92f   : > { %2017 = vmatmul.mubr.msk.bf16.vlgmr.msra.gmra.mxu1 %vm867_vm5, %v1291_v32  ;;  %v2193_v33 = vld [vmem:[%s2943_s13 + $0x18] sm:$0xff]  }
 0x930   : > { %v1288_v34 = vpop.f32.mrf.mxu0  ;;  %2028 = vmatprep.mubr.msk.bf16.mxu1 %vm2436_vm3, %v2435_v62 }
 0x931   : > { %v2196_v34 = vld [vmem:[%s2943_s13] sm:$0xff]  }
 0x932   : > { %v2013_v35 = vpop.f32.mrf.mxu0 }
 0x933   : > { %v1879_v35 = vld [vmem:[%s2971_s14] ss:$0 sm:$0xff]  ;;  %s2973_s14 = sld [smem:[#allocation28_spill]] }
 0x934   : > { %v1385_v36 = vpop.f32.mrf.mxu0 }
 0x935   : > { %v1391_v37 = vsel %vm914_vm6, %v1385_v36, -inf }
 0x936   : > { %1392 = vmax.xlane.f32.xlu0 %v1391_v37  ;;  %v2024_v38 = vpop.f32.mrf.mxu0 }
 0x938   : > { %v1388_v39 = vpop.f32.mrf.mxu0 }
 0x93a   : > { %v2025_v40 = vpop.f32.mrf.mxu0 }
 0x9bf   : > { %v1393_v41 = vpop.xlane.xlu0 %1392 }
 0x9c0   : > { %v1394_v42 = vsub.f32 %v1385_v36, %v1393_v41 }
 0x9c2   : > { %v1395_v43 = vmul.f32 1.442695, %v1394_v42 }
 0x9c4   : > { %2209 = vpow2.f32 %v1395_v43 }
 0x9d1   : > { %v2210_v44 = vpop.eup %2209 }
 0x9d2   : > { %v1397_v45 = vsel %vm914_vm6, %v2210_v44, 0.0 }
 0x9d3   : > { %1398 = vadd.xlane.f32.xlu1 %v1397_v45 }
 0x9e4   : > { %1403 = vrot.lane.b32.xlu1 %v2759_v29, %s2439_s12  ;;  %s1891_s12 = sshll.u32 %s1706_s29, 7  ;;  %s2440_s29 = smov [#allocation13]  }
 0x9e5   : > { %s2873_s15 = scalar_lea.hbm %s2973_s14, %s1891_s12  ;;  %s2325_s16 = sshll.u32 %s2440_s29, 4  ;;  %s2326_s16 = int_to_ptr.vmem [resolvable:$false] %s2325_s16 }
 0x9e6   : > { %s2327_s27 = scalar_lea.vmem %s2326_s16, 256  ;;  %p2328_p6 = scmp.lt.s32.totalorder %s2875_s20, %s2326_s16 }
 0x9e7   : > { %p2329_p7 = scmp.lt.s32.totalorder %s2327_s27, %s2321_s24 }
 0x9e9   : > { %p2330_p8 = por %p2329_p7, %p2328_p6 }
 0x9eb   : > { %p2331_p9 = pnand %p2330_p8, %p2324_p4 }
 0x9ef   : > { %v1334_v47 = vpop.f32.mrf.mxu1 }
 0x9f0   : > { %v1340_v49 = vadd.f32 %v1334_v47, %v1178_v46  ;;  %v1883_v46 = vld [vmem:[%s2972_s23] ss:$0 sm:$0xff] }
 0x9f1   : > { %v2018_v51 = vpop.f32.mrf.mxu1 }
 0x9f3   : > { %v1337_v52 = vpop.f32.mrf.mxu1 }
 0x9f5   : > { %v2019_v53 = vpop.f32.mrf.mxu1 }
 0xa5c   : > { %v1399_v54 = vpop.xlane.xlu1 %1398 }
 0xa5d   : > { %2211 = vrcp.f32 %v1399_v54 }
 0xa60   : > { %v1404_v55 = vpop.permute.xlu1 %1403 }
 0xa61   : > { %2027 = vmatpush3.bf16.msra.mxu1 %v1404_v55 }
 0xa62   : > { %2038 = vmatprep.subr.bf16.mxu1 %v2435_v62 }
 0xa6a   : > { %v2212_v29 = vpop.eup %2211 }
 0xa6b   : > { %v1401_v56 = vmul.f32 %v2212_v29, %v2210_v44 }
 0xa6d   : > { %v1402_v57 = vpack.c.bf16 %v1401_v56, %v1401_v56 }
 0xa6f   : > { %2029 = vmatmul.mubr.msk.bf16.vlgmr.msra.gmra.mxu1 %vm914_vm6, %v1402_v57 }
 0xa70   : > { %2042 = vmatprep.mubr.msk.bf16.mxu1 %vm2436_vm3, %v2435_v62  ;;  %2039 = vmatpush3.bf16.msra.mxu1 %v2191_v19 }
 0xa71   : > { %2040 = vmatprep.subr.bf16.mxu1 %v2435_v62 }
 0xa74   : > { %2041 = vmatpush3.bf16.msra.mxu1 %v2192_v20 }
 0xb2f   : > { %v1443_v58 = vpop.f32.mrf.mxu1 }
 0xb30   : > { %v1449_v59 = vpack.c.bf16 %v1443_v58, %v1443_v58 }
 0xb31   : > { %v2030_v60 = vpop.f32.mrf.mxu1 }
 0xb32   : > { %2035 = vmatmul.mubr.msk.bf16.vlgmr.msra.gmra.mxu0 %vm867_vm5, %v1449_v59 }
 0xb33   : > { %v1446_v61 = vpop.f32.mrf.mxu1  ;;  %2054 = vmatprep.mubr.msk.bf16.mxu0 %vm2436_vm3, %v2435_v62  ;;  %2047 = vmatpush3.bf16.msra.mxu0 %v2193_v33 }
 0xb34   : > { %2048 = vmatprep.subr.bf16.mxu0 %v2435_v62 }
 0xb35   : > { %v2031_v63 = vpop.f32.mrf.mxu1 }
 0xb37   : > { %2049 = vmatpush3.bf16.msra.mxu0 %v2194_v0 }
 0xb38   : > { %2050 = vmatprep.subr.bf16.mxu0 %v2435_v62 }
 0xb3b   : > { %2051 = vmatpush3.bf16.msra.mxu0 %v2195_v1 }
 0xb3c   : > { %2052 = vmatprep.subr.bf16.mxu0 %v2435_v62 }
 0xb3f   : > { %2053 = vmatpush3.bf16.msra.mxu0 %v2196_v34 }
 0xbf2   : > { %v1492_v3 = vpop.f32.mrf.mxu0 }
 0xbf3   : > { %v1498_v5 = vadd.f32 %v1492_v3, %v1340_v49 }
 0xbf4   : > { %v2036_v7 = vpop.f32.mrf.mxu0 }
 0xbf5   : > { %v1506_v8 = vadd.f32 %v1878_v4, %v1498_v5 }
 0xbf6   : > { %v1495_v9 = vpop.f32.mrf.mxu0 }
 0xbf7   : > { %v2834_v10 = vadd.f32 %v1506_v8, %v783_v6 }
 0xbf8   : > { %v2037_v11 = vpop.f32.mrf.mxu0 }
 0xbf9   : > { %v1508_v13 = vsel %vm812_vm4, %v2834_v10, 0.0 }
 0xbfa   : > { %1509 = vadd.xlane.f32.xlu1 %v1508_v13 }
 0xc83   : > { %v1510_v14 = vpop.xlane.xlu1 %1509 }
 0xc84   : > { %v1512_v15 = vmul.f32 0.03125, %v1510_v14 }
 0xc86   : > { %v1513_v16 = vsub.f32 %v2834_v10, %v1512_v15 }
 0xc88   : > { %v1514_v17 = vmul.f32 %v1513_v16, %v1513_v16 }
 0xc8a   : > { %v1515_v18 = vsel %vm812_vm4, %v1514_v17, 0.0 }
 0xc8b   : > { %1516 = vadd.xlane.f32.xlu0 %v1515_v18 }
 0xd14   : > { %v1517_v21 = vpop.xlane.xlu0 %1516 }
 0xd15   : > { %v1518_v22 = vmul.f32 0.03125, %v1517_v21 }
 0xd17   : > { %v1519_v23 = vadd.f32 1e-05, %v1518_v22 }
 0xd19   : > { %2213 = vrsqrt.f32 %v1519_v23 }
 0xd26   : > { %v2214_v28 = vpop.eup %2213 }
 0xd27   : > { %v1521_v2 = vmul.f32 %v2214_v28, %v1513_v16 }
 0xd29   : > { %v1528_v30 = vmul.f32 %v1526_v27, %v1521_v2 }
 0xd2b   : > { %v1535_v31 = vadd.f32 %v1533_v12, %v1528_v30 }
 0xd2d   : > { %v1536_v32 = vpack.c.bf16 %v1535_v31, %v1535_v31 }
 0xd2f   : > { %2043 = vmatmul.mubr.msk.bf16.vlgmr.msra.gmra.mxu1 %vm812_vm4, %v1536_v32 }
 0xdef   : > { %v1597_v36 = vpop.f32.mrf.mxu1 }
 0xdf0   : > { %v1598_v37 = vadd.f32 %v1879_v35, %v1597_v36 }
 0xdf1   : > { %v2044_v38 = vpop.f32.mrf.mxu1 }
 0xdf2   : > { %v1604_v39 = vmul.f32 0.70710677, %v1598_v37  ;;  %v1603_v42 = vmul.f32 0.5, %v1598_v37 }
 0xdf3   : > { %v1600_v40 = vpop.f32.mrf.mxu1 }
 0xdf4   : > { %2215 = verf.f32 %v1604_v39 }
 0xdf5   : > { %v2045_v41 = vpop.f32.mrf.mxu1 }
 0xe01   : > { %v2216_v62 = vpop.eup %2215 }
 0xe02   : > { %v1606_v43 = vadd.f32 1.0, %v2216_v62 }
 0xe04   : > { %v1607_v44 = vmul.f32 %v1606_v43, %v1603_v42 }
 0xe06   : > { %v1608_v45 = vpack.c.bf16 %v1607_v44, %v1607_v44 }
 0xe08   : > { %2055 = vmatmul.mubr.msk.bf16.vlgmr.msra.gmra.mxu0 %vm1648_vm8, %v1608_v45 }
 0xec8   : > { %v1686_v47 = vpop.f32.mrf.mxu0 }
 0xec9   : > { %v1687_v48 = vadd.f32 %v1883_v46, %v1686_v47 }
 0xeca   : > { %v2056_v49 = vpop.f32.mrf.mxu0 }
 0xecb   : > { %v1692_v50 = vadd.f32 %v1687_v48, %v2834_v10 }
 0xecc   : > { %v1689_v51 = vpop.f32.mrf.mxu0 }
 0xecd   : > { %1693 = vst.msk [vmem:[%s560_s18] sm:$0xff] %vm812_vm4, %v1692_v50 }
 0xece   : > { %v2057_v52 = vpop.f32.mrf.mxu0 }
 0xecf   : > { %2334 = shalt.err (!%p2331_p9)
}
 0xed0   : > { %s2335_s28 = scalar_lea.hbm %s2873_s15, 128  ;;  %s2339_s12 = scalar_lea.hbm %s2973_s14, 512 }
 0xed1   : > { %p2336_p11 = scmp.ne.s32.totalorder %s2873_s15, %s2335_s28  ;;  %p2340_p5 = scmp.lt.s32.totalorder %s2873_s15, %s2973_s14 }
 0xed2   : > { %p2341_p10 = scmp.lt.s32.totalorder %s2339_s12, %s2335_s28 }
 0xed3   : > { %p2337_p13 = pnand %p2336_p11, %p2573_p3 }
 0xed4   : > { %p2342_p12 = por %p2341_p10, %p2340_p5 }
 0xed5   : > { %p2338_p2 = pneg %p2337_p13 }
 0xed7   : > { %p2343_p0 = pnand %p2342_p12, %p2338_p2 }
 0xed9   : > { %2346 = shalt.err (!%p2343_p0)
}
 0xeda   : > { %2074 = dma.vmem_to_hbm [thread:$0]  (%p2573_p3), %s2875_s20, 128, %s2873_s15, %s1695_s22  }
 0xedb PF: > { %s2975_s21 = sld [smem:[#allocation18_spill]]  ;;  %p2101_p1 = scmp.ge.s32.totalorder %s2425_s25, 2 }
 0xedc   : > { %s2976_s24 = sld [smem:[#allocation24_spill]] }
 0xee1   : > { %s1722_s29 = sand.u32 1, %s2975_s21  }
 0xee2   : > { %p2977_p4 = scmp.ne.s32.totalorder %s2976_s24, 0  ;;  %s1723_s16 = scalar_lea.sflag [#allocation7], %s1722_s29 }
 0xee4   : > { %p2090_p6 = pnand %p2101_p1, %p2977_p4 }
 0xee6   : > { %p2091_p7 = pneg %p2090_p6 }
 0xee8   : > { %2392 = dma.done.wait (%p2091_p7), %s1723_s16, 128  }
 0xee9   : > { %2394 = vsyncadd (%p2091_p7), %s1723_s16, 4294967168  ;;  %s31_s25 = sadd.s32 1, %s2425_s25   ;;  %s2978_s17 = sld [smem:[#allocation19_spill]] }
 0xeea   : > { %p28_p8 = scmp.ge.s32.totalorder %s31_s25, 6   ;;  %s2979_s20 = sld [smem:[#allocation25_spill]] }
 0xeeb   : > { %s2980_s21 = sld [smem:[#allocation20_spill]]  ;;  %s2984_s18 = smov %s2401_s19 }
 0xeec   : > { %s2981_s22 = sld [smem:[#allocation21_spill]]  ;;  %30 = sbr.rel (!%p28_p8) target bundleno = 12 (0xc), region = 141 }
 0xeed   : > { %s2982_s23 = sld [smem:[#allocation22_spill]] }
 0xeee   : > { %s2983_s24 = sld [smem:[#allocation23_spill]] }
 0xeef   : > { %s2985_s19 = smov %s2978_s17 }
 0xef1   :  { %1728 = vsyncpa [#allocation6], 1 }
 0xef2   :  { %1730 = vsyncpa [#allocation6 + $0x1], 1 }
 0xef3   :  { %1731 = vsyncpa [#allocation9], 1 }
 0xef4   :  { %1732 = vsyncpa [#allocation12], 1 }
 0xef5   :  { %1733 = vsyncpa [#allocation7], 1 }
 0xef6   :  { %1735 = vsyncpa [#allocation7 + $0x1], 1 }

// kernel: tpu_custom_call.1
= control target key start
LH: loop header
LB: loop body
LE: loop exit
PB: predicated region body
PF: predicated region fallthrough
CT: control target
= control target key end

     0   :  { %s2930_s0 = inlined_call_operand.vmem [shape: f32[2,16,32], index: 0, kind: input, shape index: {}]   ;;  %s2931_s1 = inlined_call_operand.vmem [shape: bf16[32,32], index: 1, kind: input, shape index: {}]   ;;  %s2932_s2 = inlined_call_operand.hbm [shape: bf16[32,32], index: 2, kind: input, shape index: {}]   ;;  %s2933_s3 = inlined_call_operand.hbm [shape: bf16[32,32], index: 3, kind: input, shape index: {}]   ;;  %s2934_s4 = inlined_call_operand.vmem [shape: f32[1,32], index: 4, kind: input, shape index: {}]   ;;  %s2935_s5 = inlined_call_operand.vmem [shape: f32[1,32], index: 5, kind: input, shape index: {}]   ;;  %s2936_s6 = inlined_call_operand.vmem [shape: f32[1,32], index: 6, kind: input, shape index: {}]   ;;  %s2937_s7 = inlined_call_operand.hbm [shape: bf16[4,8,32], index: 7, kind: input, shape index: {}]   ;;  %s2938_s8 = inlined_call_operand.vmem [shape: f32[1,32], index: 8, kind: input, shape index: {}]   ;;  %s2939_s9 = inlined_call_operand.vmem [shape: f32[1,32], index: 9, kind: input, shape index: {}]   ;;  %s2940_s10 = inlined_call_operand.vmem [shape: f32[1,32], index: 10, kind: input, shape index: {}]   ;;  %s2941_s11 = inlined_call_operand.hbm [shape: bf16[32,64], index: 11, kind: input, shape index: {}]   ;;  %s2942_s12 = inlined_call_operand.vmem [shape: f32[1,64], index: 12, kind: input, shape index: {}]   ;;  %s2943_s13 = inlined_call_operand.vmem [shape: bf16[64,32], index: 13, kind: input, shape index: {}]   ;;  %s2944_s14 = inlined_call_operand.vmem [shape: f32[1,32], index: 14, kind: input, shape index: {}]   ;;  %s2945_s15 = inlined_call_operand.hbm [shape: f32[2,16,32], index: 15, kind: output, shape index: {}]  }
   0x1   :  { %2955 = sst [smem:[#allocation26_spill]] %s2942_s12 }
   0x2   :  { %2956 = sst [smem:[#allocation27_spill]] %s2944_s14 }
   0x3   :  { %2957 = sst [smem:[#allocation28_spill]] %s2945_s15 }
   0x4   :  { %20 = vsyncpa [#allocation6], 0 }
   0x5   :  { %21 = vsyncpa [#allocation9], 0 }
   0x6   :  { %22 = vsyncpa [#allocation12], 0 }
   0x7   :  { %23 = vsyncpa [#allocation7], 0 }
   0x8   :  { %25 = vsyncpa [#allocation7 + $0x1], 0  ;;  %s2521_s18 = smov 0   ;;  %s2523_s19 = smov 0  }
   0x9   :  { %s2525_s20 = smov 0   ;;  %s2527_s21 = smov 0  }
   0xa   :  { %s2529_s22 = smov 0   ;;  %s2531_s23 = smov 0  }
   0xb   :  { %s2533_s24 = smov 0   ;;  %s2535_s25 = smov 0  }
   0xc LB: > { %2958 = sst [smem:[#allocation18_spill]] %s2397_s18  ;;  %s1827_s26 = sadd.s32 4294967295, %s2425_s25   ;;  %s2425_s25 = sphi %s2535_s25, %s31_s25   ;;  %s2421_s24 = sphi %s2533_s24, %s2983_s24   ;;  %s2417_s23 = sphi %s2531_s23, %s2982_s23   ;;  %s2413_s22 = sphi %s2529_s22, %s2981_s22   ;;  %s2409_s21 = sphi %s2527_s21, %s2980_s21   ;;  %s2405_s20 = sphi %s2525_s20, %s2979_s20   ;;  %s2401_s19 = sphi %s2523_s19, %s2985_s19   ;;  %s2397_s18 = sphi %s2521_s18, %s2984_s18  }
   0xd   : > { %2959 = sst [smem:[#allocation19_spill]] %s2405_s20  ;;  %s1828_s27 = sadd.s32 4294967294, %s2425_s25  }
   0xe   : > { %2960 = sst [smem:[#allocation20_spill]] %s2417_s23  ;;  %s40_s28 = sadd.s32 1, %s2417_s23 }
   0xf   : > { %2961 = sst [smem:[#allocation21_spill]] %s2421_s24  ;;  %s43_s29 = sadd.s32 1, %s2421_s24 }
  0x10   : > { %p41_p0 = scmp.ge.s32.totalorder %s40_s28, 2  ;;  %s372_s30 = sadd.s32 1, %s2405_s20 }
  0x11   : > { %p382_p1 = scmp.ne.s32.totalorder %s2405_s20, %s2401_s19  ;;  %p383_p2 = scmp.eq.s32.totalorder %s1827_s26, 3 }
  0x12   : > { %s2987_s28 = smov (%p41_p0, %s40_s28), 0  ;;  %s2989_s29 = smov (!%p41_p0, %s43_s29), %s2421_s24 }
  0x13   : > { %2962 = sst [smem:[#allocation22_spill]] %s2987_s28  ;;  %s368_s16 = ssub.s32 %s2417_s23, %s2987_s28 }
  0x14   : > { %p2573_p3 = por %p383_p2, %p382_p1  ;;  %p45_p4 = scmp.ge.s32.totalorder %s2989_s29, 2 }
  0x15   : > { %p388_p5 = scmp.ne.s32.totalorder %s2401_s19, %s2397_s18  ;;  %p389_p6 = scmp.eq.s32.totalorder %s1828_s27, 3 }
  0x16   : > { %p1829_p7 = scmp.ge.s32.totalorder %s2425_s25, 1  ;;  %s2991_s29 = smov (%p45_p4, %s2989_s29), 0 }
  0x17   : > { %2964 = sst [smem:[#allocation23_spill]] %s2991_s29  ;;  %p2582_p8 = por %p389_p6, %p388_p5 }
  0x18   : > { %p396_p9 = scmp.lt.s32.totalorder %s2425_s25, 5  ;;  %s367_s14 = ssub.s32 %s2421_s24, %s2991_s29 }
  0x19   : > { %s2965_s15 = scalar_select %p2582_p8, 1, 0 }
  0x1a   : > { %s369_s12 = sor.u32 %s368_s16, %s367_s14  ;;  %p2589_p10 = pnand %p1829_p7, %p396_p9 }
  0x1b   : > { %2966 = sst [smem:[#allocation24_spill]] %s2965_s15  ;;  %p370_p11 = scmp.eq.s32.totalorder %s369_s12, 0 }
  0x1c   : > { %p2593_p12 = scmp.eq.s32.totalorder %s1827_s26, 0  ;;  %p2076_p13 = pneg %p2589_p10 }
  0x1d   : > { %s2600_s27 = scalar_select %p370_p11, %s2405_s20, %s372_s30  }
  0x1e   : > { %p2604_p0 = pnand %p2593_p12, %p2076_p13  ;;  %s2427_s14 = smov [#allocation8]  }
  0x1f   : > { %2969 = sst [smem:[#allocation25_spill]] %s2600_s27  ;;  %s424_s16 = sshll.u32 %s2427_s14, 4  ;;  %s425_s16 = int_to_ptr.vmem [resolvable:$true] %s424_s16 }
  0x20   : > { %p2219_p1 = pneg %p2604_p0  ;;  %s2228_s12 = scalar_lea.vmem %s425_s16, 256 }
  0x21   : > { %p2229_p2 = scmp.ne.s32.totalorder %s425_s16, %s2228_s12  ;;  %p2236_p6 = scmp.lt.s32.totalorder %s425_s16, %s425_s16 }
  0x22   : > { %p2237_p7 = scmp.lt.s32.totalorder %s2228_s12, %s2228_s12 }
  0x23   : > { %p2231_p4 = pnand %p2229_p2, %p2219_p1 }
  0x24   : > { %p2238_p9 = por %p2237_p7, %p2236_p6 }
  0x25   : > { %p2232_p5 = pneg %p2231_p4 }
  0x27   : > { %p2239_p11 = pnand %p2238_p9, %p2232_p5 }
  0x29   : > { %2242 = shalt.err (!%p2239_p11)
}
  0x2a   : > { %s2428_s26 = smov 64   ;;  %s2429_s30 = smov 4  }
  0x2b   : > { %2082 = dma.hbm_to_vmem [thread:$0]  (!%p2604_p0), %s2933_s3, 256, %s425_s16, [#allocation9], %s2428_s26, %s2428_s26, %s2429_s30  }
  0x2c   : > { %s2430_s24 = smov [#allocation5]   ;;  %s2431_s20 = smov [#allocation10]  }
  0x2d   : > { %s411_s27 = sshll.u32 %s2430_s24, 4  ;;  %s446_s18 = sshll.u32 %s2431_s20, 4  ;;  %s412_s27 = int_to_ptr.vmem [resolvable:$true] %s411_s27  ;;  %s447_s18 = int_to_ptr.vmem [resolvable:$true] %s446_s18 }
  0x2e   : > { %s2254_s12 = scalar_lea.vmem %s412_s27, 256  ;;  %p2262_p5 = scmp.lt.s32.totalorder %s412_s27, %s412_s27 }
  0x2f   : > { %p2255_p13 = scmp.ne.s32.totalorder %s412_s27, %s2254_s12  ;;  %p2263_p6 = scmp.lt.s32.totalorder %s2254_s12, %s2254_s12 }
  0x31   : > { %p2257_p2 = pnand %p2255_p13, %p2219_p1  ;;  %p2264_p7 = por %p2263_p6, %p2262_p5 }
  0x33   : > { %p2258_p4 = pneg %p2257_p2 }
  0x35   : > { %p2265_p9 = pnand %p2264_p7, %p2258_p4 }
  0x37   : > { %2268 = shalt.err (!%p2265_p9)
}
  0x38   : > { %2079 = dma.hbm_to_vmem [thread:$0]  (!%p2604_p0), %s2932_s2, 256, %s412_s27, [#allocation6], %s2428_s26, %s2428_s26, %s2429_s30  }
  0x39   : > { %s2280_s29 = scalar_lea.vmem %s447_s18, 256  ;;  %p2288_p8 = scmp.lt.s32.totalorder %s447_s18, %s447_s18 }
  0x3a   : > { %p2281_p11 = scmp.ne.s32.totalorder %s447_s18, %s2280_s29  ;;  %p2289_p5 = scmp.lt.s32.totalorder %s2280_s29, %s2280_s29 }
  0x3c   : > { %p2283_p13 = pnand %p2281_p11, %p2219_p1  ;;  %p2290_p4 = por %p2289_p5, %p2288_p8 }
  0x3e   : > { %p2284_p2 = pneg %p2283_p13 }
  0x40   : > { %p2291_p6 = pnand %p2290_p4, %p2284_p2 }
  0x42   : > { %2294 = shalt.err (!%p2291_p6)
}
  0x43   : > { %2085 = dma.hbm_to_vmem [thread:$0]  (!%p2604_p0), %s2937_s7, 256, %s447_s18, [#allocation9], %s2428_s26, %s2428_s26, %s2429_s30  }
  0x44   : > { %s2432_s27 = smov [#allocation11]  }
  0x45   : > { %s468_s12 = sshll.u32 %s2432_s27, 4  ;;  %s469_s12 = int_to_ptr.vmem [resolvable:$true] %s468_s12 }
  0x46   : > { %s2306_s24 = scalar_lea.vmem %s469_s12, 256  ;;  %p2314_p11 = scmp.lt.s32.totalorder %s469_s12, %s469_s12 }
  0x47   : > { %p2307_p7 = scmp.ne.s32.totalorder %s469_s12, %s2306_s24  ;;  %p2315_p13 = scmp.lt.s32.totalorder %s2306_s24, %s2306_s24 }
  0x49   : > { %p2309_p8 = pnand %p2307_p7, %p2219_p1  ;;  %p2316_p2 = por %p2315_p13, %p2314_p11 }
  0x4b   : > { %p2310_p9 = pneg %p2309_p8 }
  0x4d   : > { %p2317_p5 = pnand %p2316_p2, %p2310_p9 }
  0x4f   : > { %2320 = shalt.err (!%p2317_p5)
}
  0x50   : > { %2088 = dma.hbm_to_vmem [thread:$0]  (!%p2604_p0), %s2941_s11, 256, %s469_s12, [#allocation12], %s2428_s26, %s2428_s26, %s2429_s30  }
  0x51   : > { %501 = sbr.rel (%p2589_p10) target bundleno = 3803 (0xedb), region = 80 }
  0x56   : > { %2380 = dma.done.wait (%p2593_p12), [#allocation6], 256  }
  0x57   : > { %2382 = vsyncadd (%p2593_p12), [#allocation6], 4294967040 }
  0x58   : > { %2384 = dma.done.wait (%p2593_p12), [#allocation9], 512  }
  0x59   : > { %2386 = vsyncadd (%p2593_p12), [#allocation9], 4294966784 }
  0x5a   : > { %2388 = dma.done.wait (%p2593_p12), [#allocation12], 256  }
  0x5b   : > { %2390 = vsyncadd (%p2593_p12), [#allocation12], 4294967040  ;;  %s2954_s15 = sand.u32 1, %s2401_s19   ;;  %p561_p10 = scmp.lt.s32.totalorder %s2413_s22, 1  ;;  %v2683_v0 = vld [vmem:[%s2939_s9] sm:$0x1] }
  0x5c   : > { %s2672_s28 = sshll.u32 %s2954_s15, 3  ;;  %v2688_v1 = vld [vmem:[%s2940_s10] sm:$0x1]  ;;  %p1843_p12 = scmp.ne.s32.totalorder %s2409_s21, 0 }
  0x5d   : > { %s562_s26 = scalar_select %p561_p10, %s2413_s22, 1 }
  0x5e   : > { %s560_s18 = scalar_lea.vmem [#allocation13], %s2672_s28  ;;  %572 = sbr.rel (%p1843_p12) target bundleno = 616 (0x268), region = 100 }
  0x5f   : > { %s1894_s30 = sshll.u32 %s562_s26, 4 }
  0x60   : > { %s2678_s14 = scalar_lea.vmem %s2930_s0, %s1894_s30 }
  0x63   : > { %v573_v2 = vld [vmem:[%s2678_s14] sm:$0xff]  ;;  %vm575_vm0 = vcmask 261120   ;;  %v574_v3 = vld [vmem:[%s2678_s14 + $0x8] sm:$0xff]  ;;  %v2180_v17 = vld [vmem:[#allocation8 + $0x8] sm:$0xff]   ;;  %v2433_v18 = vmov 0.0   ;;  %vm2434_vm1 = vmmov 0   ;;  %v604_v26 = vlaneseq }
  0x64   : > { %v576_v4 = vsel %vm575_vm0, %v573_v2, 0.0  ;;  %v579_v5 = vsel %vm575_vm0, %v574_v3, 0.0  ;;  %v2179_v16 = vld [vmem:[#allocation5 + $0x8] sm:$0xff]   ;;  %1942 = vmatprep.subr.bf16.mxu0 %v2433_v18  ;;  %1950 = vmatprep.subr.bf16.mxu1 %v2433_v18  ;;  %v2181_v19 = vld [vmem:[#allocation5] sm:$0xff]   ;;  %v2182_v20 = vld [vmem:[#allocation8] sm:$0xff]   ;;  %vm627_vm2 = vcmask 257024  }
  0x65   : > { %577 = vadd.xlane.f32.xlu0 %v576_v4  ;;  %1943 = vmatpush3.bf16.msra.mxu0 %v2179_v16  ;;  %v605_v28 = vshrl.u32 %v604_v26, 7  ;;  %v1846_v43 = vld [vmem:[%s2935_s5] ss:$0 sm:$0xff] }
  0x66   : > { %1951 = vmatpush3.bf16.msra.mxu1 %v2180_v17  ;;  %1944 = vmatprep.subr.bf16.mxu0 %v2433_v18  ;;  %v1850_v44 = vld [vmem:[%s2936_s6] ss:$0 sm:$0xff] }
  0x67   : > { %1952 = vmatprep.subr.bf16.mxu1 %v2433_v18  ;;  %1946 = vmatprep.mubr.msk.bf16.mxu0 %vm2434_vm1, %v2433_v18  ;;  %v606_v29 = vsub.s32 0, %v605_v28 }
  0x68   : > { %1954 = vmatprep.mubr.msk.bf16.mxu1 %vm2434_vm1, %v2433_v18 }
  0x69   : > { %580 = vadd.xlane.f32.xlu0 %v579_v5  ;;  %1945 = vmatpush3.bf16.msra.mxu0 %v2181_v19  ;;  %v607_v30 = vrot.slane %v2683_v0, %v606_v29  ;;  %v615_v33 = vrot.slane %v2688_v1, %v606_v29 }
  0x6a   : > { %1953 = vmatpush3.bf16.msra.mxu1 %v2182_v20 }
  0xee   : > { %v578_v6 = vpop.xlane.xlu0 %577 }
  0xef   : > { %v583_v7 = vmul.f32 0.03125, %v578_v6 }
  0xf1   : > { %v585_v8 = vsub.f32 %v573_v2, %v583_v7 }
  0xf2   : > { %v581_v9 = vpop.xlane.xlu0 %580 }
  0xf3   : > { %v584_v10 = vmul.f32 0.03125, %v581_v9  ;;  %v587_v11 = vmul.f32 %v585_v8, %v585_v8 }
  0xf5   : > { %v586_v12 = vsub.f32 %v574_v3, %v584_v10  ;;  %v589_v13 = vsel %vm575_vm0, %v587_v11, 0.0 }
  0xf6   : > { %590 = vadd.xlane.f32.xlu1 %v589_v13 }
  0xf7   : > { %v588_v14 = vmul.f32 %v586_v12, %v586_v12 }
  0xf9   : > { %v592_v15 = vsel %vm575_vm0, %v588_v14, 0.0 }
  0xfa   : > { %593 = vadd.xlane.f32.xlu1 %v592_v15 }
 0x17f   : > { %v591_v21 = vpop.xlane.xlu1 %590 }
 0x180   : > { %v595_v22 = vmul.f32 0.03125, %v591_v21 }
 0x182   : > { %v597_v23 = vadd.f32 1e-05, %v595_v22 }
 0x183   : > { %v594_v24 = vpop.xlane.xlu1 %593 }
 0x184   : > { %2183 = vrsqrt.f32 %v597_v23  ;;  %v596_v25 = vmul.f32 0.03125, %v594_v24 }
 0x186   : > { %v598_v27 = vadd.f32 1e-05, %v596_v25 }
 0x188   : > { %2185 = vrsqrt.f32 %v598_v27 }
 0x191   : > { %v2184_v31 = vpop.eup %2183 }
 0x192   : > { %v601_v32 = vmul.f32 %v2184_v31, %v585_v8 }
 0x194   : > { %v609_v34 = vmul.f32 %v607_v30, %v601_v32 }
 0x195   : > { %v2186_v35 = vpop.eup %2185 }
 0x196   : > { %v602_v36 = vmul.f32 %v2186_v35, %v586_v12  ;;  %v617_v37 = vadd.f32 %v615_v33, %v609_v34 }
 0x198   : > { %v610_v38 = vmul.f32 %v607_v30, %v602_v36  ;;  %v1895_v39 = vpack.c.bf16 %v617_v37, %v617_v37 }
 0x19a   : > { %v618_v40 = vadd.f32 %v615_v33, %v610_v38  ;;  %628 = vst.msk [vmem:[#allocation2] sm:$0xf] %vm627_vm2, %v1895_v39 }
 0x19c   : > { %v619_v41 = vpack.c.bf16 %v618_v40, %v617_v37  ;;  %v1896_v42 = vpack.c.bf16 %v618_v40, %v618_v40 }
 0x19e   : > { %1947 = vmatmul.mubr.msk.bf16.vlgmr.msra.gmra.mxu0 %vm575_vm0, %v619_v41  ;;  %1955 = vmatmul.mubr.msk.bf16.vlgmr.msra.gmra.mxu1 %vm575_vm0, %v619_v41  ;;  %629 = vst.msk [vmem:[#allocation2 + $0x4] sm:$0xf] %vm627_vm2, %v1896_v42 }
 0x25e   : > { %v690_v45 = vpop.f32.mrf.mxu0  ;;  %v754_v46 = vpop.f32.mrf.mxu1 }
 0x25f   : > { %v691_v47 = vadd.f32 %v1846_v43, %v690_v45  ;;  %v755_v48 = vadd.f32 %v1850_v44, %v754_v46 }
 0x260   : > { %v1948_v49 = vpop.f32.mrf.mxu0  ;;  %v1956_v50 = vpop.f32.mrf.mxu1 }
 0x261   : > { %v1897_v51 = vpack.c.bf16 %v691_v47, %v691_v47  ;;  %v1899_v52 = vpack.c.bf16 %v755_v48, %v755_v48 }
 0x262   : > { %v693_v53 = vpop.f32.mrf.mxu0  ;;  %v757_v54 = vpop.f32.mrf.mxu1 }
 0x263   : > { %769 = vst.msk [vmem:[#allocation3] sm:$0xf] %vm627_vm2, %v1897_v51  ;;  %779 = vst.msk [vmem:[#allocation4] sm:$0xf] %vm627_vm2, %v1899_v52  ;;  %v694_v55 = vadd.f32 %v1846_v43, %v693_v53  ;;  %v758_v56 = vadd.f32 %v1850_v44, %v757_v54 }
 0x264   : > { %v1949_v57 = vpop.f32.mrf.mxu0  ;;  %v1957_v58 = vpop.f32.mrf.mxu1 }
 0x265   : > { %v1898_v59 = vpack.c.bf16 %v694_v55, %v694_v55  ;;  %v1900_v60 = vpack.c.bf16 %v758_v56, %v758_v56 }
 0x267   : > { %770 = vst.msk [vmem:[#allocation3 + $0x4] sm:$0xf] %vm627_vm2, %v1898_v59  ;;  %780 = vst.msk [vmem:[#allocation4 + $0x4] sm:$0xf] %vm627_vm2, %v1900_v60 }
 0x268 PF: > { %v2187_v61 = vld [vmem:[%s2931_s1 + $0x8] sm:$0xff]   ;;  %v2435_v62 = vmov 0.0   ;;  %v2188_v63 = vld [vmem:[%s2931_s1] sm:$0xff]   ;;  %vm2436_vm3 = vmmov 0   ;;  %s1858_s24 = sshll.u32 %s2409_s21, 3  ;;  %vm812_vm4 = vcmask 261120  }
 0x269   : > { %1958 = vmatprep.subr.bf16.mxu1 %v2435_v62  ;;  %1972 = vmatprep.subr.bf16.mxu0 %v2435_v62  ;;  %s784_s20 = sshra.s32 %s1858_s24, 3  ;;  %s2437_s30 = smov 120   ;;  %vm867_vm5 = vcmask 64512   ;;  %v1860_v5 = vld [vmem:[%s2934_s4] ss:$0 sm:$0xff]  ;;  %vm914_vm6 = vcmask 130048  }
 0x26a   : > { %1959 = vmatpush3.bf16.msra.mxu1 %v2187_v61  ;;  %1962 = vmatprep.mubr.msk.bf16.mxu1 %vm2436_vm3, %v2435_v62  ;;  %s1859_s26 = sshll.u32 %s784_s20, 2  ;;  %s2438_s23 = smov 112   ;;  %vm1093_vm7 = vcmask 1043456   ;;  %v1089_v41 = vld [vmem:[#allocation10 + $0x4] sm:$0xf]  ;;  %vm1648_vm8 = vcmask 523264  }
 0x26b   : > { %1960 = vmatprep.subr.bf16.mxu1 %v2435_v62  ;;  %1974 = vmatprep.mubr.msk.bf16.mxu0 %vm2436_vm3, %v2435_v62  ;;  %s787_s29 = scalar_lea.vmem [#allocation2], %s1859_s26  ;;  %v1095_v42 = vsel %vm1093_vm7, %v1089_v41, 0  ;;  %v977_v46 = vld [vmem:[#allocation10] sm:$0xf]  ;;  %s2439_s12 = smov 104  }
 0x26c   : > { %v788_v3 = vld [vmem:[%s787_s29] sm:$0xf]  ;;  %v1141_v49 = vsel %vm1093_vm7, %v977_v46, 0  ;;  %s782_s20 = scalar_lea.vmem %s2678_s14, %s1858_s24  ;;  %s2971_s14 = sld [smem:[#allocation26_spill]] }
 0x26d   : > { %s1890_s24 = sshll.u32 %s2413_s22, 1 }
 0x26e   : > { %v2728_v2 = vld [vmem:[#allocation3] sm:$0xff]   ;;  %1961 = vmatpush3.bf16.msra.mxu1 %v2188_v63  ;;  %v2759_v29 = vld [vmem:[#allocation4] sm:$0xff]   ;;  %s1706_s29 = sadd.s32 %s2409_s21, %s1890_s24  ;;  %s2974_s21 = sand.u32 1, %s2401_s19  }
 0x26f   : > { %981 = vrot.lane.b32.xlu0 %v2728_v2, %s2437_s30  ;;  %1966 = vmatprep.subr.bf16.mxu1 %v2435_v62  ;;  %v872_v4 = vsel %vm867_vm5, %v2728_v2, 0  ;;  %s1695_s22 = scalar_lea.sflag [#allocation7], %s2974_s21 }
 0x270   : > { %1973 = vmatpush3.bf16.msra.mxu0 %v2759_v29 }
 0x271   : > { %1963 = vmatmul.mubr.msk.bf16.vlgmr.msra.gmra.mxu1 %vm812_vm4, %v788_v3  ;;  %1984 = vmatprep.subr.bf16.mxu0 %v2435_v62 }
 0x272   : > { %1968 = vmatprep.mubr.msk.bf16.mxu1 %vm2436_vm3, %v2435_v62  ;;  %1967 = vmatpush3.bf16.xpose.msra.mxu1 %v872_v4 }
 0x273   : > { %1978 = vmatprep.subr.bf16.mxu1 %v2435_v62 }
 0x2e1   : > { %v982_v9 = vpop.permute.xlu0 %981 }
 0x2e2   : > { %v987_v13 = vsel %vm867_vm5, %v982_v9, 0 }
 0x331   : > { %v850_v6 = vpop.f32.mrf.mxu1 }
 0x332   : > { %v851_v7 = vadd.f32 %v1860_v5, %v850_v6 }
 0x333   : > { %v1964_v8 = vpop.f32.mrf.mxu1 }
 0x334   : > { %v856_v10 = vmul.f32 0.35355338, %v851_v7 }
 0x335   : > { %v853_v11 = vpop.f32.mrf.mxu1 }
 0x336   : > { %v2744_v12 = vpack.c.bf16 %v856_v10, %v856_v10 }
 0x337   : > { %v1965_v14 = vpop.f32.mrf.mxu1 }
 0x338   : > { %979 = vrot.lane.b32.xlu0 %v2744_v12, %s2437_s30  ;;  %1969 = vmatmul.mubr.msk.bf16.vlgmr.msra.gmra.mxu1 %vm867_vm5, %v2744_v12 }
 0x339   : > { %1979 = vmatpush3.bf16.xpose.msra.mxu1 %v987_v13  ;;  %1980 = vmatprep.mubr.msk.bf16.mxu1 %vm2436_vm3, %v2435_v62 }
 0x33a   : > { %1990 = vmatprep.subr.bf16.mxu1 %v2435_v62 }
 0x3aa   : > { %v980_v15 = vpop.permute.xlu0 %979 }
 0x3ab   : > { %1981 = vmatmul.mubr.msk.bf16.vlgmr.msra.gmra.mxu1 %vm867_vm5, %v980_v15 }
 0x3ac   : > { %1992 = vmatprep.mubr.msk.bf16.mxu1 %vm2436_vm3, %v2435_v62  ;;  %1991 = vmatpush3.bf16.msra.mxu1 %v1095_v42 }
 0x3ad   : > { %2002 = vmatprep.subr.bf16.mxu1 %v2435_v62 }
 0x3f8   : > { %v908_v16 = vpop.f32.mrf.mxu1 }
 0x3f9   : > { %v915_v17 = vsel %vm914_vm6, %v908_v16, -inf }
 0x3fa   : > { %916 = vmax.xlane.f32.xlu1 %v915_v17  ;;  %v1970_v18 = vpop.f32.mrf.mxu1 }
 0x3fc   : > { %v911_v19 = vpop.f32.mrf.mxu1 }
 0x3fe   : > { %v1971_v20 = vpop.f32.mrf.mxu1 }
 0x46b   : > { %v1023_v21 = vpop.f32.mrf.mxu1 }
 0x46c   : > { %v1029_v22 = vsel %vm914_vm6, %v1023_v21, -inf }
 0x46d   : > { %1030 = vmax.xlane.f32.xlu1 %v1029_v22  ;;  %v1982_v23 = vpop.f32.mrf.mxu1 }
 0x46f   : > { %v1026_v24 = vpop.f32.mrf.mxu1 }
 0x471   : > { %v1983_v25 = vpop.f32.mrf.mxu1 }
 0x483   : > { %v917_v26 = vpop.xlane.xlu1 %916 }
 0x484   : > { %v918_v27 = vsub.f32 %v908_v16, %v917_v26 }
 0x486   : > { %v919_v28 = vmul.f32 1.442695, %v918_v27 }
 0x488   : > { %2197 = vpow2.f32 %v919_v28 }
 0x495   : > { %v2198_v30 = vpop.eup %2197 }
 0x496   : > { %v921_v31 = vsel %vm914_vm6, %v2198_v30, 0.0 }
 0x497   : > { %922 = vadd.xlane.f32.xlu0 %v921_v31 }
 0x4ad   : > { %1245 = vrot.lane.b32.xlu0 %v2759_v29, %s2438_s23 }
 0x4f6   : > { %v1031_v32 = vpop.xlane.xlu1 %1030 }
 0x4f7   : > { %v1032_v33 = vsub.f32 %v1023_v21, %v1031_v32 }
 0x4f9   : > { %v1033_v34 = vmul.f32 1.442695, %v1032_v33 }
 0x4fb   : > { %2199 = vpow2.f32 %v1033_v34 }
 0x508   : > { %v2200_v35 = vpop.eup %2199 }
 0x509   : > { %v1035_v36 = vsel %vm914_vm6, %v2200_v35, 0.0 }
 0x50a   : > { %1036 = vadd.xlane.f32.xlu1 %v1035_v36 }
 0x51b   : > { %1041 = vrot.lane.b32.xlu1 %v2759_v29, %s2437_s30 }
 0x51f   : > { %1185 = vrot.lane.b32.xlu1 %v2728_v2, %s2438_s23 }
 0x520   : > { %v923_v37 = vpop.xlane.xlu0 %922 }
 0x521   : > { %2201 = vrcp.f32 %v923_v37 }
 0x523   : > { %1183 = vrot.lane.b32.xlu1 %v2744_v12, %s2438_s23  ;;  %s2972_s23 = sld [smem:[#allocation27_spill]] }
 0x524   : > { %v1246_v17 = vpop.permute.xlu0 %1245 }
 0x52e   : > { %v2202_v38 = vpop.eup %2201 }
 0x52f   : > { %v925_v39 = vmul.f32 %v2202_v38, %v2198_v30 }
 0x531   : > { %v926_v40 = vpack.c.bf16 %v925_v39, %v925_v39 }
 0x533   : > { %1975 = vmatmul.mubr.msk.bf16.vlgmr.msra.gmra.mxu0 %vm914_vm6, %v926_v40 }
 0x534   : > { %1986 = vmatprep.mubr.msk.bf16.mxu0 %vm2436_vm3, %v2435_v62 }
 0x593   : > { %v1037_v43 = vpop.xlane.xlu1 %1036 }
 0x594   : > { %2203 = vrcp.f32 %v1037_v43 }
 0x597   : > { %v1042_v44 = vpop.permute.xlu1 %1041 }
 0x598   : > { %1985 = vmatpush3.bf16.msra.mxu0 %v1042_v44 }
 0x599   : > { %1996 = vmatprep.subr.bf16.mxu0 %v2435_v62 }
 0x59b   : > { %v1186_v55 = vpop.permute.xlu1 %1185 }
 0x59c   : > { %v1191_v57 = vsel %vm867_vm5, %v1186_v55, 0 }
 0x59f   : > { %v1184_v63 = vpop.permute.xlu1 %1183 }
 0x5a1   : > { %v2204_v45 = vpop.eup %2203 }
 0x5a2   : > { %v1039_v47 = vmul.f32 %v2204_v45, %v2200_v35 }
 0x5a4   : > { %v1040_v48 = vpack.c.bf16 %v1039_v47, %v1039_v47 }
 0x5a6   : > { %1987 = vmatmul.mubr.msk.bf16.vlgmr.msra.gmra.mxu0 %vm914_vm6, %v1040_v48  ;;  %v1451_v48 = vld [vmem:[#allocation10 + $0xc] sm:$0xf] }
 0x5a7   : > { %1997 = vmatpush3.bf16.msra.mxu0 %v1141_v49  ;;  %1998 = vmatprep.mubr.msk.bf16.mxu0 %vm2436_vm3, %v2435_v62 }
 0x5a8   : > { %2008 = vmatprep.subr.bf16.mxu0 %v2435_v62 }
 0x5f3   : > { %v970_v50 = vpop.f32.mrf.mxu0 }
 0x5f4   : > { %v976_v51 = vpack.c.bf16 %v970_v50, %v970_v50  ;;  %v1456_v50 = vsel %vm1093_vm7, %v1451_v48, 0 }
 0x5f5   : > { %v1976_v52 = vpop.f32.mrf.mxu0 }
 0x5f6   : > { %1999 = vmatmul.mubr.msk.bf16.vlgmr.msra.gmra.mxu0 %vm867_vm5, %v976_v51 }
 0x5f7   : > { %v973_v53 = vpop.f32.mrf.mxu0  ;;  %2010 = vmatprep.mubr.msk.bf16.mxu0 %vm2436_vm3, %v2435_v62  ;;  %2009 = vmatpush3.bf16.msra.mxu0 %v1246_v17 }
 0x5f8   : > { %2020 = vmatprep.subr.bf16.mxu0 %v2435_v62 }
 0x5f9   : > { %v1977_v54 = vpop.f32.mrf.mxu0 }
 0x666   : > { %v1081_v56 = vpop.f32.mrf.mxu0 }
 0x667   : > { %v1087_v58 = vpack.c.bf16 %v1081_v56, %v1081_v56 }
 0x668   : > { %v1988_v59 = vpop.f32.mrf.mxu0 }
 0x669   : > { %1993 = vmatmul.mubr.msk.bf16.vlgmr.msra.gmra.mxu1 %vm867_vm5, %v1087_v58 }
 0x66a   : > { %2003 = vmatpush3.bf16.xpose.msra.mxu1 %v1191_v57  ;;  %v1084_v60 = vpop.f32.mrf.mxu0  ;;  %2004 = vmatprep.mubr.msk.bf16.mxu1 %vm2436_vm3, %v2435_v62 }
 0x66b   : > { %2014 = vmatprep.subr.bf16.mxu1 %v2435_v62 }
 0x66c   : > { %v1989_v61 = vpop.f32.mrf.mxu0 }
 0x671   : > { %2005 = vmatmul.mubr.msk.bf16.vlgmr.msra.gmra.mxu1 %vm867_vm5, %v1184_v63 }
 0x672   : > { %2016 = vmatprep.mubr.msk.bf16.mxu1 %vm2436_vm3, %v2435_v62 }
 0x6b6   : > { %v2792_v3 = vpop.f32.mrf.mxu0 }
 0x6b8   : > { %v2000_v4 = vpop.f32.mrf.mxu0 }
 0x6b9   : > { %v1878_v4 = vld [vmem:[%s2938_s8] ss:$0 sm:$0xff] }
 0x6ba   : > { %v1180_v5 = vpop.f32.mrf.mxu0 }
 0x6bc   : > { %v2001_v6 = vpop.f32.mrf.mxu0 }
 0x6bd   : > { %v783_v6 = vld [vmem:[%s782_s20] sm:$0xff]  ;;  %s1710_s20 = sshll.u32 %s560_s18, 4  ;;  %s2875_s20 = int_to_ptr.vmem [resolvable:$true] %s1710_s20 }
 0x6be   : > { %s2321_s24 = scalar_lea.vmem %s2875_s20, 128 }
 0x6bf   : > { %p2322_p0 = scmp.ne.s32.totalorder %s2875_s20, %s2321_s24 }
 0x6c1   : > { %p2323_p1 = pnand %p2322_p0, %p2573_p3 }
 0x6c3   : > { %p2324_p4 = pneg %p2323_p1 }
 0x729   : > { %v1131_v7 = vpop.f32.mrf.mxu1 }
 0x72a   : > { %v1178_v46 = vadd.f32 %v2792_v3, %v1131_v7 }
 0x72b   : > { %v1994_v8 = vpop.f32.mrf.mxu1 }
 0x72d   : > { %v1134_v9 = vpop.f32.mrf.mxu1 }
 0x72f   : > { %v1995_v10 = vpop.f32.mrf.mxu1 }
 0x731   : > { %v1227_v11 = vpop.f32.mrf.mxu1 }
 0x732   : > { %v1233_v13 = vsel %vm914_vm6, %v1227_v11, -inf }
 0x733   : > { %1234 = vmax.xlane.f32.xlu1 %v1233_v13  ;;  %v2006_v14 = vpop.f32.mrf.mxu1 }
 0x735   : > { %v1230_v15 = vpop.f32.mrf.mxu1 }
 0x737   : > { %v2007_v16 = vpop.f32.mrf.mxu1 }
 0x7bc   : > { %v1235_v18 = vpop.xlane.xlu1 %1234 }
 0x7bd   : > { %v1236_v19 = vsub.f32 %v1227_v11, %v1235_v18 }
 0x7bf   : > { %v1237_v20 = vmul.f32 1.442695, %v1236_v19  ;;  %v2191_v19 = vld [vmem:[#allocation11 + $0x8] sm:$0xff]  }
 0x7c1   : > { %2205 = vpow2.f32 %v1237_v20  ;;  %v2192_v20 = vld [vmem:[#allocation11] sm:$0xff]  }
 0x7ce   : > { %v2206_v21 = vpop.eup %2205 }
 0x7cf   : > { %v1239_v22 = vsel %vm914_vm6, %v2206_v21, 0.0 }
 0x7d0   : > { %1240 = vadd.xlane.f32.xlu0 %v1239_v22 }
 0x7e6   : > { %1343 = vrot.lane.b32.xlu0 %v2728_v2, %s2439_s12 }
 0x7ea   : > { %1341 = vrot.lane.b32.xlu0 %v2744_v12, %s2439_s12  ;;  %v1293_v12 = vld [vmem:[#allocation10 + $0x8] sm:$0xf] }
 0x7eb   : > { %v1298_v30 = vsel %vm1093_vm7, %v1293_v12, 0 }
 0x7ec   : > { %2015 = vmatpush3.bf16.msra.mxu1 %v1298_v30 }
 0x7ed   : > { %2026 = vmatprep.subr.bf16.mxu1 %v2435_v62 }
 0x859   : > { %v1241_v23 = vpop.xlane.xlu0 %1240 }
 0x85a   : > { %2207 = vrcp.f32 %v1241_v23 }
 0x85d   : > { %v1344_v26 = vpop.permute.xlu0 %1343 }
 0x85e   : > { %v1349_v27 = vsel %vm867_vm5, %v1344_v26, 0 }
 0x861   : > { %v1342_v2 = vpop.permute.xlu0 %1341 }
 0x867   : > { %v2208_v24 = vpop.eup %2207 }
 0x868   : > { %v1243_v25 = vmul.f32 %v2208_v24, %v2206_v21  ;;  %v1523_v24 = vlaneseq }
 0x86a   : > { %v1244_v28 = vpack.c.bf16 %v1243_v25, %v1243_v25  ;;  %v1524_v25 = vshrl.u32 %v1523_v24, 7 }
 0x86c   : > { %2011 = vmatmul.mubr.msk.bf16.vlgmr.msra.gmra.mxu0 %vm914_vm6, %v1244_v28  ;;  %v1525_v26 = vsub.s32 0, %v1524_v25 }
 0x86d   : > { %2021 = vmatpush3.bf16.xpose.msra.mxu0 %v1349_v27  ;;  %2022 = vmatprep.mubr.msk.bf16.mxu0 %vm2436_vm3, %v2435_v62 }
 0x86e   : > { %2032 = vmatprep.subr.bf16.mxu0 %v2435_v62  ;;  %v1526_v27 = vrot.slane %v2683_v0, %v1525_v26  ;;  %v1533_v12 = vrot.slane %v2688_v1, %v1525_v26  ;;  %v2194_v0 = vld [vmem:[%s2943_s13 + $0x10] sm:$0xff]   ;;  %v2195_v1 = vld [vmem:[%s2943_s13 + $0x8] sm:$0xff]  }
 0x874   : > { %2023 = vmatmul.mubr.msk.bf16.vlgmr.msra.gmra.mxu0 %vm867_vm5, %v1342_v2 }
 0x875   : > { %2034 = vmatprep.mubr.msk.bf16.mxu0 %vm2436_vm3, %v2435_v62  ;;  %2033 = vmatpush3.bf16.msra.mxu0 %v1456_v50 }
 0x876   : > { %2046 = vmatprep.subr.bf16.mxu0 %v2435_v62 }
 0x92c   : > { %v1285_v31 = vpop.f32.mrf.mxu0 }
 0x92d   : > { %v1291_v32 = vpack.c.bf16 %v1285_v31, %v1285_v31 }
 0x92e   : > { %v2012_v33 = vpop.f32.mrf.mxu0 }
 0x92f   : > { %2017 = vmatmul.mubr.msk.bf16.vlgmr.msra.gmra.mxu1 %vm867_vm5, %v1291_v32  ;;  %v2193_v33 = vld [vmem:[%s2943_s13 + $0x18] sm:$0xff]  }
 0x930   : > { %v1288_v34 = vpop.f32.mrf.mxu0  ;;  %2028 = vmatprep.mubr.msk.bf16.mxu1 %vm2436_vm3, %v2435_v62 }
 0x931   : > { %v2196_v34 = vld [vmem:[%s2943_s13] sm:$0xff]  }
 0x932   : > { %v2013_v35 = vpop.f32.mrf.mxu0 }
 0x933   : > { %v1879_v35 = vld [vmem:[%s2971_s14] ss:$0 sm:$0xff]  ;;  %s2973_s14 = sld [smem:[#allocation28_spill]] }
 0x934   : > { %v1385_v36 = vpop.f32.mrf.mxu0 }
 0x935   : > { %v1391_v37 = vsel %vm914_vm6, %v1385_v36, -inf }
 0x936   : > { %1392 = vmax.xlane.f32.xlu0 %v1391_v37  ;;  %v2024_v38 = vpop.f32.mrf.mxu0 }
 0x938   : > { %v1388_v39 = vpop.f32.mrf.mxu0 }
 0x93a   : > { %v2025_v40 = vpop.f32.mrf.mxu0 }
 0x9bf   : > { %v1393_v41 = vpop.xlane.xlu0 %1392 }
 0x9c0   : > { %v1394_v42 = vsub.f32 %v1385_v36, %v1393_v41 }
 0x9c2   : > { %v1395_v43 = vmul.f32 1.442695, %v1394_v42 }
 0x9c4   : > { %2209 = vpow2.f32 %v1395_v43 }
 0x9d1   : > { %v2210_v44 = vpop.eup %2209 }
 0x9d2   : > { %v1397_v45 = vsel %vm914_vm6, %v2210_v44, 0.0 }
 0x9d3   : > { %1398 = vadd.xlane.f32.xlu1 %v1397_v45 }
 0x9e4   : > { %1403 = vrot.lane.b32.xlu1 %v2759_v29, %s2439_s12  ;;  %s1891_s12 = sshll.u32 %s1706_s29, 7  ;;  %s2440_s29 = smov [#allocation13]  }
 0x9e5   : > { %s2873_s15 = scalar_lea.hbm %s2973_s14, %s1891_s12  ;;  %s2325_s16 = sshll.u32 %s2440_s29, 4  ;;  %s2326_s16 = int_to_ptr.vmem [resolvable:$false] %s2325_s16 }
 0x9e6   : > { %s2327_s27 = scalar_lea.vmem %s2326_s16, 256  ;;  %p2328_p6 = scmp.lt.s32.totalorder %s2875_s20, %s2326_s16 }
 0x9e7   : > { %p2329_p7 = scmp.lt.s32.totalorder %s2327_s27, %s2321_s24 }
 0x9e9   : > { %p2330_p8 = por %p2329_p7, %p2328_p6 }
 0x9eb   : > { %p2331_p9 = pnand %p2330_p8, %p2324_p4 }
 0x9ef   : > { %v1334_v47 = vpop.f32.mrf.mxu1 }
 0x9f0   : > { %v1340_v49 = vadd.f32 %v1334_v47, %v1178_v46  ;;  %v1883_v46 = vld [vmem:[%s2972_s23] ss:$0 sm:$0xff] }
 0x9f1   : > { %v2018_v51 = vpop.f32.mrf.mxu1 }
 0x9f3   : > { %v1337_v52 = vpop.f32.mrf.mxu1 }
 0x9f5   : > { %v2019_v53 = vpop.f32.mrf.mxu1 }
 0xa5c   : > { %v1399_v54 = vpop.xlane.xlu1 %1398 }
 0xa5d   : > { %2211 = vrcp.f32 %v1399_v54 }
 0xa60   : > { %v1404_v55 = vpop.permute.xlu1 %1403 }
 0xa61   : > { %2027 = vmatpush3.bf16.msra.mxu1 %v1404_v55 }
 0xa62   : > { %2038 = vmatprep.subr.bf16.mxu1 %v2435_v62 }
 0xa6a   : > { %v2212_v29 = vpop.eup %2211 }
 0xa6b   : > { %v1401_v56 = vmul.f32 %v2212_v29, %v2210_v44 }
 0xa6d   : > { %v1402_v57 = vpack.c.bf16 %v1401_v56, %v1401_v56 }
 0xa6f   : > { %2029 = vmatmul.mubr.msk.bf16.vlgmr.msra.gmra.mxu1 %vm914_vm6, %v1402_v57 }
 0xa70   : > { %2042 = vmatprep.mubr.msk.bf16.mxu1 %vm2436_vm3, %v2435_v62  ;;  %2039 = vmatpush3.bf16.msra.mxu1 %v2191_v19 }
 0xa71   : > { %2040 = vmatprep.subr.bf16.mxu1 %v2435_v62 }
 0xa74   : > { %2041 = vmatpush3.bf16.msra.mxu1 %v2192_v20 }
 0xb2f   : > { %v1443_v58 = vpop.f32.mrf.mxu1 }
 0xb30   : > { %v1449_v59 = vpack.c.bf16 %v1443_v58, %v1443_v58 }
 0xb31   : > { %v2030_v60 = vpop.f32.mrf.mxu1 }
 0xb32   : > { %2035 = vmatmul.mubr.msk.bf16.vlgmr.msra.gmra.mxu0 %vm867_vm5, %v1449_v59 }
 0xb33   : > { %v1446_v61 = vpop.f32.mrf.mxu1  ;;  %2054 = vmatprep.mubr.msk.bf16.mxu0 %vm2436_vm3, %v2435_v62  ;;  %2047 = vmatpush3.bf16.msra.mxu0 %v2193_v33 }
 0xb34   : > { %2048 = vmatprep.subr.bf16.mxu0 %v2435_v62 }
 0xb35   : > { %v2031_v63 = vpop.f32.mrf.mxu1 }
 0xb37   : > { %2049 = vmatpush3.bf16.msra.mxu0 %v2194_v0 }
 0xb38   : > { %2050 = vmatprep.subr.bf16.mxu0 %v2435_v62 }
 0xb3b   : > { %2051 = vmatpush3.bf16.msra.mxu0 %v2195_v1 }
 0xb3c   : > { %2052 = vmatprep.subr.bf16.mxu0 %v2435_v62 }
 0xb3f   : > { %2053 = vmatpush3.bf16.msra.mxu0 %v2196_v34 }
 0xbf2   : > { %v1492_v3 = vpop.f32.mrf.mxu0 }
 0xbf3   : > { %v1498_v5 = vadd.f32 %v1492_v3, %v1340_v49 }
 0xbf4   : > { %v2036_v7 = vpop.f32.mrf.mxu0 }
 0xbf5   : > { %v1506_v8 = vadd.f32 %v1878_v4, %v1498_v5 }
 0xbf6   : > { %v1495_v9 = vpop.f32.mrf.mxu0 }
 0xbf7   : > { %v2834_v10 = vadd.f32 %v1506_v8, %v783_v6 }
 0xbf8   : > { %v2037_v11 = vpop.f32.mrf.mxu0 }
 0xbf9   : > { %v1508_v13 = vsel %vm812_vm4, %v2834_v10, 0.0 }
 0xbfa   : > { %1509 = vadd.xlane.f32.xlu1 %v1508_v13 }
 0xc83   : > { %v1510_v14 = vpop.xlane.xlu1 %1509 }
 0xc84   : > { %v1512_v15 = vmul.f32 0.03125, %v1510_v14 }
 0xc86   : > { %v1513_v16 = vsub.f32 %v2834_v10, %v1512_v15 }
 0xc88   : > { %v1514_v17 = vmul.f32 %v1513_v16, %v1513_v16 }
 0xc8a   : > { %v1515_v18 = vsel %vm812_vm4, %v1514_v17, 0.0 }
 0xc8b   : > { %1516 = vadd.xlane.f32.xlu0 %v1515_v18 }
 0xd14   : > { %v1517_v21 = vpop.xlane.xlu0 %1516 }
 0xd15   : > { %v1518_v22 = vmul.f32 0.03125, %v1517_v21 }
 0xd17   : > { %v1519_v23 = vadd.f32 1e-05, %v1518_v22 }
 0xd19   : > { %2213 = vrsqrt.f32 %v1519_v23 }
 0xd26   : > { %v2214_v28 = vpop.eup %2213 }
 0xd27   : > { %v1521_v2 = vmul.f32 %v2214_v28, %v1513_v16 }
 0xd29   : > { %v1528_v30 = vmul.f32 %v1526_v27, %v1521_v2 }
 0xd2b   : > { %v1535_v31 = vadd.f32 %v1533_v12, %v1528_v30 }
 0xd2d   : > { %v1536_v32 = vpack.c.bf16 %v1535_v31, %v1535_v31 }
 0xd2f   : > { %2043 = vmatmul.mubr.msk.bf16.vlgmr.msra.gmra.mxu1 %vm812_vm4, %v1536_v32 }
 0xdef   : > { %v1597_v36 = vpop.f32.mrf.mxu1 }
 0xdf0   : > { %v1598_v37 = vadd.f32 %v1879_v35, %v1597_v36 }
 0xdf1   : > { %v2044_v38 = vpop.f32.mrf.mxu1 }
 0xdf2   : > { %v1604_v39 = vmul.f32 0.70710677, %v1598_v37  ;;  %v1603_v42 = vmul.f32 0.5, %v1598_v37 }
 0xdf3   : > { %v1600_v40 = vpop.f32.mrf.mxu1 }
 0xdf4   : > { %2215 = verf.f32 %v1604_v39 }
 0xdf5   : > { %v2045_v41 = vpop.f32.mrf.mxu1 }
 0xe01   : > { %v2216_v62 = vpop.eup %2215 }
 0xe02   : > { %v1606_v43 = vadd.f32 1.0, %v2216_v62 }
 0xe04   : > { %v1607_v44 = vmul.f32 %v1606_v43, %v1603_v42 }
 0xe06   : > { %v1608_v45 = vpack.c.bf16 %v1607_v44, %v1607_v44 }
 0xe08   : > { %2055 = vmatmul.mubr.msk.bf16.vlgmr.msra.gmra.mxu0 %vm1648_vm8, %v1608_v45 }
 0xec8   : > { %v1686_v47 = vpop.f32.mrf.mxu0 }
 0xec9   : > { %v1687_v48 = vadd.f32 %v1883_v46, %v1686_v47 }
 0xeca   : > { %v2056_v49 = vpop.f32.mrf.mxu0 }
 0xecb   : > { %v1692_v50 = vadd.f32 %v1687_v48, %v2834_v10 }
 0xecc   : > { %v1689_v51 = vpop.f32.mrf.mxu0 }
 0xecd   : > { %1693 = vst.msk [vmem:[%s560_s18] sm:$0xff] %vm812_vm4, %v1692_v50 }
 0xece   : > { %v2057_v52 = vpop.f32.mrf.mxu0 }
 0xecf   : > { %2334 = shalt.err (!%p2331_p9)
}
 0xed0   : > { %s2335_s28 = scalar_lea.hbm %s2873_s15, 128  ;;  %s2339_s12 = scalar_lea.hbm %s2973_s14, 512 }
 0xed1   : > { %p2336_p11 = scmp.ne.s32.totalorder %s2873_s15, %s2335_s28  ;;  %p2340_p5 = scmp.lt.s32.totalorder %s2873_s15, %s2973_s14 }
 0xed2   : > { %p2341_p10 = scmp.lt.s32.totalorder %s2339_s12, %s2335_s28 }
 0xed3   : > { %p2337_p13 = pnand %p2336_p11, %p2573_p3 }
 0xed4   : > { %p2342_p12 = por %p2341_p10, %p2340_p5 }
 0xed5   : > { %p2338_p2 = pneg %p2337_p13 }
 0xed7   : > { %p2343_p0 = pnand %p2342_p12, %p2338_p2 }
 0xed9   : > { %2346 = shalt.err (!%p2343_p0)
}
 0xeda   : > { %2074 = dma.vmem_to_hbm [thread:$0]  (%p2573_p3), %s2875_s20, 128, %s2873_s15, %s1695_s22  }
 0xedb PF: > { %s2975_s21 = sld [smem:[#allocation18_spill]]  ;;  %p2101_p1 = scmp.ge.s32.totalorder %s2425_s25, 2 }
 0xedc   : > { %s2976_s24 = sld [smem:[#allocation24_spill]] }
 0xee1   : > { %s1722_s29 = sand.u32 1, %s2975_s21  }
 0xee2   : > { %p2977_p4 = scmp.ne.s32.totalorder %s2976_s24, 0  ;;  %s1723_s16 = scalar_lea.sflag [#allocation7], %s1722_s29 }
 0xee4   : > { %p2090_p6 = pnand %p2101_p1, %p2977_p4 }
 0xee6   : > { %p2091_p7 = pneg %p2090_p6 }
 0xee8   : > { %2392 = dma.done.wait (%p2091_p7), %s1723_s16, 128  }
 0xee9   : > { %2394 = vsyncadd (%p2091_p7), %s1723_s16, 4294967168  ;;  %s31_s25 = sadd.s32 1, %s2425_s25   ;;  %s2978_s17 = sld [smem:[#allocation19_spill]] }
 0xeea   : > { %p28_p8 = scmp.ge.s32.totalorder %s31_s25, 6   ;;  %s2979_s20 = sld [smem:[#allocation25_spill]] }
 0xeeb   : > { %s2980_s21 = sld [smem:[#allocation20_spill]]  ;;  %s2984_s18 = smov %s2401_s19 }
 0xeec   : > { %s2981_s22 = sld [smem:[#allocation21_spill]]  ;;  %30 = sbr.rel (!%p28_p8) target bundleno = 12 (0xc), region = 141 }
 0xeed   : > { %s2982_s23 = sld [smem:[#allocation22_spill]] }
 0xeee   : > { %s2983_s24 = sld [smem:[#allocation23_spill]] }
 0xeef   : > { %s2985_s19 = smov %s2978_s17 }
 0xef1   :  { %1728 = vsyncpa [#allocation6], 1 }
 0xef2   :  { %1730 = vsyncpa [#allocation6 + $0x1], 1 }
 0xef3   :  { %1731 = vsyncpa [#allocation9], 1 }
 0xef4   :  { %1732 = vsyncpa [#allocation12], 1 }
 0xef5   :  { %1733 = vsyncpa [#allocation7], 1 }
 0xef6   :  { %1735 = vsyncpa [#allocation7 + $0x1], 1 }

</bundles_post_ra>
